<compile_context>
chip_gen: v5e
topology: v5e:2x2
jax: 0.10.0
libtpu: 0.0.40
codegen_flags: <defaults>
</compile_context>

<pallas_src>
import functools

import jax
import jax.numpy as jnp
from jax import lax
from jax.experimental import pallas as pl
from jax.experimental.pallas import tpu as pltpu


# --------------------------------------------------------------------------
# Fused kernel: conv1+bn1+relu -> conv2+bn2+relu -> (+ shortcut) -> relu
# One batch element per grid step; all intermediates stay in VMEM.
# --------------------------------------------------------------------------
def _basic_block_kernel(has_shortcut, x_ref, w1_ref, b1_ref, w2_ref, b2_ref,
                        *rest):
    if has_shortcut:
        wsc_ref, bsc_ref, out_ref, pad_sc, col_sc = rest
    else:
        out_ref, pad_sc, col_sc = rest

    _, H, W, P = out_ref.shape
    Cin = x_ref.shape[-1]
    Cmax = pad_sc.shape[-1]
    bf16 = jnp.bfloat16

    # ---- zero ONLY the 1-pixel halo border (interior is fully overwritten
    # every step).  Done per-step (not under program_id==0) so it is correct
    # under megacore "parallel" grid sharding where scratch is per-core.
    zrow = jnp.zeros((1, W + 4, Cmax), bf16)
    pad_sc[0:1, :, :] = zrow
    pad_sc[H + 1:H + 2, :, :] = zrow
    zcol = jnp.zeros((H + 2, 2, Cmax), bf16)
    pad_sc[:, 0:2, :] = zcol                     # covers halo column 1
    pad_sc[:, W + 2:W + 4, :] = zcol             # covers halo column W+2

    # ---- stage the input interior (sublane offset 2 keeps bf16 stores aligned)
    pad_sc[1:H + 1, 2:W + 2, 0:Cin] = x_ref[0]

    def conv3x3(C, w_ref):
        # Row-slab im2col: only the 3 kw taps are materialised (3x the input
        # volume instead of 9x), written once into the persistent col scratch.
        for kw in range(3):
            col_sc[:, kw * C:(kw + 1) * C] = (
                pad_sc[:, kw + 1:kw + 1 + W, 0:C].reshape((H + 2) * W, C))
        # The 3 kh taps become 3 MXU matmuls (K = 3*C) over contiguous,
        # sublane-aligned row blocks of the slab, accumulated in f32.
        acc = None
        for kh in range(3):
            part = jnp.dot(col_sc[kh * W:kh * W + H * W, 0:3 * C],
                           w_ref[kh * 3 * C:(kh + 1) * 3 * C, :],
                           preferred_element_type=jnp.float32)
            acc = part if acc is None else acc + part
        return acc                               # (H*W, P) float32

    # ---- conv1 (BN scale folded into w1) + shift + ReLU ---------------------
    out1 = jnp.maximum(conv3x3(Cin, w1_ref) + b1_ref[...], 0.0)
    # dropout1: identity in eval mode.

    # ---- restage the intermediate into the SAME padded scratch (x is dead;
    # bf16 rounding here is the quantisation point the reference models).
    pad_sc[1:H + 1, 2:W + 2, 0:P] = out1.reshape(H, W, P).astype(bf16)

    # ---- conv2 (BN scale folded into w2) + shift + ReLU ---------------------
    out2 = jnp.maximum(conv3x3(P, w2_ref) + b2_ref[...], 0.0)
    # dropout2: identity in eval mode.

    # ---- shortcut branch ----------------------------------------------------
    xf = x_ref[0].reshape(H * W, Cin)            # bf16
    if has_shortcut:
        sc = jnp.dot(xf, wsc_ref[...], preferred_element_type=jnp.float32)
        sc = sc + bsc_ref[...]
    else:
        sc = xf.astype(jnp.float32)              # identity shortcut (Cin == P)

    out_ref[0] = jnp.maximum(out2 + sc, 0.0).reshape(H, W, P)


# --------------------------------------------------------------------------
# Wrapper: layout plumbing + pallas_call
# --------------------------------------------------------------------------
def basic_block_forward(x_nchw, params, stride=1):
    """Full BasicBlock forward (eval mode).  Input/output NCHW float32."""
    if stride != 1:
        # TODO(synk): stride > 1 (downsampling) not implemented in the kernel.
        raise NotImplementedError("BasicBlock Pallas kernel supports stride=1 only")

    x = jnp.transpose(x_nchw, (0, 2, 3, 1))                      # NCHW -> NHWC
    N, H, W, Cin = x.shape
    P = params["b1"].shape[-1]
    has_shortcut = params["wsc"] is not None
    if not has_shortcut and Cin != P:
        raise ValueError("identity shortcut requires in_planes == planes")
    Cmax = max(Cin, P)

    x_b = x.astype(jnp.bfloat16)                                 # bf16 MXU feed

    ins = [x_b, params["w1"], params["b1"], params["w2"], params["b2"]]
    in_specs = [
        pl.BlockSpec((1, H, W, Cin), lambda n: (n, 0, 0, 0)),
        pl.BlockSpec((9 * Cin, P), lambda n: (0, 0)),
        pl.BlockSpec((1, P), lambda n: (0, 0)),
        pl.BlockSpec((9 * P, P), lambda n: (0, 0)),
        pl.BlockSpec((1, P), lambda n: (0, 0)),
    ]
    if has_shortcut:
        ins += [params["wsc"], params["bsc"]]
        in_specs += [
            pl.BlockSpec((Cin, P), lambda n: (0, 0)),
            pl.BlockSpec((1, P), lambda n: (0, 0)),
        ]

    # Raise the scoped-VMEM limit above the 16/32 MiB defaults (v5e/v6e) while
    # staying legal on v7x (64 MiB physical): cap at 3/4 of physical capacity.
    try:
        vmem_cap = int(pltpu.get_tpu_info().vmem_capacity_bytes)
    except Exception:
        vmem_cap = 64 * 1024 * 1024
    vmem_limit = min(96 * 1024 * 1024, (vmem_cap * 3) // 4)

    out = pl.pallas_call(
        functools.partial(_basic_block_kernel, has_shortcut),
        out_shape=jax.ShapeDtypeStruct((N, H, W, P), jnp.float32),
        grid_spec=pltpu.PrefetchScalarGridSpec(
            num_scalar_prefetch=0,
            grid=(N,),
            in_specs=in_specs,
            out_specs=pl.BlockSpec((1, H, W, P), lambda n: (n, 0, 0, 0)),
            scratch_shapes=[
                # one shared bf16 halo buffer (reused for x and the conv1 out)
                pltpu.VMEM((H + 2, W + 4, Cmax), jnp.bfloat16),
                # shared row-slab (im2col along W only: 3*C columns)
                pltpu.VMEM(((H + 2) * W, 3 * Cmax), jnp.bfloat16),
            ],
        ),
        compiler_params=pltpu.CompilerParams(
            dimension_semantics=("parallel",),
            vmem_limit_bytes=vmem_limit),
    )(*ins)

    return jnp.transpose(out, (0, 3, 1, 2))                      # NHWC -> NCHW


# --------------------------------------------------------------------------
# Deterministic synthetic parameters (shapes from the module __init__)
# --------------------------------------------------------------------------
def _fold_bn(gamma, beta, mean, var, eps=1e-5):
    scale = gamma / jnp.sqrt(var + eps)
    shift = beta - mean * scale
    return scale, shift                                          # (P,), (P,)


def init_params(key, in_planes, planes, stride=1):
    assert stride == 1  # TODO(synk): stride > 1 not implemented in the kernel
    ks = jax.random.split(key, 14)
    w1 = 0.2 * jax.random.normal(ks[0], (3, 3, in_planes, planes), jnp.float32)
    w2 = 0.2 * jax.random.normal(ks[1], (3, 3, planes, planes), jnp.float32)

    def bn(i):
        gamma = 1.0 + 0.1 * jax.random.normal(ks[i], (planes,), jnp.float32)
        beta = 0.1 * jax.random.normal(ks[i + 1], (planes,), jnp.float32)
        mean = 0.05 * jax.random.normal(ks[i + 2], (planes,), jnp.float32)
        var = 0.5 + jnp.abs(jax.random.normal(ks[i + 3], (planes,), jnp.float32))
        return _fold_bn(gamma, beta, mean, var)

    s1, b1 = bn(2)
    s2, b2 = bn(6)

    # Fold the BN scale into the conv weights (per output channel); only the
    # shift survives into the kernel epilogue.  Quantise to bf16 once, here.
    w1_hwio = (w1 * s1).astype(jnp.bfloat16)                     # (3,3,Cin,P)
    w2_hwio = (w2 * s2).astype(jnp.bfloat16)                     # (3,3,P,P)

    if in_planes != planes or stride != 1:
        wsc_f32 = 0.2 * jax.random.normal(ks[10], (in_planes, planes), jnp.float32)
        gsc = 1.0 + 0.1 * jax.random.normal(ks[11], (planes,), jnp.float32)
        betasc = 0.1 * jax.random.normal(ks[12], (planes,), jnp.float32)
        msc = 0.05 * jax.random.normal(ks[13], (planes,), jnp.float32)
        vsc = jnp.ones((planes,), jnp.float32)
        ssc, shsc = _fold_bn(gsc, betasc, msc, vsc)
        wsc = (wsc_f32 * ssc).astype(jnp.bfloat16)
        bsc = shsc[None, :]
    else:  # empty nn.Sequential shortcut -> identity (matmul elided in kernel)
        wsc, bsc = None, None

    return dict(
        w1_hwio=w1_hwio, w2_hwio=w2_hwio,
        w1=w1_hwio.reshape(9 * in_planes, planes),               # (kh,kw,cin) flat
        w2=w2_hwio.reshape(9 * planes, planes),
        b1=b1[None, :], b2=b2[None, :],
        wsc=wsc, bsc=bsc,
    )


# --------------------------------------------------------------------------
# Plain-JAX reference mirroring the kernel's bf16 quantisation points
# --------------------------------------------------------------------------
def reference_forward(x_nchw, p):
    f32 = jnp.float32
    x = jnp.transpose(x_nchw, (0, 2, 3, 1)).astype(f32)
    xq = x.astype(jnp.bfloat16).astype(f32)
    w1q = p["w1_hwio"].astype(f32)       # BN scale already folded, bf16-rounded
    w2q = p["w2_hwio"].astype(f32)

    def conv3(inp, w):
        return lax.conv_general_dilated(
            inp, w, window_strides=(1, 1), padding=((1, 1), (1, 1)),
            dimension_numbers=("NHWC", "HWIO", "NHWC"))

    o1 = jax.nn.relu(conv3(xq, w1q) + p["b1"][0])
    o1q = o1.astype(jnp.bfloat16).astype(f32)     # kernel feeds conv2 in bf16
    o2 = jax.nn.relu(conv3(o1q, w2q) + p["b2"][0])

    if p["wsc"] is not None:
        sc = jnp.einsum("nhwc,cp->nhwp", xq, p["wsc"].astype(f32)) + p["bsc"][0]
    else:
        sc = xq

    out = jax.nn.relu(o2 + sc)
    return jnp.transpose(out, (0, 3, 1, 2))


if __name__ == "__main__":
    key = jax.random.PRNGKey(0)
    kx, kp = jax.random.split(key)

    N, in_planes, H, W = 2, 4, 16, 16
    planes = 8  # in_planes != planes -> the 1x1-conv shortcut branch is active

    x = jax.random.normal(kx, (N, in_planes, H, W), jnp.float32)
    params = init_params(kp, in_planes, planes, stride=1)

    out = jax.block_until_ready(basic_block_forward(x, params))
    ref = reference_forward(x, params)

    assert out.shape == (N, planes, H, W), out.shape
    max_err = float(jnp.max(jnp.abs(out - ref)))
    # bf16 MXU operands (scale-folded weights) with f32 accumulation; the
    # intermediate activation is rounded to bf16 once in both kernel and
    # reference, so only accumulation-order differences remain.
    assert jnp.allclose(out, ref, atol=1e-2, rtol=1e-2), f"max_err={max_err}"

    print("KERNEL_OK")
</pallas_src>

<mosaic_0001>
module attributes {stable_mosaic.version = 11 : i64} {
  func.func @_basic_block_kernel(%arg0: i32, %arg1: memref<1x16x16x4xbf16, #tpu.memory_space<vmem>>, %arg2: memref<36x8xbf16, #tpu.memory_space<vmem>>, %arg3: memref<1x8xf32, #tpu.memory_space<vmem>>, %arg4: memref<72x8xbf16, #tpu.memory_space<vmem>>, %arg5: memref<1x8xf32, #tpu.memory_space<vmem>>, %arg6: memref<4x8xbf16, #tpu.memory_space<vmem>>, %arg7: memref<1x8xf32, #tpu.memory_space<vmem>>, %arg8: memref<1x16x16x8xf32, #tpu.memory_space<vmem>>, %arg9: memref<18x20x8xbf16, #tpu.memory_space<vmem>>, %arg10: memref<288x24xbf16, #tpu.memory_space<vmem>>) attributes {dimension_semantics = [#tpu.dimension_semantics<parallel>], iteration_bounds = array<i64: 2>, scalar_prefetch = 0 : i64, scratch_operands = 2 : i64, tpu.core_type = #tpu.core_type<tc>, window_params = [{transform_indices = @transform_0, window_bounds = array<i64: 1, 16, 16, 4>}, {pipeline_mode = #tpu.pipeline_mode<synchronous>, transform_indices = @transform_1, window_bounds = array<i64: 36, 8>}, {pipeline_mode = #tpu.pipeline_mode<synchronous>, transform_indices = @transform_2, window_bounds = array<i64: 1, 8>}, {pipeline_mode = #tpu.pipeline_mode<synchronous>, transform_indices = @transform_3, window_bounds = array<i64: 72, 8>}, {pipeline_mode = #tpu.pipeline_mode<synchronous>, transform_indices = @transform_4, window_bounds = array<i64: 1, 8>}, {pipeline_mode = #tpu.pipeline_mode<synchronous>, transform_indices = @transform_5, window_bounds = array<i64: 4, 8>}, {pipeline_mode = #tpu.pipeline_mode<synchronous>, transform_indices = @transform_6, window_bounds = array<i64: 1, 8>}, {transform_indices = @transform_7, window_bounds = array<i64: 1, 16, 16, 8>}]} {
    %cst = arith.constant 0.000000e+00 : bf16
    %0 = vector.broadcast %cst : bf16 to vector<1x20x8xbf16>
    %c0 = arith.constant 0 : index
    %c0_0 = arith.constant 0 : index
    %c0_1 = arith.constant 0 : index
    %1 = vector.load %arg9[%c0, %c0_0, %c0_1] : memref<18x20x8xbf16, #tpu.memory_space<vmem>>, vector<1x20x8xbf16>
    tpu.vector_store %arg9[%c0, %c0_0, %c0_1], %0 {strides = array<i32>} : memref<18x20x8xbf16, #tpu.memory_space<vmem>>, vector<1x20x8xbf16>,
    %c17 = arith.constant 17 : index
    %c0_2 = arith.constant 0 : index
    %c0_3 = arith.constant 0 : index
    %2 = vector.load %arg9[%c17, %c0_2, %c0_3] : memref<18x20x8xbf16, #tpu.memory_space<vmem>>, vector<1x20x8xbf16>
    tpu.vector_store %arg9[%c17, %c0_2, %c0_3], %0 {strides = array<i32>} : memref<18x20x8xbf16, #tpu.memory_space<vmem>>, vector<1x20x8xbf16>,
    %cst_4 = arith.constant 0.000000e+00 : bf16
    %3 = vector.broadcast %cst_4 : bf16 to vector<18x2x8xbf16>
    %c0_5 = arith.constant 0 : index
    %c0_6 = arith.constant 0 : index
    %c0_7 = arith.constant 0 : index
    %4 = vector.load %arg9[%c0_5, %c0_6, %c0_7] : memref<18x20x8xbf16, #tpu.memory_space<vmem>>, vector<18x2x8xbf16>
    tpu.vector_store %arg9[%c0_5, %c0_6, %c0_7], %3 {strides = array<i32>} : memref<18x20x8xbf16, #tpu.memory_space<vmem>>, vector<18x2x8xbf16>,
    %c0_8 = arith.constant 0 : index
    %c18 = arith.constant 18 : index
    %c0_9 = arith.constant 0 : index
    %5 = vector.load %arg9[%c0_8, %c18, %c0_9] : memref<18x20x8xbf16, #tpu.memory_space<vmem>>, vector<18x2x8xbf16>
    tpu.vector_store %arg9[%c0_8, %c18, %c0_9], %3 {strides = array<i32>} : memref<18x20x8xbf16, #tpu.memory_space<vmem>>, vector<18x2x8xbf16>,
    %c0_10 = arith.constant 0 : index
    %c0_11 = arith.constant 0 : index
    %c0_12 = arith.constant 0 : index
    %c0_13 = arith.constant 0 : index
    %6 = vector.load %arg1[%c0_10, %c0_11, %c0_12, %c0_13] : memref<1x16x16x4xbf16, #tpu.memory_space<vmem>>, vector<1x16x16x4xbf16>
    %7 = vector.shape_cast %6 : vector<1x16x16x4xbf16> to vector<16x16x4xbf16>
    %c1 = arith.constant 1 : index
    %c2 = arith.constant 2 : index
    %c0_14 = arith.constant 0 : index
    %8 = vector.load %arg9[%c1, %c2, %c0_14] : memref<18x20x8xbf16, #tpu.memory_space<vmem>>, vector<16x16x4xbf16>
    tpu.vector_store %arg9[%c1, %c2, %c0_14], %7 {strides = array<i32>} : memref<18x20x8xbf16, #tpu.memory_space<vmem>>, vector<16x16x4xbf16>,
    %c0_15 = arith.constant 0 : index
    %c1_16 = arith.constant 1 : index
    %c0_17 = arith.constant 0 : index
    %9 = vector.load %arg9[%c0_15, %c1_16, %c0_17] : memref<18x20x8xbf16, #tpu.memory_space<vmem>>, vector<18x16x4xbf16>
    %10 = vector.shape_cast %9 : vector<18x16x4xbf16> to vector<288x4xbf16>
    %c0_18 = arith.constant 0 : index
    %c0_19 = arith.constant 0 : index
    %11 = vector.load %arg10[%c0_18, %c0_19] : memref<288x24xbf16, #tpu.memory_space<vmem>>, vector<288x4xbf16>
    tpu.vector_store %arg10[%c0_18, %c0_19], %10 {strides = array<i32>} : memref<288x24xbf16, #tpu.memory_space<vmem>>, vector<288x4xbf16>,
    %c0_20 = arith.constant 0 : index
    %c2_21 = arith.constant 2 : index
    %c0_22 = arith.constant 0 : index
    %12 = vector.load %arg9[%c0_20, %c2_21, %c0_22] : memref<18x20x8xbf16, #tpu.memory_space<vmem>>, vector<18x16x4xbf16>
    %13 = vector.shape_cast %12 : vector<18x16x4xbf16> to vector<288x4xbf16>
    %c0_23 = arith.constant 0 : index
    %c4 = arith.constant 4 : index
    %14 = vector.load %arg10[%c0_23, %c4] : memref<288x24xbf16, #tpu.memory_space<vmem>>, vector<288x4xbf16>
    tpu.vector_store %arg10[%c0_23, %c4], %13 {strides = array<i32>} : memref<288x24xbf16, #tpu.memory_space<vmem>>, vector<288x4xbf16>,
    %c0_24 = arith.constant 0 : index
    %c3 = arith.constant 3 : index
    %c0_25 = arith.constant 0 : index
    %15 = vector.load %arg9[%c0_24, %c3, %c0_25] : memref<18x20x8xbf16, #tpu.memory_space<vmem>>, vector<18x16x4xbf16>
    %16 = vector.shape_cast %15 : vector<18x16x4xbf16> to vector<288x4xbf16>
    %c0_26 = arith.constant 0 : index
    %c8 = arith.constant 8 : index
    %17 = vector.load %arg10[%c0_26, %c8] : memref<288x24xbf16, #tpu.memory_space<vmem>>, vector<288x4xbf16>
    tpu.vector_store %arg10[%c0_26, %c8], %16 {strides = array<i32>} : memref<288x24xbf16, #tpu.memory_space<vmem>>, vector<288x4xbf16>,
    %c0_27 = arith.constant 0 : index
    %c0_28 = arith.constant 0 : index
    %18 = vector.load %arg10[%c0_27, %c0_28] : memref<288x24xbf16, #tpu.memory_space<vmem>>, vector<256x12xbf16>
    %c0_29 = arith.constant 0 : index
    %c0_30 = arith.constant 0 : index
    %19 = vector.load %arg2[%c0_29, %c0_30] : memref<36x8xbf16, #tpu.memory_space<vmem>>, vector<12x8xbf16>
    %cst_31 = arith.constant dense<0.000000e+00> : vector<256x8xf32>
    %20 = tpu.matmul %18, %19, %cst_31 {dimension_numbers = #tpu.dot_dimension_numbers<[1], [0], [0], [1], [0, 0, 1, 1], [], []>} : vector<256x12xbf16>, vector<12x8xbf16>, vector<256x8xf32> -> vector<256x8xf32>
    %c16 = arith.constant 16 : index
    %c0_32 = arith.constant 0 : index
    %21 = vector.load %arg10[%c16, %c0_32] : memref<288x24xbf16, #tpu.memory_space<vmem>>, vector<256x12xbf16>
    %c12 = arith.constant 12 : index
    %c0_33 = arith.constant 0 : index
    %22 = vector.load %arg2[%c12, %c0_33] : memref<36x8xbf16, #tpu.memory_space<vmem>>, vector<12x8xbf16>
    %cst_34 = arith.constant dense<0.000000e+00> : vector<256x8xf32>
    %23 = tpu.matmul %21, %22, %cst_34 {dimension_numbers = #tpu.dot_dimension_numbers<[1], [0], [0], [1], [0, 0, 1, 1], [], []>} : vector<256x12xbf16>, vector<12x8xbf16>, vector<256x8xf32> -> vector<256x8xf32>
    %24 = arith.addf %20, %23 : vector<256x8xf32>
    %c32 = arith.constant 32 : index
    %c0_35 = arith.constant 0 : index
    %25 = vector.load %arg10[%c32, %c0_35] : memref<288x24xbf16, #tpu.memory_space<vmem>>, vector<256x12xbf16>
    %c24 = arith.constant 24 : index
    %c0_36 = arith.constant 0 : index
    %26 = vector.load %arg2[%c24, %c0_36] : memref<36x8xbf16, #tpu.memory_space<vmem>>, vector<12x8xbf16>
    %cst_37 = arith.constant dense<0.000000e+00> : vector<256x8xf32>
    %27 = tpu.matmul %25, %26, %cst_37 {dimension_numbers = #tpu.dot_dimension_numbers<[1], [0], [0], [1], [0, 0, 1, 1], [], []>} : vector<256x12xbf16>, vector<12x8xbf16>, vector<256x8xf32> -> vector<256x8xf32>
    %28 = arith.addf %24, %27 : vector<256x8xf32>
    %c0_38 = arith.constant 0 : index
    %c0_39 = arith.constant 0 : index
    %29 = vector.load %arg3[%c0_38, %c0_39] : memref<1x8xf32, #tpu.memory_space<vmem>>, vector<1x8xf32>
    %30 = vector.broadcast %29 : vector<1x8xf32> to vector<256x8xf32>
    %31 = arith.addf %28, %30 : vector<256x8xf32>
    %cst_40 = arith.constant 0.000000e+00 : f32
    %32 = vector.broadcast %cst_40 : f32 to vector<256x8xf32>
    %33 = arith.maximumf %31, %32 : vector<256x8xf32>
    %34 = vector.shape_cast %33 : vector<256x8xf32> to vector<16x16x8xf32>
    %35 = arith.truncf %34 : vector<16x16x8xf32> to vector<16x16x8xbf16>
    %c1_41 = arith.constant 1 : index
    %c2_42 = arith.constant 2 : index
    %c0_43 = arith.constant 0 : index
    %36 = vector.load %arg9[%c1_41, %c2_42, %c0_43] : memref<18x20x8xbf16, #tpu.memory_space<vmem>>, vector<16x16x8xbf16>
    tpu.vector_store %arg9[%c1_41, %c2_42, %c0_43], %35 {strides = array<i32>} : memref<18x20x8xbf16, #tpu.memory_space<vmem>>, vector<16x16x8xbf16>,
    %c0_44 = arith.constant 0 : index
    %c1_45 = arith.constant 1 : index
    %c0_46 = arith.constant 0 : index
    %37 = vector.load %arg9[%c0_44, %c1_45, %c0_46] : memref<18x20x8xbf16, #tpu.memory_space<vmem>>, vector<18x16x8xbf16>
    %38 = vector.shape_cast %37 : vector<18x16x8xbf16> to vector<288x8xbf16>
    %c0_47 = arith.constant 0 : index
    %c0_48 = arith.constant 0 : index
    %39 = vector.load %arg10[%c0_47, %c0_48] : memref<288x24xbf16, #tpu.memory_space<vmem>>, vector<288x8xbf16>
    tpu.vector_store %arg10[%c0_47, %c0_48], %38 {strides = array<i32>} : memref<288x24xbf16, #tpu.memory_space<vmem>>, vector<288x8xbf16>,
    %c0_49 = arith.constant 0 : index
    %c2_50 = arith.constant 2 : index
    %c0_51 = arith.constant 0 : index
    %40 = vector.load %arg9[%c0_49, %c2_50, %c0_51] : memref<18x20x8xbf16, #tpu.memory_space<vmem>>, vector<18x16x8xbf16>
    %41 = vector.shape_cast %40 : vector<18x16x8xbf16> to vector<288x8xbf16>
    %c0_52 = arith.constant 0 : index
    %c8_53 = arith.constant 8 : index
    %42 = vector.load %arg10[%c0_52, %c8_53] : memref<288x24xbf16, #tpu.memory_space<vmem>>, vector<288x8xbf16>
    tpu.vector_store %arg10[%c0_52, %c8_53], %41 {strides = array<i32>} : memref<288x24xbf16, #tpu.memory_space<vmem>>, vector<288x8xbf16>,
    %c0_54 = arith.constant 0 : index
    %c3_55 = arith.constant 3 : index
    %c0_56 = arith.constant 0 : index
    %43 = vector.load %arg9[%c0_54, %c3_55, %c0_56] : memref<18x20x8xbf16, #tpu.memory_space<vmem>>, vector<18x16x8xbf16>
    %44 = vector.shape_cast %43 : vector<18x16x8xbf16> to vector<288x8xbf16>
    %c0_57 = arith.constant 0 : index
    %c16_58 = arith.constant 16 : index
    %45 = vector.load %arg10[%c0_57, %c16_58] : memref<288x24xbf16, #tpu.memory_space<vmem>>, vector<288x8xbf16>
    tpu.vector_store %arg10[%c0_57, %c16_58], %44 {strides = array<i32>} : memref<288x24xbf16, #tpu.memory_space<vmem>>, vector<288x8xbf16>,
    %c0_59 = arith.constant 0 : index
    %c0_60 = arith.constant 0 : index
    %46 = vector.load %arg10[%c0_59, %c0_60] : memref<288x24xbf16, #tpu.memory_space<vmem>>, vector<256x24xbf16>
    %c0_61 = arith.constant 0 : index
    %c0_62 = arith.constant 0 : index
    %47 = vector.load %arg4[%c0_61, %c0_62] : memref<72x8xbf16, #tpu.memory_space<vmem>>, vector<24x8xbf16>
    %cst_63 = arith.constant dense<0.000000e+00> : vector<256x8xf32>
    %48 = tpu.matmul %46, %47, %cst_63 {dimension_numbers = #tpu.dot_dimension_numbers<[1], [0], [0], [1], [0, 0, 1, 1], [], []>} : vector<256x24xbf16>, vector<24x8xbf16>, vector<256x8xf32> -> vector<256x8xf32>
    %c16_64 = arith.constant 16 : index
    %c0_65 = arith.constant 0 : index
    %49 = vector.load %arg10[%c16_64, %c0_65] : memref<288x24xbf16, #tpu.memory_space<vmem>>, vector<256x24xbf16>
    %c24_66 = arith.constant 24 : index
    %c0_67 = arith.constant 0 : index
    %50 = vector.load %arg4[%c24_66, %c0_67] : memref<72x8xbf16, #tpu.memory_space<vmem>>, vector<24x8xbf16>
    %cst_68 = arith.constant dense<0.000000e+00> : vector<256x8xf32>
    %51 = tpu.matmul %49, %50, %cst_68 {dimension_numbers = #tpu.dot_dimension_numbers<[1], [0], [0], [1], [0, 0, 1, 1], [], []>} : vector<256x24xbf16>, vector<24x8xbf16>, vector<256x8xf32> -> vector<256x8xf32>
    %52 = arith.addf %48, %51 : vector<256x8xf32>
    %c32_69 = arith.constant 32 : index
    %c0_70 = arith.constant 0 : index
    %53 = vector.load %arg10[%c32_69, %c0_70] : memref<288x24xbf16, #tpu.memory_space<vmem>>, vector<256x24xbf16>
    %c48 = arith.constant 48 : index
    %c0_71 = arith.constant 0 : index
    %54 = vector.load %arg4[%c48, %c0_71] : memref<72x8xbf16, #tpu.memory_space<vmem>>, vector<24x8xbf16>
    %cst_72 = arith.constant dense<0.000000e+00> : vector<256x8xf32>
    %55 = tpu.matmul %53, %54, %cst_72 {dimension_numbers = #tpu.dot_dimension_numbers<[1], [0], [0], [1], [0, 0, 1, 1], [], []>} : vector<256x24xbf16>, vector<24x8xbf16>, vector<256x8xf32> -> vector<256x8xf32>
    %56 = arith.addf %52, %55 : vector<256x8xf32>
    %c0_73 = arith.constant 0 : index
    %c0_74 = arith.constant 0 : index
    %57 = vector.load %arg5[%c0_73, %c0_74] : memref<1x8xf32, #tpu.memory_space<vmem>>, vector<1x8xf32>
    %58 = vector.broadcast %57 : vector<1x8xf32> to vector<256x8xf32>
    %59 = arith.addf %56, %58 : vector<256x8xf32>
    %cst_75 = arith.constant 0.000000e+00 : f32
    %60 = vector.broadcast %cst_75 : f32 to vector<256x8xf32>
    %61 = arith.maximumf %59, %60 : vector<256x8xf32>
    %c0_76 = arith.constant 0 : index
    %c0_77 = arith.constant 0 : index
    %c0_78 = arith.constant 0 : index
    %c0_79 = arith.constant 0 : index
    %62 = vector.load %arg1[%c0_76, %c0_77, %c0_78, %c0_79] : memref<1x16x16x4xbf16, #tpu.memory_space<vmem>>, vector<1x16x16x4xbf16>
    %63 = vector.shape_cast %62 : vector<1x16x16x4xbf16> to vector<16x16x4xbf16>
    %64 = vector.shape_cast %63 : vector<16x16x4xbf16> to vector<256x4xbf16>
    %c0_80 = arith.constant 0 : index
    %c0_81 = arith.constant 0 : index
    %65 = vector.load %arg6[%c0_80, %c0_81] : memref<4x8xbf16, #tpu.memory_space<vmem>>, vector<4x8xbf16>
    %cst_82 = arith.constant dense<0.000000e+00> : vector<256x8xf32>
    %66 = tpu.matmul %64, %65, %cst_82 {dimension_numbers = #tpu.dot_dimension_numbers<[1], [0], [0], [1], [0, 0, 1, 1], [], []>} : vector<256x4xbf16>, vector<4x8xbf16>, vector<256x8xf32> -> vector<256x8xf32>
    %c0_83 = arith.constant 0 : index
    %c0_84 = arith.constant 0 : index
    %67 = vector.load %arg7[%c0_83, %c0_84] : memref<1x8xf32, #tpu.memory_space<vmem>>, vector<1x8xf32>
    %68 = vector.broadcast %67 : vector<1x8xf32> to vector<256x8xf32>
    %69 = arith.addf %66, %68 : vector<256x8xf32>
    %70 = arith.addf %61, %69 : vector<256x8xf32>
    %cst_85 = arith.constant 0.000000e+00 : f32
    %71 = vector.broadcast %cst_85 : f32 to vector<256x8xf32>
    %72 = arith.maximumf %70, %71 : vector<256x8xf32>
    %73 = vector.shape_cast %72 : vector<256x8xf32> to vector<16x16x8xf32>
    %c0_86 = arith.constant 0 : index
    %c0_87 = arith.constant 0 : index
    %c0_88 = arith.constant 0 : index
    %c0_89 = arith.constant 0 : index
    %74 = vector.load %arg8[%c0_86, %c0_87, %c0_88, %c0_89] : memref<1x16x16x8xf32, #tpu.memory_space<vmem>>, vector<1x16x16x8xf32>
    %75 = vector.shape_cast %74 : vector<1x16x16x8xf32> to vector<16x16x8xf32>
    %76 = vector.shape_cast %73 : vector<16x16x8xf32> to vector<1x16x16x8xf32>
    tpu.vector_store %arg8[%c0_86, %c0_87, %c0_88, %c0_89], %76 {strides = array<i32>} : memref<1x16x16x8xf32, #tpu.memory_space<vmem>>, vector<1x16x16x8xf32>,
    return
  }
  func.func @transform_0(%arg0: i32) -> (i32, i32, i32, i32) {
    %c0_i32 = arith.constant 0 : i32
    %c0_i32_0 = arith.constant 0 : i32
    %c0_i32_1 = arith.constant 0 : i32
    %c0_i32_2 = arith.constant 0 : i32
    return %arg0, %c0_i32, %c0_i32_0, %c0_i32_1 : i32, i32, i32, i32
  }
  func.func @transform_1(%arg0: i32) -> (i32, i32) {
    %c0_i32 = arith.constant 0 : i32
    %c0_i32_0 = arith.constant 0 : i32
    %c0_i32_1 = arith.constant 0 : i32
    return %c0_i32, %c0_i32_0 : i32, i32
  }
  func.func @transform_2(%arg0: i32) -> (i32, i32) {
    %c0_i32 = arith.constant 0 : i32
    %c0_i32_0 = arith.constant 0 : i32
    %c0_i32_1 = arith.constant 0 : i32
    return %c0_i32, %c0_i32_0 : i32, i32
  }
  func.func @transform_3(%arg0: i32) -> (i32, i32) {
    %c0_i32 = arith.constant 0 : i32
    %c0_i32_0 = arith.constant 0 : i32
    %c0_i32_1 = arith.constant 0 : i32
    return %c0_i32, %c0_i32_0 : i32, i32
  }
  func.func @transform_4(%arg0: i32) -> (i32, i32) {
    %c0_i32 = arith.constant 0 : i32
    %c0_i32_0 = arith.constant 0 : i32
    %c0_i32_1 = arith.constant 0 : i32
    return %c0_i32, %c0_i32_0 : i32, i32
  }
  func.func @transform_5(%arg0: i32) -> (i32, i32) {
    %c0_i32 = arith.constant 0 : i32
    %c0_i32_0 = arith.constant 0 : i32
    %c0_i32_1 = arith.constant 0 : i32
    return %c0_i32, %c0_i32_0 : i32, i32
  }
  func.func @transform_6(%arg0: i32) -> (i32, i32) {
    %c0_i32 = arith.constant 0 : i32
    %c0_i32_0 = arith.constant 0 : i32
    %c0_i32_1 = arith.constant 0 : i32
    return %c0_i32, %c0_i32_0 : i32, i32
  }
  func.func @transform_7(%arg0: i32) -> (i32, i32, i32, i32) {
    %c0_i32 = arith.constant 0 : i32
    %c0_i32_0 = arith.constant 0 : i32
    %c0_i32_1 = arith.constant 0 : i32
    %c0_i32_2 = arith.constant 0 : i32
    return %arg0, %c0_i32, %c0_i32_0, %c0_i32_1 : i32, i32, i32, i32
  }
}

</mosaic_0001>

<bundles_post_ra>
// kernel: tpu_custom_call.1
= control target key start
LH: loop header
LB: loop body
LE: loop exit
PB: predicated region body
PF: predicated region fallthrough
CT: control target
= control target key end

     0   :  { %s6664_s24 = smov 0   ;;  %s8805_s0 = inlined_call_operand.vmem [shape: bf16[2,16,16,4], index: 0, kind: input, shape index: {}]   ;;  %s8806_s1 = inlined_call_operand.vmem [shape: bf16[36,8], index: 1, kind: input, shape index: {}]   ;;  %s8807_s2 = inlined_call_operand.vmem [shape: f32[1,8], index: 2, kind: input, shape index: {}]   ;;  %s8808_s3 = inlined_call_operand.vmem [shape: bf16[72,8], index: 3, kind: input, shape index: {}]   ;;  %s8809_s4 = inlined_call_operand.vmem [shape: f32[1,8], index: 4, kind: input, shape index: {}]   ;;  %s8810_s5 = inlined_call_operand.vmem [shape: bf16[4,8], index: 5, kind: input, shape index: {}]   ;;  %s8811_s6 = inlined_call_operand.vmem [shape: f32[1,8], index: 6, kind: input, shape index: {}]   ;;  %s8812_s7 = inlined_call_operand.vmem [shape: f32[2,16,16,8], index: 7, kind: output, shape index: {}]  }
   0x1 LB: > { %s5989_s25 = sadd.s32 4294967295, %s6618_s24   ;;  %p5993_p0 = scmp.ge.s32.totalorder %s6618_s24, 1  ;;  %s6618_s24 = sphi %s6664_s24, %s17_s24  }
   0x2   : > { %p237_p1 = scmp.lt.s32.totalorder %s6618_s24, 3 }
   0x4   : > { %p238_p2 = pnand %p5993_p0, %p237_p1 }
   0x5   : > { %p269_p3 = scmp.lt.s32.totalorder (!%p238_p2), %s5989_s25, 1  ;;  %s6621_s30 = smov (!%p238_p2), 4  }
   0x6   : > { %241 = sbr.rel (%p238_p2) target bundleno = 908 (0x38c), region = 48  ;;  %s6622_s8 = smov (!%p238_p2), 8  }
   0xb   : > { %vm280_vm0 = vcmask 60416   ;;  %vm283_vm1 = vcmask 58368   ;;  %vm308_vm2 = vcmask 58369   ;;  %v6620_v0 = vmov 0   ;;  %s8822_s25 = smov (!%p269_p3, %s5989_s25), 1 }
   0xc   : > { %282 = vst.msk [vmem:[#allocation2 + $0x4] sm:$0xf] %vm280_vm0, %v6620_v0  ;;  %s6500_s26 = sshll.u32 %s8822_s25, 7  ;;  %vm1571_vm3 = vsmask.f32 2304  ;;  %vm1243_vm5 = vcmask 1042432  }
   0xd   : > { %284 = vst.msk [vmem:[#allocation2 + $0x8] sm:$0x3] %vm283_vm1, %v6620_v0  ;;  %s6689_s29 = scalar_lea.vmem %s8805_s0, %s6500_s26  ;;  %vm1572_vm4 = vsmask.f32 6416  ;;  %vm1244_vm6 = vcmask 1046532   ;;  %vm391_vm7 = vcmask 1040384  }
   0xe   : > { %309 = vst.msk [vmem:[#allocation2 + $0x8] sm:$0x2] %vm308_vm2, %v6620_v0  ;;  %v6697_v5 = vld [vmem:[%s6689_s29] sm:$0xf]  ;;  %v328_v12 = vld [vmem:[%s6689_s29 + $0x4] sm:$0xf]  ;;  %vm6709_vm9 = vmor %vm1243_vm5, %vm1244_vm6 }
   0xf   : > { %281 = vst.msk [vmem:[#allocation2] sm:$0xf] %vm280_vm0, %v6620_v0  ;;  %vm392_vm8 = vcmask 1044484   ;;  %v394_v13 = vrot.slane %v6697_v5, 7  ;;  %vm6719_vm10 = vmor %vm1571_vm3, %vm1572_vm4  ;;  %v329_v21 = vld [vmem:[%s6689_s29 + $0x8] sm:$0xf] }
  0x10   : > { %286 = vst.msk [vmem:[#allocation2 + $0xcc] sm:$0xf] %vm280_vm0, %v6620_v0  ;;  %v396_v28 = vrot.slane %v328_v12, 7  ;;  %vm6742_vm11 = vmor %vm391_vm7, %vm392_vm8  ;;  %v399_v33 = vrot.slane %v329_v21, 7  ;;  %v330_v36 = vld [vmem:[%s6689_s29 + $0xc] sm:$0xf] }
  0x11   : > { %287 = vst.msk [vmem:[#allocation2 + $0xd0] sm:$0xf] %vm280_vm0, %v6620_v0  ;;  %v395_v27 = vrot.slane %v394_v13, 4  ;;  %v331_v39 = vld [vmem:[%s6689_s29 + $0x10] sm:$0xf]  ;;  %vm525_vm12 = vcmask 27648  }
  0x12   : > { %288 = vst.msk [vmem:[#allocation2 + $0xd4] sm:$0x3] %vm283_vm1, %v6620_v0  ;;  %v398_v41 = vrot.slane %v396_v28, 4  ;;  %v400_v42 = vrot.slane %v399_v33, 4  ;;  %v401_v43 = vrot.slane %v330_v36, 7  ;;  %vm527_vm13 = vcmask 24576  }
  0x13   : > { %v1518_v1 = vld [vmem:[#allocation2 + $0x4] sm:$0xf]  ;;  %310 = vst.msk [vmem:[#allocation2 + $0x14] sm:$0x2] %vm308_vm2, %v6620_v0  ;;  %v397_v40 = vsel %vm6742_vm11, %v395_v27, %v396_v28  ;;  %v404_v46 = vrot.slane %v331_v39, 7  ;;  %vm523_vm14 = vcmask 27649  }
  0x14   : > { %v1136_v2 = vld [vmem:[#allocation2 + $0x4] sm:$0xf]  ;;  %v1584_v3 = vshrl.u32 %v1518_v1, 16  ;;  %v1587_v4 = vshll.u32 %v1518_v1, 16  ;;  %311 = vst.msk [vmem:[#allocation2 + $0x20] sm:$0x2] %vm308_vm2, %v6620_v0  ;;  %v402_v48 = vsel %vm6742_vm11, %v400_v42, %v401_v43 }
  0x15   : > { %v1519_v6 = vld [vmem:[#allocation2 + $0x8] sm:$0x3]  ;;  %312 = vst.msk [vmem:[#allocation2 + $0x2c] sm:$0x2] %vm308_vm2, %v6620_v0  ;;  %v1248_v7 = vrot.slane %v1136_v2, 5  ;;  %v403_v50 = vrot.slane %v401_v43, 4 }
  0x16   : > { %v1586_v8 = vrot.slane %v1584_v3, 5  ;;  %v1589_v9 = vrot.slane %v1587_v4, 6  ;;  %v1594_v10 = vshrl.u32 %v1519_v6, 16  ;;  %v1597_v11 = vshll.u32 %v1519_v6, 16  ;;  %313 = vst.msk [vmem:[#allocation2 + $0x38] sm:$0x2] %vm308_vm2, %v6620_v0 }
  0x17   : > { %314 = vst.msk [vmem:[#allocation2 + $0x44] sm:$0x2] %vm308_vm2, %v6620_v0  ;;  %v1135_v15 = vld [vmem:[#allocation2] sm:$0xe]  ;;  %v1137_v22 = vld [vmem:[#allocation2 + $0x8] sm:$0x1] }
  0x18   : > { %v6713_v16 = vor.u32 %v1589_v9, %v1586_v8  ;;  %v1596_v17 = vrot.slane %v1594_v10, 5  ;;  %v1599_v18 = vrot.slane %v1597_v11, 6  ;;  %315 = vst.msk [vmem:[#allocation2 + $0x50] sm:$0x2] %vm308_vm2, %v6620_v0  ;;  %v5998_v19 = vrot.slane %v1135_v15, 9  ;;  %s6501_s9 = sshll.u32 %s8822_s25, 8 }
  0x19   : > { %316 = vst.msk [vmem:[#allocation2 + $0x5c] sm:$0x2] %vm308_vm2, %v6620_v0  ;;  %v1517_v26 = vld [vmem:[#allocation2] sm:$0xe]  ;;  %v1250_v34 = vrot.slane %v1248_v7, 4  ;;  %v1251_v35 = vrot.slane %v1137_v22, 5  ;;  %s8588_s10 = scalar_lea.vmem %s8812_s7, %s6501_s9 }
  0x1a   : > { %v1592_v23 = vrot.slane %v6713_v16, 4  ;;  %v1600_v24 = vor.u32 %v1599_v18, %v1596_v17  ;;  %317 = vst.msk [vmem:[#allocation2 + $0x68] sm:$0x2] %vm308_vm2, %v6620_v0  ;;  %v1249_v25 = vsel %vm6709_vm9, %v5998_v19, %v1248_v7  ;;  %v1575_v29 = vshrl.u32 %v1517_v26, 16  ;;  %v332_v47 = vld [vmem:[%s6689_s29 + $0x14] sm:$0xf] }
  0x1b   : > { %318 = vst.msk [vmem:[#allocation2 + $0x74] sm:$0x2] %vm308_vm2, %v6620_v0  ;;  %1372 = vrot.lane.b32.xlu2 %v1249_v25, %s6621_s30  ;;  %v1578_v30 = vshll.u32 %v1517_v26, 16  ;;  %v1252_v44 = vsel %vm6709_vm9, %v1250_v34, %v1251_v35  ;;  %v405_v51 = vrot.slane %v404_v46, 4  ;;  %v406_v52 = vrot.slane %v332_v47, 7 }
  0x1c   : > { %v1601_v31 = vsel %vm6719_vm10, %v1592_v23, %v1600_v24  ;;  %319 = vst.msk [vmem:[#allocation2 + $0x80] sm:$0x2] %vm308_vm2, %v6620_v0  ;;  %v1577_v37 = vrot.slane %v1575_v29, 5  ;;  %v333_v11 = vld [vmem:[%s6689_s29 + $0x18] sm:$0xf]  ;;  %vm289_vm15 = vcmask 57344  }
  0x1d   : > { %2080 = vrot.lane.b32.xlu0 %v1601_v31, %s6622_s8  ;;  %320 = vst.msk [vmem:[#allocation2 + $0x8c] sm:$0x2] %vm308_vm2, %v6620_v0  ;;  %v1580_v38 = vrot.slane %v1578_v30, 6  ;;  %v407_v54 = vsel %vm6742_vm11, %v405_v51, %v406_v52  ;;  %v408_v61 = vrot.slane %v406_v52, 4  ;;  %v409_v24 = vrot.slane %v333_v11, 7 }
  0x1e   : > { %321 = vst.msk [vmem:[#allocation2 + $0x98] sm:$0x2] %vm308_vm2, %v6620_v0  ;;  %v351_v29 = vld [vmem:[%s6689_s29 + $0x60] sm:$0xf]  ;;  %v334_v36 = vld [vmem:[%s6689_s29 + $0x1c] sm:$0xf] }
  0x1f   : > { %322 = vst.msk [vmem:[#allocation2 + $0xa4] sm:$0x2] %vm308_vm2, %v6620_v0  ;;  %v1581_v45 = vor.u32 %v1580_v38, %v1577_v37  ;;  %vm628_vm1 = vsmask.f32 3328  ;;  %vm1480_vm3 = vcmask 60448   ;;  %vm2186_vm5 = vcmask 93248  }
  0x20   : > { %323 = vst.msk [vmem:[#allocation2 + $0xb0] sm:$0x2] %vm308_vm2, %v6620_v0  ;;  %vm2396_vm6 = vcmask 1045504   ;;  %vm2347_vm7 = vcmask 97280   ;;  %vm5744_vm8 = vcmask 1041408  }
  0x21   : > { %324 = vst.msk [vmem:[#allocation2 + $0xbc] sm:$0x2] %vm308_vm2, %v6620_v0  ;;  %v1582_v49 = vrot.slane %v1581_v45, 4 }
  0x22   : > { %325 = vst.msk [vmem:[#allocation2 + $0xc8] sm:$0x2] %vm308_vm2, %v6620_v0 }
  0x23   : > { %526 = vst.msk [vmem:[#allocation2 + $0x10] sm:$0xf] %vm525_vm12, %v397_v40  ;;  %1374 = vrot.lane.b32.xlu2 %v1252_v44, %s6621_s30  ;;  %v1591_v53 = vsel %vm6719_vm10, %v1582_v49, %v6713_v16  ;;  %v410_v44 = vrot.slane %v409_v24, 4 }
  0x24   : > { %528 = vst.msk [vmem:[#allocation2 + $0x14] sm:$0x1] %vm527_vm13, %v398_v41  ;;  %v454_v41 = vrot.slane %v351_v29, 7 }
  0x25   : > { %326 = vst.msk [vmem:[#allocation2 + $0xd4] sm:$0x2] %vm308_vm2, %v6620_v0  ;;  %vm629_vm2 = vsmask.f32 7440 }
  0x26   : > { %529 = vst.msk [vmem:[#allocation2 + $0x18] sm:$0xe] %vm523_vm14, %v399_v33  ;;  %vm7006_vm4 = vmor %vm628_vm1, %vm629_vm2  ;;  %vm4797_vm1 = vcmask 191616   ;;  %vm5695_vm2 = vcmask 31744  }
  0x27   : > { %530 = vst.msk [vmem:[#allocation2 + $0x1c] sm:$0xf] %vm525_vm12, %v402_v48 }
  0x28   : > { %524 = vst.msk [vmem:[#allocation2 + $0xc] sm:$0xe] %vm523_vm14, %v394_v13 }
  0x29   : > { %531 = vst.msk [vmem:[#allocation2 + $0x20] sm:$0x1] %vm527_vm13, %v403_v50 }
  0x2a   : > { %v1139_v55 = vld [vmem:[#allocation2 + $0x10] sm:$0xf]  ;;  %532 = vst.msk [vmem:[#allocation2 + $0x24] sm:$0xe] %vm523_vm14, %v404_v46 }
  0x2b   : > { %v1521_v56 = vld [vmem:[#allocation2 + $0x10] sm:$0xf]  ;;  %v1140_v57 = vld [vmem:[#allocation2 + $0x14] sm:$0x1]  ;;  %v1255_v58 = vrot.slane %v1139_v55, 5  ;;  %2078 = vrot.lane.b32.xlu2 %v1591_v53, %s6622_s8  ;;  %v411_v53 = vrot.slane %v334_v36, 7 }
  0x2c   : > { %v1258_v59 = vrot.slane %v1140_v57, 5  ;;  %v1612_v60 = vshrl.u32 %v1521_v56, 16  ;;  %533 = vst.msk [vmem:[#allocation2 + $0x28] sm:$0xf] %vm525_vm12, %v407_v54  ;;  %v1615_v2 = vshll.u32 %v1521_v56, 16 }
  0x2d   : > { %v1257_v62 = vrot.slane %v1255_v58, 4  ;;  %v1141_v63 = vld [vmem:[#allocation2 + $0x18] sm:$0xe]  ;;  %534 = vst.msk [vmem:[#allocation2 + $0x2c] sm:$0x1] %vm527_vm13, %v408_v61  ;;  %v455_v61 = vrot.slane %v454_v41, 4 }
  0x2e   : > { %v1523_v1 = vld [vmem:[#allocation2 + $0x18] sm:$0xe]  ;;  %v1142_v3 = vld [vmem:[#allocation2 + $0x1c] sm:$0xf]  ;;  %v6000_v4 = vrot.slane %v1141_v63, 9  ;;  %v1614_v33 = vrot.slane %v1612_v60, 5  ;;  %v412_v60 = vsel %vm6742_vm11, %v410_v44, %v411_v53 }
  0x2f   : > { %v1524_v5 = vld [vmem:[#allocation2 + $0x1c] sm:$0xf]  ;;  %v1631_v6 = vshrl.u32 %v1523_v1, 16  ;;  %v1259_v7 = vsel %vm6709_vm9, %v1257_v62, %v1258_v59  ;;  %v1262_v8 = vrot.slane %v1142_v3, 5  ;;  %v1634_v9 = vshll.u32 %v1523_v1, 16 }
  0x30   : > { %v1640_v10 = vshrl.u32 %v1524_v5, 16  ;;  %1378 = vrot.lane.b32.xlu1 %v1259_v7, %s6621_s30  ;;  %v1643_v13 = vshll.u32 %v1524_v5, 16  ;;  %v1138_v15 = vld [vmem:[#allocation2 + $0xc] sm:$0xe]  ;;  %v1525_v28 = vld [vmem:[#allocation2 + $0x20] sm:$0x3] }
  0x31   : > { %v1633_v12 = vrot.slane %v1631_v6, 5  ;;  %v1520_v16 = vld [vmem:[#allocation2 + $0xc] sm:$0xe]  ;;  %v1263_v17 = vsel %vm6709_vm9, %v6000_v4, %v1262_v8  ;;  %v1636_v18 = vrot.slane %v1634_v9, 6  ;;  %v5999_v26 = vrot.slane %v1138_v15, 9 }
  0x32   : > { %v1642_v19 = vrot.slane %v1640_v10, 5  ;;  %v1603_v21 = vshrl.u32 %v1520_v16, 16  ;;  %1380 = vrot.lane.b32.xlu0 %v1263_v17, %s6621_s30  ;;  %v1645_v22 = vrot.slane %v1643_v13, 6  ;;  %v1606_v23 = vshll.u32 %v1520_v16, 16  ;;  %v1143_v38 = vld [vmem:[#allocation2 + $0x20] sm:$0x1] }
  0x33   : > { %v1637_v25 = vor.u32 %v1636_v18, %v1633_v12  ;;  %v1617_v34 = vrot.slane %v1615_v2, 6  ;;  %v1650_v39 = vshrl.u32 %v1525_v28, 16  ;;  %v1522_v40 = vld [vmem:[#allocation2 + $0x14] sm:$0x3]  ;;  %v1256_v43 = vsel %vm6709_vm9, %v5999_v26, %v1255_v58  ;;  %535 = vst.msk [vmem:[#allocation2 + $0x30] sm:$0xe] %vm523_vm14, %v409_v24 }
  0x34   : > { %v1605_v27 = vrot.slane %v1603_v21, 5  ;;  %v6795_v30 = vor.u32 %v1645_v22, %v1642_v19  ;;  %v1608_v31 = vrot.slane %v1606_v23, 6  ;;  %v1264_v47 = vrot.slane %v1262_v8, 4  ;;  %562 = vst.msk [vmem:[#allocation2 + $0x9c] sm:$0xe] %vm523_vm14, %v454_v41 }
  0x35   : > { %v1638_v35 = vrot.slane %v1637_v25, 4  ;;  %v1618_v46 = vor.u32 %v1617_v34, %v1614_v33  ;;  %v1653_v48 = vshll.u32 %v1525_v28, 16  ;;  %v1265_v49 = vrot.slane %v1143_v38, 5  ;;  %v1527_v50 = vld [vmem:[#allocation2 + $0x28] sm:$0xf] }
  0x36   : > { %v1609_v37 = vor.u32 %v1608_v31, %v1605_v27  ;;  %v1622_v51 = vshrl.u32 %v1522_v40, 16  ;;  %v1625_v52 = vshll.u32 %v1522_v40, 16  ;;  %v1652_v54 = vrot.slane %v1650_v39, 5  ;;  %v352_v56 = vld [vmem:[%s6689_s29 + $0x64] sm:$0xf] }
  0x37   : > { %v1647_v42 = vsel %vm6719_vm10, %v1638_v35, %v6795_v30  ;;  %v1620_v55 = vrot.slane %v1618_v46, 4  ;;  %v335_v57 = vld [vmem:[%s6689_s29 + $0x20] sm:$0xf]  ;;  %v1655_v63 = vrot.slane %v1653_v48, 6  ;;  %v1668_v1 = vshrl.u32 %v1527_v50, 16 }
  0x38   : > { %2086 = vrot.lane.b32.xlu1 %v1647_v42, %s6622_s8  ;;  %v1610_v45 = vrot.slane %v1609_v37, 4  ;;  %v1624_v58 = vrot.slane %v1622_v51, 5  ;;  %v1627_v59 = vrot.slane %v1625_v52, 6  ;;  %v1671_v2 = vshll.u32 %v1527_v50, 16  ;;  %536 = vst.msk [vmem:[#allocation2 + $0x34] sm:$0xf] %vm525_vm12, %v412_v60 }
  0x39   : > { %v456_v4 = vrot.slane %v352_v56, 7  ;;  %v413_v5 = vrot.slane %v411_v53, 4  ;;  %v414_v6 = vrot.slane %v335_v57, 7  ;;  %v1144_v7 = vld [vmem:[#allocation2 + $0x24] sm:$0xe]  ;;  %v1266_v10 = vsel %vm6709_vm9, %v1264_v47, %v1265_v49 }
  0x3a   : > { %1376 = vrot.lane.b32.xlu0 %v1256_v43, %s6621_s30  ;;  %v1619_v62 = vsel %vm6719_vm10, %v1610_v45, %v1618_v46  ;;  %v1628_v3 = vor.u32 %v1627_v59, %v1624_v58  ;;  %v1145_v8 = vld [vmem:[#allocation2 + $0x28] sm:$0xf]  ;;  %v1528_v9 = vld [vmem:[#allocation2 + $0x2c] sm:$0x3]  ;;  %v336_v15 = vld [vmem:[%s6689_s29 + $0x24] sm:$0xf]  ;;  %v1656_v17 = vor.u32 %v1655_v63, %v1652_v54 }
  0x3b   : > { %v457_v12 = vsel %vm6742_vm11, %v455_v61, %v456_v4  ;;  %v458_v13 = vrot.slane %v456_v4, 4  ;;  %537 = vst.msk [vmem:[#allocation2 + $0x38] sm:$0x1] %vm527_vm13, %v413_v5  ;;  %v1648_v16 = vrot.slane %v6795_v30, 4  ;;  %v1670_v18 = vrot.slane %v1668_v1, 5 }
  0x3c   : > { %v1629_v11 = vsel %vm6719_vm10, %v1620_v55, %v1628_v3  ;;  %563 = vst.msk [vmem:[#allocation2 + $0xa0] sm:$0xf] %vm525_vm12, %v457_v12  ;;  %v1526_v19 = vld [vmem:[#allocation2 + $0x24] sm:$0xe]  ;;  %v1673_v21 = vrot.slane %v1671_v2, 6  ;;  %v415_v24 = vrot.slane %v414_v6, 4 }
  0x3d   : > { %2084 = vrot.lane.b32.xlu2 %v1629_v11, %s6622_s8  ;;  %564 = vst.msk [vmem:[#allocation2 + $0xa4] sm:$0x1] %vm527_vm13, %v458_v13  ;;  %v1659_v22 = vshrl.u32 %v1526_v19, 16  ;;  %v1662_v23 = vshll.u32 %v1526_v19, 16  ;;  %v1678_v25 = vshrl.u32 %v1528_v9, 16  ;;  %v1681_v26 = vshll.u32 %v1528_v9, 16 }
  0x3e   : > { %v416_v27 = vrot.slane %v336_v15, 7  ;;  %538 = vst.msk [vmem:[#allocation2 + $0x3c] sm:$0xe] %vm523_vm14, %v414_v6  ;;  %v6001_v28 = vrot.slane %v1144_v7, 9  ;;  %v1269_v29 = vrot.slane %v1145_v8, 5  ;;  %v1657_v33 = vsel %vm6719_vm10, %v1648_v16, %v1656_v17 }
  0x3f   : > { %v1661_v30 = vrot.slane %v1659_v22, 5  ;;  %v1664_v31 = vrot.slane %v1662_v23, 6  ;;  %v1146_v34 = vld [vmem:[#allocation2 + $0x2c] sm:$0x1]  ;;  %v1674_v35 = vor.u32 %v1673_v21, %v1670_v18  ;;  %v353_v38 = vld [vmem:[%s6689_s29 + $0x68] sm:$0xf] }
  0x40   : > { %2082 = vrot.lane.b32.xlu1 %v1619_v62, %s6622_s8  ;;  %v417_v37 = vsel %vm6742_vm11, %v415_v24, %v416_v27  ;;  %v1680_v39 = vrot.slane %v1678_v25, 5  ;;  %v1683_v40 = vrot.slane %v1681_v26, 6  ;;  %v1556_v41 = vld [vmem:[#allocation2 + $0x9c] sm:$0xe]  ;;  %v1270_v42 = vsel %vm6709_vm9, %v6001_v28, %v1269_v29  ;;  %v6838_v43 = vld [vmem:[#allocation2 + $0x34] sm:$0xf] }
  0x41   : > { %v1665_v36 = vor.u32 %v1664_v31, %v1661_v30  ;;  %539 = vst.msk [vmem:[#allocation2 + $0x40] sm:$0xf] %vm525_vm12, %v417_v37  ;;  %v1530_v44 = vld [vmem:[#allocation2 + $0x34] sm:$0xf]  ;;  %v418_v46 = vrot.slane %v416_v27, 4  ;;  %v1271_v47 = vrot.slane %v1269_v29, 4 }
  0x42   : > { %1382 = vrot.lane.b32.xlu0 %v1266_v10, %s6621_s30  ;;  %v1272_v48 = vrot.slane %v1146_v34, 5  ;;  %v459_v49 = vrot.slane %v353_v38, 7  ;;  %v1676_v50 = vrot.slane %v1674_v35, 4  ;;  %v1939_v52 = vshrl.u32 %v1556_v41, 16  ;;  %v1149_v57 = vld [vmem:[#allocation2 + $0x38] sm:$0x1] }
  0x43   : > { %v1666_v45 = vrot.slane %v1665_v36, 4  ;;  %v1942_v53 = vshll.u32 %v1556_v41, 16  ;;  %v1684_v54 = vor.u32 %v1683_v40, %v1680_v39  ;;  %v1276_v55 = vrot.slane %v6838_v43, 5  ;;  %v354_v58 = vld [vmem:[%s6689_s29 + $0x6c] sm:$0xf] }
  0x44   : > { %v1696_v56 = vshrl.u32 %v1530_v44, 16  ;;  %v1699_v59 = vshll.u32 %v1530_v44, 16  ;;  %540 = vst.msk [vmem:[#allocation2 + $0x44] sm:$0x1] %vm527_vm13, %v418_v46  ;;  %v1279_v61 = vrot.slane %v1149_v57, 5  ;;  %v460_v62 = vrot.slane %v459_v49, 4 }
  0x45   : > { %v1675_v51 = vsel %vm6719_vm10, %v1666_v45, %v1674_v35  ;;  %v1278_v60 = vrot.slane %v1276_v55, 4  ;;  %565 = vst.msk [vmem:[#allocation2 + $0xa8] sm:$0xe] %vm523_vm14, %v459_v49  ;;  %v1273_v63 = vsel %vm6709_vm9, %v1271_v47, %v1272_v48  ;;  %v1147_v1 = vld [vmem:[#allocation2 + $0x30] sm:$0xe]  ;;  %v461_v2 = vrot.slane %v354_v58, 7 }
  0x46   : > { %2090 = vrot.lane.b32.xlu2 %v1675_v51, %s6622_s8  ;;  %v1685_v3 = vsel %vm6719_vm10, %v1676_v50, %v1684_v54  ;;  %v1174_v4 = vld [vmem:[#allocation2 + $0x9c] sm:$0xe]  ;;  %v1531_v5 = vld [vmem:[#allocation2 + $0x38] sm:$0x3]  ;;  %v1698_v6 = vrot.slane %v1696_v56, 5  ;;  %v1941_v7 = vrot.slane %v1939_v52, 5 }
  0x47   : > { %v1944_v8 = vrot.slane %v1942_v53, 6  ;;  %v1701_v9 = vrot.slane %v1699_v59, 6  ;;  %v1557_v10 = vld [vmem:[#allocation2 + $0xa0] sm:$0xf]  ;;  %v1280_v11 = vsel %vm6709_vm9, %v1278_v60, %v1279_v61  ;;  %v462_v12 = vsel %vm6742_vm11, %v460_v62, %v461_v2  ;;  %v1529_v15 = vld [vmem:[#allocation2 + $0x30] sm:$0xe] }
  0x48   : > { %2088 = vrot.lane.b32.xlu1 %v1657_v33, %s6622_s8  ;;  %v463_v13 = vrot.slane %v461_v2, 4  ;;  %v1175_v16 = vld [vmem:[#allocation2 + $0xa0] sm:$0xf]  ;;  %566 = vst.msk [vmem:[#allocation2 + $0xac] sm:$0xf] %vm525_vm12, %v462_v12  ;;  %v1687_v17 = vshrl.u32 %v1529_v15, 16 }
  0x49   : > { %v1690_v18 = vshll.u32 %v1529_v15, 16  ;;  %v6002_v19 = vrot.slane %v1147_v1, 9  ;;  %v1706_v21 = vshrl.u32 %v1531_v5, 16  ;;  %v1709_v22 = vshll.u32 %v1531_v5, 16  ;;  %v1176_v29 = vld [vmem:[#allocation2 + $0xa4] sm:$0x1] }
  0x4a   : > { %1384 = vrot.lane.b32.xlu0 %v1270_v42, %s6621_s30  ;;  %567 = vst.msk [vmem:[#allocation2 + $0xb0] sm:$0x1] %vm527_vm13, %v463_v13  ;;  %v1948_v23 = vshrl.u32 %v1557_v10, 16  ;;  %v1951_v24 = vshll.u32 %v1557_v10, 16  ;;  %v1689_v25 = vrot.slane %v1687_v17, 5  ;;  %v6011_v27 = vrot.slane %v1174_v4, 9 }
  0x4b   : > { %v1692_v26 = vrot.slane %v1690_v18, 6  ;;  %v1339_v28 = vrot.slane %v1175_v16, 5  ;;  %v1702_v30 = vor.u32 %v1701_v9, %v1698_v6  ;;  %v1945_v31 = vor.u32 %v1944_v8, %v1941_v7  ;;  %v337_v34 = vld [vmem:[%s6689_s29 + $0x28] sm:$0xf]  ;;  %v338_v37 = vld [vmem:[%s6689_s29 + $0x2c] sm:$0xf] }
  0x4c   : > { %v1277_v35 = vsel %vm6709_vm9, %v6002_v19, %v1276_v55  ;;  %v1708_v36 = vrot.slane %v1706_v21, 5  ;;  %v419_v38 = vrot.slane %v337_v34, 7  ;;  %v1711_v39 = vrot.slane %v1709_v22, 6  ;;  %v6866_v42 = vld [vmem:[#allocation2 + $0x3c] sm:$0xe] }
  0x4d   : > { %v1693_v33 = vor.u32 %v1692_v26, %v1689_v25  ;;  %v1950_v40 = vrot.slane %v1948_v23, 5  ;;  %v1953_v41 = vrot.slane %v1951_v24, 6  ;;  %v1340_v44 = vsel %vm6709_vm9, %v6011_v27, %v1339_v28  ;;  %v1532_v50 = vld [vmem:[#allocation2 + $0x3c] sm:$0xe]  ;;  %v1559_v53 = vld [vmem:[#allocation2 + $0xa8] sm:$0xe] }
  0x4e   : > { %1390 = vrot.lane.b32.xlu2 %v1280_v11, %s6621_s30  ;;  %v1341_v45 = vrot.slane %v1339_v28, 4  ;;  %v1342_v46 = vrot.slane %v1176_v29, 5  ;;  %v1704_v47 = vrot.slane %v1702_v30, 4  ;;  %v6871_v48 = vrot.slane %v1945_v31, 4  ;;  %v1558_v54 = vld [vmem:[#allocation2 + $0xa4] sm:$0x3] }
  0x4f   : > { %v1694_v43 = vrot.slane %v1693_v33, 4  ;;  %v421_v51 = vrot.slane %v338_v37, 7  ;;  %v6003_v52 = vrot.slane %v6866_v42, 9  ;;  %v420_v55 = vrot.slane %v419_v38, 4  ;;  %v1151_v58 = vld [vmem:[#allocation2 + $0x40] sm:$0xf] }
  0x50   : > { %1386 = vrot.lane.b32.xlu1 %v1273_v63, %s6621_s30  ;;  %v1712_v56 = vor.u32 %v1711_v39, %v1708_v36  ;;  %v6877_v57 = vor.u32 %v1953_v41, %v1950_v40  ;;  %v6880_v59 = vld [vmem:[#allocation2 + $0x40] sm:$0xf]  ;;  %541 = vst.msk [vmem:[#allocation2 + $0x48] sm:$0xe] %vm523_vm14, %v419_v38  ;;  %v1715_v60 = vshrl.u32 %v1532_v50, 16  ;;  %v1718_v61 = vshll.u32 %v1532_v50, 16 }
  0x51   : > { %v1703_v49 = vsel %vm6719_vm10, %v1694_v43, %v1702_v30  ;;  %v1958_v62 = vshrl.u32 %v1558_v54, 16  ;;  %v1961_v63 = vshll.u32 %v1558_v54, 16  ;;  %v355_v1 = vld [vmem:[%s6689_s29 + $0x70] sm:$0xf]  ;;  %v1343_v2 = vsel %vm6709_vm9, %v1341_v45, %v1342_v46  ;;  %v356_v7 = vld [vmem:[%s6689_s29 + $0x74] sm:$0xf] }
  0x52   : > { %2092 = vrot.lane.b32.xlu0 %v1685_v3, %s6622_s8  ;;  %v1560_v3 = vld [vmem:[#allocation2 + $0xac] sm:$0xf]  ;;  %v1967_v4 = vshrl.u32 %v1559_v53, 16  ;;  %v1970_v5 = vshll.u32 %v1559_v53, 16  ;;  %v422_v6 = vsel %vm6742_vm11, %v420_v55, %v421_v51  ;;  %v1956_v8 = vrot.slane %v6877_v57, 4 }
  0x53   : > { %v1960_v9 = vrot.slane %v1958_v62, 5  ;;  %v1963_v10 = vrot.slane %v1961_v63, 6  ;;  %v423_v11 = vrot.slane %v421_v51, 4  ;;  %542 = vst.msk [vmem:[#allocation2 + $0x4c] sm:$0xf] %vm525_vm12, %v422_v6  ;;  %v1713_v12 = vsel %vm6719_vm10, %v1704_v47, %v1712_v56 }
  0x54   : > { %v1283_v13 = vrot.slane %v1151_v58, 5  ;;  %v1724_v15 = vshrl.u32 %v6880_v59, 16  ;;  %v464_v16 = vrot.slane %v355_v1, 7  ;;  %v1976_v17 = vshrl.u32 %v1560_v3, 16  ;;  %v6897_v26 = vld [vmem:[#allocation2 + $0x44] sm:$0x1] }
  0x55   : > { %v1979_v18 = vshll.u32 %v1560_v3, 16  ;;  %v1964_v19 = vor.u32 %v1963_v10, %v1960_v9  ;;  %543 = vst.msk [vmem:[#allocation2 + $0x50] sm:$0x1] %vm527_vm13, %v423_v11  ;;  %v466_v21 = vrot.slane %v356_v7, 7  ;;  %v1717_v22 = vrot.slane %v1715_v60, 5 }
  0x56   : > { %2094 = vrot.lane.b32.xlu2 %v1703_v49, %s6622_s8  ;;  %v1720_v23 = vrot.slane %v1718_v61, 6  ;;  %v1969_v24 = vrot.slane %v1967_v4, 5  ;;  %v465_v25 = vrot.slane %v464_v16, 4  ;;  %568 = vst.msk [vmem:[#allocation2 + $0xb4] sm:$0xe] %vm523_vm14, %v464_v16  ;;  %v1972_v28 = vrot.slane %v1970_v5, 6 }
  0x57   : > { %v1178_v27 = vld [vmem:[#allocation2 + $0xac] sm:$0xf]  ;;  %v1965_v29 = vsel %vm6719_vm10, %v1956_v8, %v1964_v19  ;;  %v1535_v30 = vld [vmem:[#allocation2 + $0x48] sm:$0xe]  ;;  %v468_v31 = vrot.slane %v466_v21, 4  ;;  %v1727_v38 = vshll.u32 %v6880_v59, 16  ;;  %v1284_v42 = vsel %vm6709_vm9, %v6003_v52, %v1283_v13 }
  0x58   : > { %1388 = vrot.lane.b32.xlu1 %v1277_v35, %s6621_s30  ;;  %v1561_v33 = vld [vmem:[#allocation2 + $0xb0] sm:$0x3]  ;;  %v1177_v34 = vld [vmem:[#allocation2 + $0xa8] sm:$0xe]  ;;  %v467_v35 = vsel %vm6742_vm11, %v465_v25, %v466_v21  ;;  %v1743_v36 = vshrl.u32 %v1535_v30, 16  ;;  %v1746_v37 = vshll.u32 %v1535_v30, 16  ;;  %v1721_v43 = vor.u32 %v1720_v23, %v1717_v22 }
  0x59   : > { %v1978_v39 = vrot.slane %v1976_v17, 5  ;;  %v1981_v40 = vrot.slane %v1979_v18, 6  ;;  %v6012_v41 = vrot.slane %v1177_v34, 9  ;;  %569 = vst.msk [vmem:[#allocation2 + $0xb8] sm:$0xf] %vm525_vm12, %v467_v35  ;;  %v1955_v49 = vsel %vm6719_vm10, %v6871_v48, %v6877_v57 }
  0x5a   : > { %1424 = vrot.lane.b32.xlu0 %v1340_v44, %s6621_s30  ;;  %v6909_v44 = vld [vmem:[#allocation2 + $0x4c] sm:$0xf]  ;;  %v1745_v46 = vrot.slane %v1743_v36, 5  ;;  %v1748_v47 = vrot.slane %v1746_v37, 6  ;;  %v1285_v50 = vrot.slane %v1283_v13, 4  ;;  %v1346_v51 = vrot.slane %v1178_v27, 5 }
  0x5b   : > { %v1536_v45 = vld [vmem:[#allocation2 + $0x4c] sm:$0xf]  ;;  %v1973_v53 = vor.u32 %v1972_v28, %v1969_v24  ;;  %570 = vst.msk [vmem:[#allocation2 + $0xbc] sm:$0x1] %vm527_vm13, %v468_v31  ;;  %v1286_v54 = vrot.slane %v6897_v26, 5  ;;  %v1986_v52 = vshrl.u32 %v1561_v33, 16  ;;  %v6923_v63 = vor.u32 %v1981_v40, %v1978_v39 }
  0x5c   : > { %v1179_v55 = vld [vmem:[#allocation2 + $0xb0] sm:$0x1]  ;;  %v1989_v56 = vshll.u32 %v1561_v33, 16  ;;  %v1290_v58 = vrot.slane %v6909_v44, 5  ;;  %v1726_v59 = vrot.slane %v1724_v15, 5  ;;  %v1347_v60 = vsel %vm6709_vm9, %v6012_v41, %v1346_v51 }
  0x5d   : > { %v1752_v61 = vshrl.u32 %v1536_v45, 16  ;;  %v1755_v62 = vshll.u32 %v1536_v45, 16  ;;  %v6921_v48 = vrot.slane %v1721_v43, 4  ;;  %v1729_v57 = vrot.slane %v1727_v38, 6  ;;  %v6925_v1 = vld [vmem:[#allocation2 + $0x50] sm:$0x1] }
  0x5e   : > { %2132 = vrot.lane.b32.xlu2 %v1965_v29, %s6622_s8  ;;  %v1749_v3 = vor.u32 %v1748_v47, %v1745_v46  ;;  %v1348_v4 = vrot.slane %v1346_v51, 4  ;;  %v1349_v5 = vrot.slane %v1179_v55, 5  ;;  %v6929_v6 = vrot.slane %v1973_v53, 4  ;;  %v1534_v7 = vld [vmem:[#allocation2 + $0x44] sm:$0x3] }
  0x5f   : > { %v1984_v8 = vrot.slane %v6923_v63, 4  ;;  %v6933_v9 = vrot.slane %v1986_v52, 5  ;;  %v6935_v10 = vrot.slane %v1989_v56, 6  ;;  %v6939_v11 = vrot.slane %v1290_v58, 4  ;;  %290 = vst.msk [vmem:[#allocation2] sm:$0x1] %vm289_vm15, %v6620_v0 }
  0x60   : > { %1426 = vrot.lane.b32.xlu1 %v1343_v2, %s6621_s30  ;;  %v6927_v2 = vld [vmem:[#allocation2 + $0xb4] sm:$0xe]  ;;  %v1293_v13 = vrot.slane %v6925_v1, 5  ;;  %v1754_v16 = vrot.slane %v1752_v61, 5  ;;  %v1757_v17 = vrot.slane %v1755_v62, 6  ;;  %v6946_v18 = vrot.slane %v1749_v3, 4 }
  0x61   : > { %v6013_v15 = vrot.slane %v6927_v2, 9  ;;  %291 = vst.msk [vmem:[#allocation2 + $0xc] sm:$0x1] %vm289_vm15, %v6620_v0  ;;  %v1734_v19 = vshrl.u32 %v1534_v7, 16  ;;  %v6951_v21 = vld [vmem:[%s6689_s29 + $0x30] sm:$0xf]  ;;  %v1287_v22 = vsel %vm6709_vm9, %v1285_v50, %v1286_v54  ;;  %v1730_v23 = vor.u32 %v1729_v57, %v1726_v59 }
  0x62   : > { %2096 = vrot.lane.b32.xlu0 %v1713_v12, %s6622_s8  ;;  %v575_v12 = vld [vmem:[#allocation2 + $0x4] sm:$0xf]  ;;  %v6955_v24 = vld [vmem:[#allocation2 + $0xb8] sm:$0xf]  ;;  %292 = vst.msk [vmem:[#allocation2 + $0x18] sm:$0x1] %vm289_vm15, %v6620_v0  ;;  %v1350_v29 = vsel %vm6709_vm9, %v1348_v4, %v1349_v5  ;;  %v6963_v30 = vor.u32 %v1757_v17, %v1754_v16  ;;  %v1983_v57 = vsel %vm6719_vm10, %v6929_v6, %v6923_v63 }
  0x63   : > { %v641_v25 = vshll.u32 %v575_v12, 16  ;;  %v1737_v26 = vshll.u32 %v1534_v7, 16  ;;  %v645_v27 = vshrl.u32 %v575_v12, 16  ;;  %293 = vst.msk [vmem:[#allocation2 + $0x24] sm:$0x1] %vm289_vm15, %v6620_v0  ;;  %v1736_v28 = vrot.slane %v1734_v19, 5 }
  0x64   : > { %294 = vst.msk [vmem:[#allocation2 + $0x30] sm:$0x1] %vm289_vm15, %v6620_v0  ;;  %v1732_v31 = vrot.slane %v1730_v23, 4  ;;  %v1537_v34 = vld [vmem:[#allocation2 + $0x50] sm:$0x3]  ;;  %v1353_v36 = vrot.slane %v6955_v24, 5  ;;  %v1731_v52 = vsel %vm6719_vm10, %v6921_v48, %v1730_v23  ;;  %v1992_v23 = vor.u32 %v6935_v10, %v6933_v9 }
  0x65   : > { %v1739_v33 = vrot.slane %v1737_v26, 6  ;;  %v1563_v35 = vld [vmem:[#allocation2 + $0xb8] sm:$0xf]  ;;  %295 = vst.msk [vmem:[#allocation2 + $0x3c] sm:$0x1] %vm289_vm15, %v6620_v0  ;;  %v424_v37 = vrot.slane %v6951_v21, 7  ;;  %v1294_v63 = vsel %vm6709_vm9, %v6939_v11, %v1293_v13  ;;  %v1759_v24 = vsel %vm6719_vm10, %v6946_v18, %v6963_v30 }
  0x66   : > { %1428 = vrot.lane.b32.xlu2 %v1347_v60, %s6621_s30  ;;  %v6972_v38 = vrot.slane %v641_v25, 5  ;;  %296 = vst.msk [vmem:[#allocation2 + $0x48] sm:$0x1] %vm289_vm15, %v6620_v0  ;;  %v1760_v40 = vrot.slane %v6963_v30, 4  ;;  %v1564_v41 = vld [vmem:[#allocation2 + $0xbc] sm:$0x3] }
  0x67   : > { %v1740_v39 = vor.u32 %v1739_v33, %v1736_v28  ;;  %297 = vst.msk [vmem:[#allocation2 + $0x54] sm:$0x1] %vm289_vm15, %v6620_v0  ;;  %v2004_v43 = vshrl.u32 %v1563_v35, 16  ;;  %v647_v45 = vrot.slane %v645_v27, 4  ;;  %v2007_v50 = vshll.u32 %v1563_v35, 16 }
  0x68   : > { %2130 = vrot.lane.b32.xlu1 %v1955_v49, %s6622_s8  ;;  %298 = vst.msk [vmem:[#allocation2 + $0x60] sm:$0x1] %vm289_vm15, %v6620_v0  ;;  %v1762_v51 = vshrl.u32 %v1537_v34, 16  ;;  %v1765_v53 = vshll.u32 %v1537_v34, 16  ;;  %v2014_v54 = vshrl.u32 %v1564_v41, 16  ;;  %v425_v55 = vrot.slane %v424_v37, 4 }
  0x69   : > { %v1741_v49 = vsel %vm6719_vm10, %v1732_v31, %v1740_v39  ;;  %299 = vst.msk [vmem:[#allocation2 + $0x6c] sm:$0x1] %vm289_vm15, %v6620_v0  ;;  %v576_v61 = vld [vmem:[#allocation2 + $0x8] sm:$0x1]  ;;  %v648_v62 = vor.u32 %v647_v45, %v6972_v38  ;;  %v2017_v3 = vshll.u32 %v1564_v41, 16  ;;  %v2006_v7 = vrot.slane %v2004_v43, 5 }
  0x6a   : > { %1392 = vrot.lane.b32.xlu0 %v1284_v42, %s6621_s30  ;;  %v574_v42 = vld [vmem:[#allocation2] sm:$0xf]  ;;  %300 = vst.msk [vmem:[#allocation2 + $0x78] sm:$0x1] %vm289_vm15, %v6620_v0  ;;  %v651_v48 = vshll.u32 %v576_v61, 16  ;;  %v2009_v12 = vrot.slane %v2007_v50, 6 }
  0x6b   : > { %v632_v46 = vshrl.u32 %v574_v42, 16  ;;  %v635_v47 = vshll.u32 %v574_v42, 16  ;;  %301 = vst.msk [vmem:[#allocation2 + $0x84] sm:$0x1] %vm289_vm15, %v6620_v0  ;;  %v1153_v4 = vld [vmem:[#allocation2 + $0x48] sm:$0xe]  ;;  %v1993_v42 = vsel %vm6719_vm10, %v1984_v8, %v1992_v23 }
  0x6c   : > { %302 = vst.msk [vmem:[#allocation2 + $0x90] sm:$0x1] %vm289_vm15, %v6620_v0  ;;  %v6004_v16 = vrot.slane %v1153_v4, 9  ;;  %v649_v17 = vrot.slane %v648_v62, 4  ;;  %v653_v19 = vrot.slane %v651_v48, 5  ;;  %v7017_v26 = vrot.slane %v1762_v51, 5 }
  0x6d   : > { %v634_v59 = vrot.slane %v632_v46, 4  ;;  %v637_v60 = vrot.slane %v635_v47, 5  ;;  %303 = vst.msk [vmem:[#allocation2 + $0x9c] sm:$0x1] %vm289_vm15, %v6620_v0  ;;  %v357_v28 = vld [vmem:[%s6689_s29 + $0x78] sm:$0xf]  ;;  %v7035_v44 = vor.u32 %v2009_v12, %v2006_v7  ;;  %v1354_v12 = vsel %vm6709_vm9, %v6013_v15, %v1353_v36 }
  0x6e   : > { %2100 = vrot.lane.b32.xlu2 %v1741_v49, %s6622_s8  ;;  %304 = vst.msk [vmem:[#allocation2 + $0xa8] sm:$0x1] %vm289_vm15, %v6620_v0  ;;  %v1291_v27 = vsel %vm6709_vm9, %v6004_v16, %v1290_v58  ;;  %v358_v9 = vld [vmem:[%s6689_s29 + $0x7c] sm:$0xf]  ;;  %v469_v10 = vrot.slane %v357_v28, 7  ;;  %v7037_v58 = vrot.slane %v2014_v54, 5  ;;  %v654_v39 = vsel %vm7006_vm4, %v649_v17, %v653_v19 }
  0x6f   : > { %v638_v5 = vor.u32 %v637_v60, %v634_v59  ;;  %305 = vst.msk [vmem:[#allocation2 + $0xb4] sm:$0x1] %vm289_vm15, %v6620_v0  ;;  %v3195_v34 = vld [vmem:[#allocation2 + $0x4] sm:$0xf]  ;;  %v7040_v35 = vrot.slane %v2017_v3, 6  ;;  %v2012_v8 = vrot.slane %v7035_v44, 4 }
  0x70   : > { %1394 = vrot.lane.b32.xlu1 %v1287_v22, %s6621_s30  ;;  %v340_v22 = vld [vmem:[%s6689_s29 + $0x34] sm:$0xf]  ;;  %306 = vst.msk [vmem:[#allocation2 + $0xc0] sm:$0x1] %vm289_vm15, %v6620_v0  ;;  %v470_v41 = vrot.slane %v469_v10, 4  ;;  %v3258_v47 = vshll.u32 %v3195_v34, 16 }
  0x71   : > { %v639_v25 = vrot.slane %v638_v5, 4  ;;  %v426_v33 = vrot.slane %v340_v22, 7  ;;  %v3196_v45 = vld [vmem:[#allocation2 + $0x8] sm:$0x1]  ;;  %v3194_v46 = vld [vmem:[#allocation2] sm:$0xf] }
  0x72   : > { %1430 = vrot.lane.b32.xlu0 %v1350_v29, %s6621_s30  ;;  %v7027_v29 = vrot.slane %v1765_v53, 6  ;;  %307 = vst.msk [vmem:[#allocation2 + $0xcc] sm:$0x1] %vm289_vm15, %v6620_v0  ;;  %v3262_v49 = vshrl.u32 %v3195_v34, 16  ;;  %v3249_v50 = vshrl.u32 %v3194_v46, 16  ;;  %v3252_v51 = vshll.u32 %v3194_v46, 16 }
  0x73   : > { %v644_v31 = vsel %vm7006_vm4, %v639_v25, %v6972_v38  ;;  %v471_v38 = vrot.slane %v358_v9, 7  ;;  %1100 = vst.msk [vmem:[#allocation3 + $0x4] sm:$0xf] %vm525_vm12, %v654_v39  ;;  %v427_v53 = vsel %vm6742_vm11, %v425_v55, %v426_v33  ;;  %v1182_v54 = vld [vmem:[#allocation2 + $0xbc] sm:$0x1]  ;;  %v1355_v1 = vrot.slane %v1353_v36, 4 }
  0x74   : > { %1099 = vst.msk [vmem:[#allocation3] sm:$0xf] %vm525_vm12, %v644_v31  ;;  %v3251_v0 = vrot.slane %v3249_v50, 4  ;;  %v3268_v13 = vshll.u32 %v3196_v45, 16  ;;  %v579_v59 = vld [vmem:[#allocation2 + $0x14] sm:$0x1]  ;;  %v1768_v34 = vor.u32 %v7027_v29, %v7017_v26  ;;  %v2020_v39 = vor.u32 %v7040_v35, %v7037_v58 }
  0x75   : > { %v1373_v56 = vpop.permute.xlu2 %1372  ;;  %544 = vst.msk [vmem:[#allocation2 + $0x54] sm:$0xe] %vm523_vm14, %v424_v37  ;;  %v472_v11 = vsel %vm6742_vm11, %v470_v41, %v471_v38  ;;  %v473_v55 = vrot.slane %v471_v38, 4  ;;  %v7072_v60 = vrot.slane %v3258_v47, 5  ;;  %v3264_v61 = vrot.slane %v3262_v49, 4 }
  0x76   : > { %1396 = vrot.lane.b32.xlu2 %v1291_v27, %s6621_s30  ;;  %1481 = vst.msk [vmem:[#allocation3] sm:$0xf] %vm1480_vm3, %v1373_v56  ;;  %v1356_v56 = vrot.slane %v1182_v54, 5  ;;  %v578_v21 = vld [vmem:[#allocation2 + $0x10] sm:$0xf]  ;;  %v428_v37 = vrot.slane %v426_v33, 4 }
  0x77   : > { %545 = vst.msk [vmem:[#allocation2 + $0x58] sm:$0xf] %vm525_vm12, %v427_v53  ;;  %v675_v3 = vshll.u32 %v579_v59, 16  ;;  %v665_v48 = vshll.u32 %v578_v21, 16  ;;  %v669_v4 = vshrl.u32 %v578_v21, 16  ;;  %v3265_v2 = vor.u32 %v3264_v61, %v7072_v60 }
  0x78   : > { %2098 = vrot.lane.b32.xlu1 %v1731_v52, %s6622_s8  ;;  %v3254_v52 = vrot.slane %v3252_v51, 5  ;;  %571 = vst.msk [vmem:[#allocation2 + $0xc0] sm:$0xe] %vm523_vm14, %v469_v10  ;;  %v6106_v7 = vld [vmem:[%s8806_s1] sm:$0xf]  ;;  %v7105_v31 = vrot.slane %v3268_v13, 5  ;;  %v2021_v59 = vsel %vm6719_vm10, %v2012_v8, %v2020_v39 }
  0x79   : > { %572 = vst.msk [vmem:[#allocation2 + $0xc4] sm:$0xf] %vm525_vm12, %v472_v11  ;;  %v7089_v17 = vrot.slane %v665_v48, 5  ;;  %v671_v19 = vrot.slane %v669_v4, 4  ;;  %v6518_v22 = vld [vmem:[%s8806_s1] sm:$0x30] }
  0x7a   : > { %2134 = vrot.lane.b32.xlu0 %v1983_v57, %s6622_s8  ;;  %v3255_v62 = vor.u32 %v3254_v52, %v3251_v0  ;;  %v1357_v57 = vsel %vm6709_vm9, %v1355_v1, %v1356_v56  ;;  %573 = vst.msk [vmem:[#allocation2 + $0xc8] sm:$0x1] %vm527_vm13, %v473_v55  ;;  %v6107_v15 = vor.u32 %v6518_v22, %v6106_v7  ;;  %v580_v36 = vld [vmem:[#allocation2 + $0x18] sm:$0xf]  ;;  %v7100_v23 = vld [vmem:[#allocation2 + $0x1c] sm:$0xf] }
  0x7b   : > { %546 = vst.msk [vmem:[#allocation2 + $0x5c] sm:$0x1] %vm527_vm13, %v428_v37  ;;  %v677_v25 = vrot.slane %v675_v3, 5  ;;  %v672_v27 = vor.u32 %v671_v19, %v7089_v17  ;;  %v680_v28 = vshrl.u32 %v580_v36, 16  ;;  %v683_v9 = vshll.u32 %v580_v36, 16 }
  0x7c   : > { %v3256_v5 = vrot.slane %v3255_v62, 4  ;;  %v1156_v10 = vld [vmem:[#allocation2 + $0x54] sm:$0xe]  ;;  %v7108_v18 = vsel %vm2396_vm6, %v6107_v15, 0  ;;  %v7121_v46 = vrot.slane %v3265_v2, 4  ;;  %v1769_v1 = vsel %vm6719_vm10, %v1760_v40, %v1768_v34 }
  0x7d   : > { %v1375_v43 = vpop.permute.xlu2 %1374  ;;  %v1562_v33 = vld [vmem:[#allocation2 + $0xb4] sm:$0xe]  ;;  %2512 = vmatpush.bf16.msra.mxu1 %v7108_v18  ;;  %v682_v26 = vrot.slane %v680_v28, 4  ;;  %v6005_v29 = vrot.slane %v1156_v10, 9  ;;  %v685_v51 = vrot.slane %v683_v9, 5 }
  0x7e   : > { %1482 = vst.msk [vmem:[#allocation3 + $0x4] sm:$0xf] %vm1480_vm3, %v1375_v43  ;;  %1434 = vrot.lane.b32.xlu2 %v1357_v57, %s6621_s30  ;;  %v7114_v41 = vld [vmem:[#allocation2 + $0x58] sm:$0xf]  ;;  %v689_v43 = vshll.u32 %v7100_v23, 16  ;;  %v3261_v58 = vsel %vm7006_vm4, %v3256_v5, %v7072_v60  ;;  %v1995_v55 = vshrl.u32 %v1562_v33, 16  ;;  %v3271_v8 = vsel %vm7006_vm4, %v7121_v46, %v7105_v31 }
  0x7f   : > { %v1539_v38 = vld [vmem:[#allocation2 + $0x58] sm:$0xf]  ;;  %v7119_v45 = vld [vmem:[#allocation2 + $0xc0] sm:$0xe]  ;;  %v686_v11 = vor.u32 %v685_v51, %v682_v26  ;;  %v1998_v61 = vshll.u32 %v1562_v33, 16 }
  0x80   : > { %2136 = vrot.lane.b32.xlu1 %v1993_v42, %s6622_s8  ;;  %v673_v42 = vrot.slane %v672_v27, 4  ;;  %v1780_v47 = vshrl.u32 %v1539_v38, 16  ;;  %v1783_v49 = vshll.u32 %v1539_v38, 16  ;;  %v7123_v50 = vld [vmem:[#allocation2 + $0xc4] sm:$0xf]  ;;  %v6014_v53 = vrot.slane %v7119_v45, 9 }
  0x81   : > { %v7132_v54 = vld [vmem:[#allocation2 + $0xc8] sm:$0x1]  ;;  %v7141_v13 = vrot.slane %v689_v43, 5  ;;  %v1360_v60 = vrot.slane %v7123_v50, 5  ;;  %v687_v21 = vrot.slane %v686_v11, 4  ;;  %v1997_v37 = vrot.slane %v1995_v55, 5 }
  0x82   : > { %1398 = vrot.lane.b32.xlu0 %v1294_v63, %s6621_s30  ;;  %v678_v35 = vsel %vm7006_vm4, %v673_v42, %v677_v25  ;;  %v1297_v63 = vrot.slane %v7114_v41, 5  ;;  %v1782_v0 = vrot.slane %v1780_v47, 5  ;;  %v1785_v52 = vrot.slane %v1783_v49, 6  ;;  %v1540_v30 = vld [vmem:[#allocation2 + $0x5c] sm:$0x3] }
  0x83   : > { %1102 = vst.msk [vmem:[#allocation3 + $0xc] sm:$0xf] %vm525_vm12, %v678_v35  ;;  %v1790_v57 = vshrl.u32 %v1540_v30, 16  ;;  %v1565_v3 = vld [vmem:[#allocation2 + $0xc0] sm:$0xe]  ;;  %v1793_v48 = vshll.u32 %v1540_v30, 16  ;;  %v1361_v35 = vsel %vm6709_vm9, %v6014_v53, %v1360_v60 }
  0x84   : > { %v7149_v62 = vor.u32 %v1785_v52, %v1782_v0  ;;  %v2000_v4 = vrot.slane %v1998_v61, 6  ;;  %v1566_v5 = vld [vmem:[#allocation2 + $0xc4] sm:$0xf]  ;;  %v1298_v7 = vsel %vm6709_vm9, %v6005_v29, %v1297_v63  ;;  %v2023_v19 = vshrl.u32 %v1565_v3, 16  ;;  %v577_v22 = vld [vmem:[#allocation2 + $0xc] sm:$0xf] }
  0x85   : > { %v2079_v16 = vpop.permute.xlu2 %2078  ;;  %v2026_v15 = vshll.u32 %v1565_v3, 16  ;;  %v2032_v36 = vshrl.u32 %v1566_v5, 16  ;;  %v2035_v27 = vshll.u32 %v1566_v5, 16  ;;  %v656_v28 = vshrl.u32 %v577_v22, 16  ;;  %v341_v10 = vld [vmem:[%s6689_s29 + $0x38] sm:$0xf] }
  0x86   : > { %2187 = vst.msk [vmem:[#allocation3] sm:$0xf] %vm2186_vm5, %v2079_v16  ;;  %v692_v16 = vsel %vm7006_vm4, %v687_v21, %v7141_v13  ;;  %v2001_v2 = vor.u32 %v2000_v4, %v1997_v37  ;;  %v1788_v25 = vrot.slane %v7149_v62, 4  ;;  %v659_v9 = vshll.u32 %v577_v22, 16  ;;  %v342_v38 = vld [vmem:[%s6689_s29 + $0x3c] sm:$0xf] }
  0x87   : > { %1103 = vst.msk [vmem:[#allocation3 + $0x10] sm:$0xf] %vm525_vm12, %v692_v16  ;;  %v7169_v31 = vrot.slane %v1790_v57, 5  ;;  %v1795_v33 = vrot.slane %v1793_v48, 6  ;;  %v2025_v39 = vrot.slane %v2023_v19, 5  ;;  %v2028_v42 = vrot.slane %v2026_v15, 6 }
  0x88   : > { %1432 = vrot.lane.b32.xlu1 %v1354_v12, %s6621_s30  ;;  %v1363_v12 = vrot.slane %v7132_v54, 5  ;;  %v2002_v34 = vrot.slane %v2001_v2, 4  ;;  %v658_v43 = vrot.slane %v656_v28, 4  ;;  %v661_v45 = vrot.slane %v659_v9, 5  ;;  %v1158_v47 = vld [vmem:[#allocation2 + $0x5c] sm:$0x1] }
  0x89   : > { %v429_v46 = vrot.slane %v341_v10, 7  ;;  %v2034_v26 = vrot.slane %v2032_v36, 5  ;;  %v431_v29 = vrot.slane %v342_v38, 7  ;;  %v582_v50 = vld [vmem:[#allocation2 + $0x20] sm:$0x1]  ;;  %v2037_v0 = vrot.slane %v2035_v27, 6 }
  0x8a   : > { %2102 = vrot.lane.b32.xlu0 %v1759_v24, %s6622_s8  ;;  %v1362_v24 = vrot.slane %v1360_v60, 4  ;;  %v2011_v49 = vsel %vm6719_vm10, %v2002_v34, %v7035_v44  ;;  %v662_v52 = vor.u32 %v661_v45, %v658_v43  ;;  %v1299_v11 = vrot.slane %v1297_v63, 4  ;;  %v6082_v2 = vld [vmem:[%s8806_s1 + $0x4] sm:$0xc] }
  0x8b   : > { %2138 = vrot.lane.b32.xlu2 %v2011_v49, %s6622_s8  ;;  %547 = vst.msk [vmem:[#allocation2 + $0x60] sm:$0xe] %vm523_vm14, %v429_v46  ;;  %v1300_v55 = vrot.slane %v1158_v47, 5  ;;  %v433_v53 = vrot.slane %v431_v29, 4  ;;  %v693_v30 = vshrl.u32 %v7100_v23, 16  ;;  %v699_v61 = vshll.u32 %v582_v50, 16 }
  0x8c   : > { %v1796_v57 = vor.u32 %v1795_v33, %v7169_v31  ;;  %v2029_v21 = vor.u32 %v2028_v42, %v2025_v39  ;;  %v1364_v16 = vsel %vm6709_vm9, %v1362_v24, %v1363_v12  ;;  %v6520_v33 = vld [vmem:[%s8806_s1 + $0x4] sm:$0xf0]  ;;  %v7222_v34 = vor.u32 %v2037_v0, %v2034_v26  ;;  %v583_v43 = vld [vmem:[#allocation2 + $0x24] sm:$0xf] }
  0x8d   : > { %v7138_v56 = vld [vmem:[#allocation3] sm:$0xf]  ;;  %549 = vst.msk [vmem:[#allocation2 + $0x68] sm:$0x1] %vm527_vm13, %v433_v53  ;;  %v695_v23 = vrot.slane %v693_v30, 4  ;;  %v701_v19 = vrot.slane %v699_v61, 5  ;;  %v6083_v42 = vor.u32 %v6520_v33, %v6082_v2 }
  0x8e   : > { %3716 = vst.msk [vmem:[#allocation3] sm:$0xf] %vm280_vm0, %v3261_v58  ;;  %v349_v58 = vld [vmem:[%s6689_s29 + $0x58] sm:$0xf]  ;;  %v2030_v12 = vrot.slane %v2029_v21, 4  ;;  %v2040_v30 = vrot.slane %v7222_v34, 4 }
  0x8f   : > { %v2081_v40 = vpop.permute.xlu0 %2080  ;;  %v449_v41 = vrot.slane %v349_v58, 7 }
  0x90   : > { %2104 = vrot.lane.b32.xlu1 %v1769_v1, %s6622_s8  ;;  %2188 = vst.msk [vmem:[#allocation3 + $0x4] sm:$0xf] %vm2186_vm5, %v2081_v40  ;;  %v430_v1 = vrot.slane %v429_v46, 4  ;;  %v350_v40 = vld [vmem:[%s6689_s29 + $0x5c] sm:$0xf] }
  0x91   : > { %v451_v63 = vrot.slane %v350_v40, 7  ;;  %v450_v4 = vrot.slane %v449_v41, 4  ;;  %559 = vst.msk [vmem:[#allocation2 + $0x90] sm:$0xe] %vm523_vm14, %v449_v41  ;;  %v704_v41 = vshrl.u32 %v583_v43, 16 }
  0x92   : > { %2140 = vrot.lane.b32.xlu0 %v2021_v59, %s6622_s8  ;;  %v663_v59 = vrot.slane %v662_v52, 4  ;;  %v432_v60 = vsel %vm6742_vm11, %v430_v1, %v431_v29  ;;  %v1159_v15 = vld [vmem:[#allocation2 + $0x60] sm:$0xe] }
  0x93   : > { %548 = vst.msk [vmem:[#allocation2 + $0x64] sm:$0xf] %vm525_vm12, %v432_v60  ;;  %v453_v5 = vrot.slane %v451_v63, 4  ;;  %v452_v36 = vsel %vm6742_vm11, %v450_v4, %v451_v63  ;;  %v1541_v27 = vld [vmem:[#allocation2 + $0x60] sm:$0xe]  ;;  %v6006_v28 = vrot.slane %v1159_v15, 9 }
  0x94   : > { %v668_v37 = vsel %vm7006_vm4, %v663_v59, %v7089_v17  ;;  %v696_v17 = vor.u32 %v695_v23, %v7141_v13  ;;  %v1797_v13 = vsel %vm6719_vm10, %v1788_v25, %v1796_v57  ;;  %560 = vst.msk [vmem:[#allocation2 + $0x94] sm:$0xf] %vm525_vm12, %v452_v36  ;;  %v1799_v10 = vshrl.u32 %v1541_v27, 16  ;;  %v1161_v47 = vld [vmem:[#allocation2 + $0x68] sm:$0x1] }
  0x95   : > { %1101 = vst.msk [vmem:[#allocation3 + $0x8] sm:$0xf] %vm525_vm12, %v668_v37  ;;  %v1802_v31 = vshll.u32 %v1541_v27, 16  ;;  %v1307_v29 = vrot.slane %v1161_v47, 5  ;;  %v2346_v60 = vrot.slane %v6083_v42, 2  ;;  %v707_v37 = vshll.u32 %v583_v43, 16 }
  0x96   : > { %561 = vst.msk [vmem:[#allocation2 + $0x98] sm:$0x1] %vm527_vm13, %v453_v5  ;;  %v697_v24 = vrot.slane %v696_v17, 4  ;;  %v1801_v26 = vrot.slane %v1799_v10, 5  ;;  %v1567_v5 = vld [vmem:[#allocation2 + $0xc8] sm:$0x3] }
  0x97   : > { %v6502_v51 = vld [vmem:[#allocation3] sm:$0xf0]  ;;  %v2085_v48 = vpop.permute.xlu2 %2084  ;;  %v1804_v50 = vrot.slane %v1802_v31, 6  ;;  %v2398_v21 = vsel %vm2396_vm6, %v2346_v60, 0  ;;  %v6537_v10 = vld [vmem:[%s8806_s1 + $0xc] sm:$0x30] }
  0x98   : > { %1400 = vrot.lane.b32.xlu1 %v1298_v7, %s6621_s30  ;;  %3717 = vst.msk [vmem:[#allocation3 + $0x4] sm:$0xf] %vm280_vm0, %v3271_v8  ;;  %v6103_v44 = vor.u32 %v6502_v51, %v7138_v56  ;;  %v1538_v56 = vld [vmem:[#allocation2 + $0x54] sm:$0xe]  ;;  %v1301_v8 = vsel %vm6709_vm9, %v1299_v11, %v1300_v55  ;;  %v702_v39 = vsel %vm7006_vm4, %v697_v24, %v701_v19 }
  0x99   : > { %v1771_v3 = vshrl.u32 %v1538_v56, 16  ;;  %v1774_v7 = vshll.u32 %v1538_v56, 16  ;;  %1402 = vrot.lane.b32.xlu2 %v1301_v8, %s6621_s30  ;;  %1104 = vst.msk [vmem:[#allocation3 + $0x14] sm:$0xf] %vm525_vm12, %v702_v39  ;;  %v2039_v55 = vsel %vm6719_vm10, %v2030_v12, %v7222_v34  ;;  %v1805_v40 = vor.u32 %v1804_v50, %v1801_v26  ;;  %2407 = vmatpush.bf16.msra.mxu0 %v2398_v21  ;;  %v6190_v12 = vld [vmem:[%s8806_s1 + $0xc] sm:$0xf] }
  0x9a   : > { %1436 = vrot.lane.b32.xlu0 %v1361_v35, %s6621_s30  ;;  %6108 = vmatmul.msk.bf16.vlgmr.msra.gmra.mxu1 %vm2347_vm7, %v6103_v44  ;;  %v1160_v25 = vld [vmem:[#allocation2 + $0x64] sm:$0xf]  ;;  %v7229_v35 = vld [vmem:[#allocation2 + $0x28] sm:$0xf]  ;;  %v1553_v44 = vld [vmem:[#allocation2 + $0x90] sm:$0xe]  ;;  %v6191_v47 = vor.u32 %v6537_v10, %v6190_v12 }
  0x9b   : > { %v1773_v22 = vrot.slane %v1771_v3, 5  ;;  %v1776_v54 = vrot.slane %v1774_v7, 6  ;;  %v1542_v38 = vld [vmem:[#allocation2 + $0x64] sm:$0xf]  ;;  %v1304_v46 = vrot.slane %v1160_v25, 5  ;;  %v706_v8 = vrot.slane %v704_v41, 4  ;;  %6590 = vmatpush.bf16.msra.mxu3 %v2398_v21 }
  0x9c   : > { %v1808_v58 = vshrl.u32 %v1542_v38, 16  ;;  %v1811_v1 = vshll.u32 %v1542_v38, 16  ;;  %v7246_v61 = vld [vmem:[#allocation2 + $0x94] sm:$0xf]  ;;  %v1911_v4 = vshrl.u32 %v1553_v44, 16  ;;  %v1914_v17 = vshll.u32 %v1553_v44, 16 }
  0x9d   : > { %v1777_v9 = vor.u32 %v1776_v54, %v1773_v22  ;;  %v1306_v0 = vrot.slane %v1304_v46, 4  ;;  %v1305_v53 = vsel %vm6709_vm9, %v6006_v28, %v1304_v46  ;;  %v1173_v59 = vld [vmem:[#allocation2 + $0x98] sm:$0x1]  ;;  %v1332_v63 = vrot.slane %v7246_v61, 5  ;;  %v1554_v23 = vld [vmem:[#allocation2 + $0x94] sm:$0xf] }
  0x9e   : > { %v1810_v57 = vrot.slane %v1808_v58, 5  ;;  %v1335_v56 = vrot.slane %v1173_v59, 5  ;;  %v1813_v3 = vrot.slane %v1811_v1, 6  ;;  %v1920_v19 = vshrl.u32 %v1554_v23, 16  ;;  %v1555_v22 = vld [vmem:[#allocation2 + $0x98] sm:$0x3] }
  0x9f   : > { %v1778_v49 = vrot.slane %v1777_v9, 4  ;;  %v1334_v7 = vrot.slane %v1332_v63, 4  ;;  %v7256_v15 = vrot.slane %v1805_v40, 4  ;;  %v1913_v54 = vrot.slane %v1911_v4, 5  ;;  %6591 = vmatpush.bf16.msrb.mxu3 %v7108_v18  ;;  %v585_v18 = vld [vmem:[#allocation2 + $0x2c] sm:$0x1] }
  0xa0   : > { %1438 = vrot.lane.b32.xlu1 %v1364_v16, %s6621_s30  ;;  %v7235_v11 = vpop.permute.xlu2 %2090  ;;  %v709_v16 = vrot.slane %v707_v37, 5  ;;  %v1916_v28 = vrot.slane %v1914_v17, 6  ;;  %v1922_v9 = vrot.slane %v1920_v19, 5  ;;  %v2042_v25 = vshrl.u32 %v1567_v5, 16  ;;  %v1171_v40 = vld [vmem:[#allocation2 + $0x90] sm:$0xe] }
  0xa1   : > { %v1787_v52 = vsel %vm6719_vm10, %v1778_v49, %v7149_v62  ;;  %v1308_v62 = vsel %vm6709_vm9, %v1306_v0, %v1307_v29  ;;  %v1336_v24 = vsel %vm6709_vm9, %v1334_v7, %v1335_v56  ;;  %v2045_v39 = vshll.u32 %v1567_v5, 16  ;;  %v343_v49 = vld [vmem:[%s6689_s29 + $0x40] sm:$0xf]  ;;  %v587_v21 = vld [vmem:[#allocation2 + $0x34] sm:$0xf] }
  0xa2   : > { %2108 = vrot.lane.b32.xlu0 %v1797_v13, %s6622_s8  ;;  %v1379_v45 = vpop.permute.xlu1 %1378  ;;  %2106 = vrot.lane.b32.xlu2 %v1787_v52, %s6622_s8  ;;  %v1923_v13 = vshll.u32 %v1554_v23, 16  ;;  %v710_v27 = vor.u32 %v709_v16, %v706_v8  ;;  %v1930_v38 = vshrl.u32 %v1555_v22, 16  ;;  %v1933_v46 = vshll.u32 %v1555_v22, 16  ;;  %v588_v37 = vld [vmem:[#allocation2 + $0x38] sm:$0x1] }
  0xa3   : > { %1484 = vst.msk [vmem:[#allocation3 + $0xc] sm:$0xf] %vm1480_vm3, %v1379_v45  ;;  %v1917_v45 = vor.u32 %v1916_v28, %v1913_v54  ;;  %v2044_v26 = vrot.slane %v2042_v25, 5  ;;  %v2047_v50 = vrot.slane %v2045_v39, 6  ;;  %v7287_v44 = vsel %vm2396_vm6, %v6191_v47, 0 }
  0xa4   : > { %v1381_v51 = vpop.permute.xlu0 %1380  ;;  %2190 = vst.msk [vmem:[#allocation3 + $0xc] sm:$0xf] %vm2186_vm5, %v2085_v48  ;;  %v713_v48 = vshll.u32 %v7229_v35, 16  ;;  %v1925_v33 = vrot.slane %v1923_v13, 6  ;;  %v711_v43 = vrot.slane %v710_v27, 4  ;;  %v7276_v58 = vrot.slane %v1930_v38, 5  ;;  %2771 = vmatpush.bf16.msra.mxu2 %v7287_v44 }
  0xa5   : > { %1485 = vst.msk [vmem:[#allocation3 + $0x10] sm:$0xf] %vm1480_vm3, %v1381_v51  ;;  %v344_v51 = vld [vmem:[%s6689_s29 + $0x44] sm:$0xf]  ;;  %v7282_v52 = vrot.slane %v1917_v45, 4  ;;  %v7284_v1 = vrot.slane %v1933_v46, 6 }
  0xa6   : > { %v7258_v36 = vrot.slane %v713_v48, 5  ;;  %v7274_v29 = vor.u32 %v1925_v33, %v1922_v9  ;;  %v717_v59 = vshrl.u32 %v7229_v35, 16  ;;  %v723_v60 = vshll.u32 %v585_v18, 16  ;;  %v586_v48 = vld [vmem:[#allocation2 + $0x30] sm:$0xf] }
  0xa7   : > { %v434_v41 = vrot.slane %v343_v49, 7  ;;  %v436_v56 = vrot.slane %v344_v51, 7  ;;  %v6010_v5 = vrot.slane %v1171_v40, 9  ;;  %v737_v7 = vshll.u32 %v587_v21, 16  ;;  %v613_v22 = vld [vmem:[#allocation2 + $0x9c] sm:$0xf] }
  0xa8   : > { %2142 = vrot.lane.b32.xlu1 %v2039_v55, %s6622_s8  ;;  %v7270_v42 = vpop.permute.xlu2 %1390  ;;  %v716_v0 = vsel %vm7006_vm4, %v711_v43, %v7258_v36  ;;  %v7290_v55 = vor.u32 %v1813_v3, %v1810_v57  ;;  %v1928_v57 = vrot.slane %v7274_v29, 4  ;;  %v719_v3 = vrot.slane %v717_v59, 4  ;;  %v7326_v25 = vld [vmem:[#allocation2 + $0xa0] sm:$0xf]  ;;  %v1543_v45 = vld [vmem:[#allocation2 + $0x68] sm:$0x3] }
  0xa9   : > { %1105 = vst.msk [vmem:[#allocation3 + $0x18] sm:$0xf] %vm525_vm12, %v716_v0  ;;  %v725_v8 = vrot.slane %v723_v60, 5  ;;  %v435_v35 = vrot.slane %v434_v41, 4  ;;  %v438_v4 = vrot.slane %v436_v56, 4  ;;  %v741_v17 = vshrl.u32 %v587_v21, 16 }
  0xaa   : > { %v2087_v2 = vpop.permute.xlu1 %2086  ;;  %1404 = vrot.lane.b32.xlu0 %v1305_v53, %s6621_s30  ;;  %v2048_v53 = vor.u32 %v2047_v50, %v2044_v26  ;;  %v1815_v34 = vsel %vm6719_vm10, %v7256_v15, %v7290_v55  ;;  %550 = vst.msk [vmem:[#allocation2 + $0x6c] sm:$0xe] %vm523_vm14, %v434_v41  ;;  %v747_v19 = vshll.u32 %v588_v37, 16  ;;  %v7312_v54 = vrot.slane %v737_v7, 5  ;;  %v345_v21 = vld [vmem:[%s6689_s29 + $0x48] sm:$0xf] }
  0xab   : > { %2191 = vst.msk [vmem:[#allocation3 + $0x10] sm:$0xf] %vm2186_vm5, %v2087_v2  ;;  %v437_v2 = vsel %vm6742_vm11, %v435_v35, %v436_v56  ;;  %v728_v13 = vshrl.u32 %v586_v48, 16  ;;  %v731_v12 = vshll.u32 %v586_v48, 16  ;;  %v743_v15 = vrot.slane %v741_v17, 4 }
  0xac   : > { %v1377_v31 = vpop.permute.xlu0 %1376  ;;  %551 = vst.msk [vmem:[#allocation2 + $0x70] sm:$0xf] %vm525_vm12, %v437_v2  ;;  %v944_v28 = vshrl.u32 %v613_v22, 16  ;;  %v1927_v9 = vsel %vm6719_vm10, %v7282_v52, %v7274_v29  ;;  %v1333_v10 = vsel %vm6709_vm9, %v6010_v5, %v1332_v63  ;;  %v947_v43 = vshll.u32 %v613_v22, 16 }
  0xad   : > { %1483 = vst.msk [vmem:[#allocation3 + $0x8] sm:$0xf] %vm1480_vm3, %v1377_v31  ;;  %v730_v31 = vrot.slane %v728_v13, 4  ;;  %v733_v33 = vrot.slane %v731_v12, 5  ;;  %v744_v38 = vor.u32 %v743_v15, %v7312_v54  ;;  %v1936_v61 = vor.u32 %v7284_v1, %v7276_v58 }
  0xae   : > { %552 = vst.msk [vmem:[#allocation2 + $0x74] sm:$0x1] %vm527_vm13, %v438_v4  ;;  %v946_v18 = vrot.slane %v944_v28, 4  ;;  %v953_v46 = vshll.u32 %v7326_v25, 16  ;;  %v1816_v47 = vrot.slane %v7290_v55, 4  ;;  %v949_v51 = vrot.slane %v947_v43, 5 }
  0xaf   : > { %v734_v63 = vor.u32 %v733_v33, %v730_v31  ;;  %v745_v50 = vrot.slane %v744_v38, 4  ;;  %v1818_v0 = vshrl.u32 %v1543_v45, 16  ;;  %v1821_v52 = vshll.u32 %v1543_v45, 16 }
  0xb0   : > { %1406 = vrot.lane.b32.xlu1 %v1308_v62, %s6621_s30  ;;  %v2049_v62 = vsel %vm6719_vm10, %v2040_v30, %v2048_v53  ;;  %v720_v30 = vor.u32 %v719_v3, %v7258_v36  ;;  %v749_v36 = vrot.slane %v747_v19, 5  ;;  %v7340_v53 = vrot.slane %v953_v46, 5  ;;  %v346_v3 = vld [vmem:[%s6689_s29 + $0x4c] sm:$0xf] }
  0xb1   : > { %2144 = vrot.lane.b32.xlu2 %v2049_v62, %s6622_s8  ;;  %v1544_v58 = vld [vmem:[#allocation2 + $0x6c] sm:$0xe]  ;;  %v735_v1 = vrot.slane %v734_v63, 4  ;;  %v950_v56 = vor.u32 %v949_v51, %v946_v18  ;;  %v1937_v37 = vsel %vm6719_vm10, %v1928_v57, %v1936_v61  ;;  %v615_v57 = vld [vmem:[#allocation2 + $0xa4] sm:$0x1]  ;;  %v1820_v19 = vrot.slane %v1818_v0, 5 }
  0xb2   : > { %v2083_v23 = vpop.permute.xlu1 %2082  ;;  %1422 = vrot.lane.b32.xlu0 %v1336_v24, %s6621_s30  ;;  %v7314_v24 = vpop.permute.xlu2 %2094  ;;  %v721_v27 = vrot.slane %v720_v30, 4  ;;  %v1827_v60 = vshrl.u32 %v1544_v58, 16  ;;  %v1830_v40 = vshll.u32 %v1544_v58, 16  ;;  %v750_v41 = vsel %vm7006_vm4, %v745_v50, %v749_v36 }
  0xb3   : > { %2189 = vst.msk [vmem:[#allocation3 + $0x8] sm:$0xf] %vm2186_vm5, %v2083_v23  ;;  %v7352_v23 = vld [vmem:[#allocation2 + $0x70] sm:$0xf]  ;;  %v740_v4 = vsel %vm7006_vm4, %v735_v1, %v7312_v54  ;;  %v951_v17 = vrot.slane %v950_v56, 4  ;;  %v1823_v22 = vrot.slane %v1821_v52, 6 }
  0xb4   : > { %v1383_v16 = vpop.permute.xlu0 %1382  ;;  %v726_v39 = vsel %vm7006_vm4, %v721_v27, %v725_v8  ;;  %v1545_v62 = vld [vmem:[#allocation2 + $0x70] sm:$0xf]  ;;  %v1311_v48 = vrot.slane %v7352_v23, 5  ;;  %v1829_v35 = vrot.slane %v1827_v60, 5  ;;  %v1832_v29 = vrot.slane %v1830_v40, 6 }
  0xb5   : > { %1486 = vst.msk [vmem:[#allocation3 + $0x14] sm:$0xf] %vm1480_vm3, %v1383_v16  ;;  %v1164_v8 = vld [vmem:[#allocation2 + $0x74] sm:$0x1]  ;;  %v1836_v7 = vshrl.u32 %v1545_v62, 16  ;;  %v1839_v16 = vshll.u32 %v1545_v62, 16  ;;  %v956_v28 = vsel %vm7006_vm4, %v951_v17, %v7340_v53 }
  0xb6   : > { %1106 = vst.msk [vmem:[#allocation3 + $0x1c] sm:$0xf] %vm525_vm12, %v726_v39  ;;  %v1314_v5 = vrot.slane %v1164_v8, 5  ;;  %v1833_v2 = vor.u32 %v1832_v29, %v1829_v35  ;;  %v439_v12 = vrot.slane %v345_v21, 7  ;;  %v957_v38 = vshrl.u32 %v7326_v25, 16 }
  0xb7   : > { %1108 = vst.msk [vmem:[#allocation3 + $0x24] sm:$0xf] %vm525_vm12, %v750_v41  ;;  %v1838_v54 = vrot.slane %v1836_v7, 5  ;;  %v1841_v13 = vrot.slane %v1839_v16, 6  ;;  %v963_v45 = vshll.u32 %v615_v57, 16 }
  0xb8   : > { %2110 = vrot.lane.b32.xlu1 %v1815_v34, %s6622_s8  ;;  %v1162_v34 = vld [vmem:[#allocation2 + $0x6c] sm:$0xe]  ;;  %1490 = vst.msk [vmem:[#allocation3 + $0x24] sm:$0xf] %vm1480_vm3, %v7270_v42  ;;  %v441_v42 = vrot.slane %v346_v3, 7  ;;  %v1834_v31 = vrot.slane %v1833_v2, 4 }
  0xb9   : > { %1420 = vrot.lane.b32.xlu2 %v1333_v10, %s6621_s30  ;;  %1107 = vst.msk [vmem:[#allocation3 + $0x20] sm:$0xf] %vm525_vm12, %v740_v4  ;;  %v589_v10 = vld [vmem:[#allocation2 + $0x3c] sm:$0xf]  ;;  %v7377_v33 = vor.u32 %v1841_v13, %v1838_v54  ;;  %v440_v39 = vrot.slane %v439_v12, 4  ;;  %v6007_v63 = vrot.slane %v1162_v34, 9 }
  0xba   : > { %v2089_v49 = vpop.permute.xlu1 %2088  ;;  %v6503_v26 = vld [vmem:[#allocation3 + $0x8] sm:$0xff]  ;;  %2126 = vrot.lane.b32.xlu0 %v1927_v9, %s6622_s8  ;;  %v7362_v30 = vpop.permute.xlu2 %2132  ;;  %v1824_v9 = vor.u32 %v1823_v22, %v1820_v19  ;;  %1125 = vst.msk [vmem:[#allocation3 + $0x68] sm:$0xf] %vm525_vm12, %v956_v28  ;;  %v443_v61 = vrot.slane %v441_v42, 4  ;;  %v752_v55 = vshrl.u32 %v589_v10, 16  ;;  %v755_v50 = vshll.u32 %v589_v10, 16 }
  0xbb   : > { %2192 = vst.msk [vmem:[#allocation3 + $0x14] sm:$0xf] %vm2186_vm5, %v2089_v49  ;;  %6084 = vmatmul.msk.bf16.vlgmr.msra.gmra.mxu0 %vm2347_vm7, %v6503_v26  ;;  %6109 = vmatmul.msk.bf16.gmra.mxu1 %vm2347_vm7, %v6503_v26  ;;  %v1843_v46 = vsel %vm6719_vm10, %v1834_v31, %v7377_v33  ;;  %v442_v25 = vsel %vm6742_vm11, %v440_v39, %v441_v42  ;;  %v959_v49 = vrot.slane %v957_v38, 4  ;;  %v7393_v26 = vld [vmem:[#allocation2 + $0x40] sm:$0xf]  ;;  %v1844_v56 = vrot.slane %v7377_v33, 4 }
  0xbc   : > { %v1385_v59 = vpop.permute.xlu0 %1384  ;;  %v1825_v43 = vsel %vm6719_vm10, %v1816_v47, %v1824_v9  ;;  %553 = vst.msk [vmem:[#allocation2 + $0x78] sm:$0xe] %vm523_vm14, %v439_v12  ;;  %v965_v47 = vrot.slane %v963_v45, 5  ;;  %v754_v0 = vrot.slane %v752_v55, 4  ;;  %v761_v52 = vshll.u32 %v7393_v26, 16 }
  0xbd   : > { %1487 = vst.msk [vmem:[#allocation3 + $0x18] sm:$0xf] %vm1480_vm3, %v1385_v59  ;;  %v960_v51 = vor.u32 %v959_v49, %v7340_v53  ;;  %v1546_v58 = vld [vmem:[#allocation2 + $0x74] sm:$0x3]  ;;  %v757_v1 = vrot.slane %v755_v50, 5  ;;  %v1312_v41 = vsel %vm6709_vm9, %v6007_v63, %v1311_v48  ;;  %v765_v16 = vshrl.u32 %v7393_v26, 16 }
  0xbe   : > { %2193 = vst.msk [vmem:[#allocation3 + $0x18] sm:$0xf] %vm2186_vm5, %v7235_v11  ;;  %v1313_v11 = vrot.slane %v1311_v48, 4  ;;  %v1846_v59 = vshrl.u32 %v1546_v58, 16  ;;  %v1849_v60 = vshll.u32 %v1546_v58, 16  ;;  %v7415_v48 = vrot.slane %v761_v52, 5 }
  0xbf   : > { %554 = vst.msk [vmem:[#allocation2 + $0x7c] sm:$0xf] %vm525_vm12, %v442_v25  ;;  %v961_v40 = vrot.slane %v960_v51, 4  ;;  %v347_v53 = vld [vmem:[%s6689_s29 + $0x50] sm:$0xf]  ;;  %v758_v8 = vor.u32 %v757_v1, %v754_v0 }
  0xc0   : > { %2128 = vrot.lane.b32.xlu1 %v1937_v37, %s6622_s8  ;;  %v1315_v36 = vsel %vm6709_vm9, %v1313_v11, %v1314_v5  ;;  %555 = vst.msk [vmem:[#allocation2 + $0x80] sm:$0x1] %vm527_vm13, %v443_v61  ;;  %v7408_v21 = vld [vmem:[%s6689_s29 + $0x54] sm:$0xf]  ;;  %v1848_v35 = vrot.slane %v1846_v59, 5  ;;  %v1851_v4 = vrot.slane %v1849_v60, 6 }
  0xc1   : > { %2112 = vrot.lane.b32.xlu2 %v1825_v43, %s6622_s8  ;;  %v444_v5 = vrot.slane %v347_v53, 7  ;;  %v616_v29 = vld [vmem:[#allocation2 + $0xa8] sm:$0xf]  ;;  %v966_v23 = vsel %vm7006_vm4, %v961_v40, %v965_v47  ;;  %v759_v34 = vrot.slane %v758_v8, 4  ;;  %v446_v17 = vrot.slane %v7408_v21, 7 }
  0xc2   : > { %v1387_v27 = vpop.permute.xlu1 %1386  ;;  %v6521_v15 = vld [vmem:[#allocation3 + $0x10] sm:$0xff]  ;;  %1410 = vrot.lane.b32.xlu0 %v1315_v36, %s6621_s30  ;;  %v7410_v37 = vpop.permute.xlu2 %1428  ;;  %v968_v7 = vshrl.u32 %v616_v29, 16  ;;  %v1852_v11 = vor.u32 %v1851_v4, %v1848_v35  ;;  %v971_v54 = vshll.u32 %v616_v29, 16  ;;  %1126 = vst.msk [vmem:[#allocation3 + $0x6c] sm:$0xf] %vm525_vm12, %v966_v23  ;;  %v767_v40 = vrot.slane %v765_v16, 4 }
  0xc3   : > { %1488 = vst.msk [vmem:[#allocation3 + $0x1c] sm:$0xf] %vm1480_vm3, %v1387_v27  ;;  %6192 = vmatmul.msk.bf16.vlgmr.msra.gmra.mxu2 %vm2347_vm7, %v6521_v15  ;;  %v6504_v3 = vld [vmem:[#allocation3 + $0x10] sm:$0xff]  ;;  %v1165_v22 = vld [vmem:[#allocation2 + $0x78] sm:$0xe]  ;;  %v445_v2 = vrot.slane %v444_v5, 4 }
  0xc4   : > { %v2093_v18 = vpop.permute.xlu0 %2092  ;;  %v617_v19 = vld [vmem:[#allocation2 + $0xac] sm:$0xf]  ;;  %v6008_v12 = vrot.slane %v1165_v22, 9  ;;  %v970_v27 = vrot.slane %v968_v7, 4  ;;  %v1853_v9 = vsel %vm6719_vm10, %v1844_v56, %v1852_v11  ;;  %v973_v42 = vrot.slane %v971_v54, 5 }
  0xc5   : > { %2194 = vst.msk [vmem:[#allocation3 + $0x1c] sm:$0xf] %vm2186_vm5, %v2093_v18  ;;  %v977_v38 = vshll.u32 %v617_v19, 16  ;;  %v447_v0 = vsel %vm6742_vm11, %v445_v2, %v446_v17  ;;  %v591_v52 = vld [vmem:[#allocation2 + $0x44] sm:$0x1]  ;;  %v981_v21 = vshrl.u32 %v617_v19, 16 }
  0xc6   : > { %v1166_v13 = vld [vmem:[#allocation2 + $0x7c] sm:$0xf]  ;;  %556 = vst.msk [vmem:[#allocation2 + $0x84] sm:$0xe] %vm523_vm14, %v444_v5  ;;  %v974_v26 = vor.u32 %v973_v42, %v970_v27  ;;  %v618_v53 = vld [vmem:[#allocation2 + $0xb0] sm:$0x1] }
  0xc7   : > { %v1318_v15 = vrot.slane %v1166_v13, 5  ;;  %v1167_v36 = vld [vmem:[#allocation2 + $0x80] sm:$0x1]  ;;  %v1548_v28 = vld [vmem:[#allocation2 + $0x7c] sm:$0xf]  ;;  %v979_v55 = vrot.slane %v977_v38, 5 }
  0xc8   : > { %2114 = vrot.lane.b32.xlu1 %v1843_v46, %s6622_s8  ;;  %v1321_v10 = vrot.slane %v1167_v36, 5  ;;  %v1549_v31 = vld [vmem:[#allocation2 + $0x80] sm:$0x3]  ;;  %v1864_v33 = vshrl.u32 %v1548_v28, 16  ;;  %v1867_v39 = vshll.u32 %v1548_v28, 16  ;;  %v975_v60 = vrot.slane %v974_v26, 4 }
  0xc9   : > { %1408 = vrot.lane.b32.xlu2 %v1312_v41, %s6621_s30  ;;  %v1319_v18 = vsel %vm6709_vm9, %v6008_v12, %v1318_v15  ;;  %v1320_v43 = vrot.slane %v1318_v15, 4  ;;  %v1874_v45 = vshrl.u32 %v1549_v31, 16  ;;  %v1877_v61 = vshll.u32 %v1549_v31, 16  ;;  %557 = vst.msk [vmem:[#allocation2 + $0x88] sm:$0xf] %vm525_vm12, %v447_v0 }
  0xca   : > { %v1389_v62 = vpop.permute.xlu1 %1388  ;;  %1412 = vrot.lane.b32.xlu0 %v1319_v18, %s6621_s30  ;;  %v1866_v25 = vrot.slane %v1864_v33, 5  ;;  %v1869_v49 = vrot.slane %v1867_v39, 6  ;;  %v7441_v58 = vpop.permute.xlu2 %2100  ;;  %v771_v41 = vshll.u32 %v591_v52, 16  ;;  %v980_v8 = vsel %vm7006_vm4, %v975_v60, %v979_v55  ;;  %v1547_v4 = vld [vmem:[#allocation2 + $0x78] sm:$0xe] }
  0xcb   : > { %1489 = vst.msk [vmem:[#allocation3 + $0x20] sm:$0xf] %vm1480_vm3, %v1389_v62  ;;  %6085 = vmatmul.msk.bf16.gmra.mxu0 %vm2347_vm7, %v6504_v3  ;;  %6110 = vmatmul.msk.bf16.gmra.mxu1 %vm2347_vm7, %v6504_v3  ;;  %v1322_v47 = vsel %vm6709_vm9, %v1320_v43, %v1321_v10  ;;  %v1876_v50 = vrot.slane %v1874_v45, 5  ;;  %v1879_v51 = vrot.slane %v1877_v61, 6  ;;  %v448_v62 = vrot.slane %v446_v17, 4 }
  0xcc   : > { %v1425_v57 = vpop.permute.xlu0 %1424  ;;  %2195 = vst.msk [vmem:[#allocation3 + $0x20] sm:$0xf] %vm2186_vm5, %v7314_v24  ;;  %v764_v24 = vsel %vm7006_vm4, %v759_v34, %v7415_v48  ;;  %v6522_v46 = vld [vmem:[#allocation3 + $0x18] sm:$0xff]  ;;  %v7445_v59 = vor.u32 %v1869_v49, %v1866_v25  ;;  %v773_v35 = vrot.slane %v771_v41, 5  ;;  %v983_v5 = vrot.slane %v981_v21, 4 }
  0xcd   : > { %1507 = vst.msk [vmem:[#allocation3 + $0x68] sm:$0xf] %vm1480_vm3, %v1425_v57  ;;  %v1880_v56 = vor.u32 %v1879_v51, %v1876_v50  ;;  %v987_v29 = vshll.u32 %v618_v53, 16  ;;  %v1855_v23 = vshrl.u32 %v1547_v4, 16  ;;  %v1858_v7 = vshll.u32 %v1547_v4, 16  ;;  %v6505_v2 = vld [vmem:[#allocation3 + $0x18] sm:$0xff] }
  0xce   : > { %1109 = vst.msk [vmem:[#allocation3 + $0x28] sm:$0xf] %vm525_vm12, %v764_v24  ;;  %v1872_v3 = vrot.slane %v7445_v59, 4  ;;  %v592_v34 = vld [vmem:[#allocation2 + $0x48] sm:$0xf]  ;;  %v984_v17 = vor.u32 %v983_v5, %v979_v55  ;;  %vm3145_vm14 = vcmask 60417  }
  0xcf   : > { %1127 = vst.msk [vmem:[#allocation3 + $0x70] sm:$0xf] %vm525_vm12, %v980_v8  ;;  %v1168_v11 = vld [vmem:[#allocation2 + $0x84] sm:$0xe]  ;;  %v989_v19 = vrot.slane %v987_v29, 5  ;;  %v1860_v12 = vrot.slane %v1858_v7, 6 }
  0xd0   : > { %1414 = vrot.lane.b32.xlu1 %v1322_v47, %s6621_s30  ;;  %v1881_v16 = vsel %vm6719_vm10, %v1872_v3, %v1880_v56  ;;  %1509 = vst.msk [vmem:[#allocation3 + $0x70] sm:$0xf] %vm1480_vm3, %v7410_v37  ;;  %v1550_v13 = vld [vmem:[#allocation2 + $0x84] sm:$0xe]  ;;  %v593_v24 = vld [vmem:[#allocation2 + $0x4c] sm:$0xf] }
  0xd1   : > { %2116 = vrot.lane.b32.xlu2 %v1853_v9, %s6622_s8  ;;  %558 = vst.msk [vmem:[#allocation2 + $0x8c] sm:$0x1] %vm527_vm13, %v448_v62  ;;  %v985_v37 = vrot.slane %v984_v17, 4  ;;  %v1883_v27 = vshrl.u32 %v1550_v13, 16  ;;  %v1886_v15 = vshll.u32 %v1550_v13, 16  ;;  %v776_v36 = vshrl.u32 %v592_v34, 16 }
  0xd2   : > { %v1427_v63 = vpop.permute.xlu1 %1426  ;;  %2120 = vrot.lane.b32.xlu0 %v1881_v16, %s6622_s8  ;;  %v6009_v9 = vrot.slane %v1168_v11, 9  ;;  %v779_v10 = vshll.u32 %v592_v34, 16  ;;  %v785_v31 = vshll.u32 %v593_v24, 16  ;;  %v7470_v33 = vld [vmem:[#allocation2 + $0x88] sm:$0xf]  ;;  %v7474_v18 = vpop.permute.xlu2 %1396  ;;  %vm5012_vm13 = vcmask 1043456  }
  0xd3   : > { %1508 = vst.msk [vmem:[#allocation3 + $0x6c] sm:$0xf] %vm1480_vm3, %v1427_v63  ;;  %6193 = vmatmul.msk.bf16.gmra.mxu2 %vm2347_vm7, %v6522_v46  ;;  %v990_v39 = vsel %vm7006_vm4, %v985_v37, %v989_v19  ;;  %v1551_v38 = vld [vmem:[#allocation2 + $0x88] sm:$0xf]  ;;  %v1325_v43 = vrot.slane %v7470_v33, 5  ;;  %v1885_v63 = vrot.slane %v1883_v27, 5 }
  0xd4   : > { %v2097_v1 = vpop.permute.xlu0 %2096  ;;  %2214 = vst.msk [vmem:[#allocation3 + $0x6c] sm:$0xf] %vm2186_vm5, %v7362_v30  ;;  %v768_v30 = vor.u32 %v767_v40, %v7415_v48  ;;  %v1857_v48 = vrot.slane %v1855_v23, 5  ;;  %v1892_v45 = vshrl.u32 %v1551_v38, 16  ;;  %v1895_v61 = vshll.u32 %v1551_v38, 16 }
  0xd5   : > { %2196 = vst.msk [vmem:[#allocation3 + $0x24] sm:$0xf] %vm2186_vm5, %v2097_v1  ;;  %v1888_v46 = vrot.slane %v1886_v15, 6  ;;  %v778_v49 = vrot.slane %v776_v36, 4  ;;  %v781_v26 = vrot.slane %v779_v10, 5  ;;  %v1326_v47 = vsel %vm6709_vm9, %v6009_v9, %v1325_v43 }
  0xd6   : > { %v769_v57 = vrot.slane %v768_v30, 4  ;;  %v1861_v42 = vor.u32 %v1860_v12, %v1857_v48  ;;  %1128 = vst.msk [vmem:[#allocation3 + $0x74] sm:$0xf] %vm525_vm12, %v990_v39  ;;  %v594_v55 = vld [vmem:[#allocation2 + $0x50] sm:$0x1]  ;;  %v1894_v51 = vrot.slane %v1892_v45, 5 }
  0xd7   : > { %v1897_v0 = vrot.slane %v1895_v61, 6  ;;  %v787_v52 = vrot.slane %v785_v31, 5  ;;  %v1889_v40 = vor.u32 %v1888_v46, %v1885_v63  ;;  %v620_v56 = vld [vmem:[#allocation2 + $0xb8] sm:$0xf]  ;;  %v621_v53 = vld [vmem:[#allocation2 + $0xbc] sm:$0x1]  ;;  %v782_v30 = vor.u32 %v781_v26, %v778_v49 }
  0xd8   : > { %v774_v54 = vsel %vm7006_vm4, %v769_v57, %v773_v35  ;;  %v1862_v25 = vrot.slane %v1861_v42, 4  ;;  %v1552_v50 = vld [vmem:[#allocation2 + $0x8c] sm:$0x3]  ;;  %1416 = vrot.lane.b32.xlu1 %v1326_v47, %s6621_s30  ;;  %v789_v35 = vshrl.u32 %v593_v24, 16  ;;  %v795_v4 = vshll.u32 %v594_v55, 16 }
  0xd9   : > { %1110 = vst.msk [vmem:[#allocation3 + $0x2c] sm:$0xf] %vm525_vm12, %v774_v54  ;;  %v1902_v1 = vshrl.u32 %v1552_v50, 16  ;;  %v1905_v60 = vshll.u32 %v1552_v50, 16  ;;  %v1898_v8 = vor.u32 %v1897_v0, %v1894_v51  ;;  %v619_v5 = vld [vmem:[#allocation2 + $0xb4] sm:$0xf] }
  0xda   : > { %v2131_v22 = vpop.permute.xlu1 %2130  ;;  %v1871_v41 = vsel %vm6719_vm10, %v1862_v25, %v7445_v59  ;;  %v1890_v7 = vrot.slane %v1889_v40, 4  ;;  %v1001_v16 = vshll.u32 %v620_v56, 16  ;;  %v783_v34 = vrot.slane %v782_v30, 4  ;;  %v1170_v54 = vld [vmem:[#allocation2 + $0x8c] sm:$0x1] }
  0xdb   : > { %2213 = vst.msk [vmem:[#allocation3 + $0x68] sm:$0xf] %vm2186_vm5, %v2131_v22  ;;  %6086 = vmatmul.msk.bf16.gmra.mxu0 %vm2347_vm7, %v6505_v2  ;;  %6111 = vmatmul.msk.bf16.gmra.mxu1 %vm2347_vm7, %v6505_v2  ;;  %v1904_v29 = vrot.slane %v1902_v1, 5  ;;  %v1907_v23 = vrot.slane %v1905_v60, 6  ;;  %v1900_v57 = vrot.slane %v1898_v8, 4  ;;  %v791_v11 = vrot.slane %v789_v35, 4 }
  0xdc   : > { %v1393_v28 = vpop.permute.xlu0 %1392  ;;  %v6523_v3 = vld [vmem:[#allocation3 + $0x20] sm:$0xff]  ;;  %2118 = vrot.lane.b32.xlu2 %v1871_v41, %s6622_s8  ;;  %v797_v17 = vrot.slane %v795_v4, 5  ;;  %v1899_v48 = vsel %vm6719_vm10, %v1890_v7, %v1898_v8  ;;  %v7496_v22 = vrot.slane %v1001_v16, 5  ;;  %v1005_v2 = vshrl.u32 %v620_v56, 16  ;;  %v595_v46 = vld [vmem:[#allocation2 + $0x54] sm:$0xf] }
  0xdd   : > { %1491 = vst.msk [vmem:[#allocation3 + $0x28] sm:$0xf] %vm1480_vm3, %v1393_v28  ;;  %v1908_v19 = vor.u32 %v1907_v23, %v1904_v29  ;;  %2122 = vrot.lane.b32.xlu0 %v1899_v48, %s6622_s8  ;;  %v792_v13 = vor.u32 %v791_v11, %v787_v52  ;;  %v1011_v12 = vshll.u32 %v621_v53, 16  ;;  %v992_v24 = vshrl.u32 %v619_v5, 16  ;;  %v596_v37 = vld [vmem:[#allocation2 + $0x58] sm:$0xf]  ;;  %v1435_v28 = vpop.permute.xlu2 %1434 }
  0xde   : > { %v597_v27 = vld [vmem:[#allocation2 + $0x5c] sm:$0x1]  ;;  %v1007_v36 = vrot.slane %v1005_v2, 4  ;;  %v995_v9 = vshll.u32 %v619_v5, 16  ;;  %v1327_v42 = vrot.slane %v1325_v43, 4  ;;  %v1328_v33 = vrot.slane %v1170_v54, 5 }
  0xdf   : > { %v1909_v15 = vsel %vm6719_vm10, %v1900_v57, %v1908_v19  ;;  %v1013_v10 = vrot.slane %v1011_v12, 5  ;;  %v994_v31 = vrot.slane %v992_v24, 4  ;;  %v6506_v39 = vld [vmem:[#allocation3 + $0x20] sm:$0xff]  ;;  %v809_v61 = vshll.u32 %v596_v37, 16  ;;  %v622_v55 = vld [vmem:[#allocation2 + $0xc0] sm:$0xf] }
  0xe0   : > { %2124 = vrot.lane.b32.xlu1 %v1909_v15, %s6622_s8  ;;  %v1008_v38 = vor.u32 %v1007_v36, %v7496_v22  ;;  %v997_v45 = vrot.slane %v995_v9, 5  ;;  %v813_v63 = vshrl.u32 %v596_v37, 16  ;;  %v819_v49 = vshll.u32 %v597_v27, 16  ;;  %v623_v47 = vld [vmem:[#allocation2 + $0xc4] sm:$0xf] }
  0xe1   : > { %v800_v26 = vshrl.u32 %v595_v46, 16  ;;  %v811_v0 = vrot.slane %v809_v61, 5  ;;  %v803_v41 = vshll.u32 %v595_v46, 16  ;;  %v1016_v56 = vshrl.u32 %v622_v55, 16  ;;  %v624_v16 = vld [vmem:[#allocation2 + $0xc8] sm:$0x1] }
  0xe2   : > { %v1395_v21 = vpop.permute.xlu1 %1394  ;;  %v7484_v62 = vld [vmem:[#allocation3 + $0x68] sm:$0xff]  ;;  %v1009_v50 = vrot.slane %v1008_v38, 4  ;;  %v998_v51 = vor.u32 %v997_v45, %v994_v31  ;;  %v821_v60 = vrot.slane %v819_v49, 5  ;;  %v1019_v8 = vshll.u32 %v622_v55, 16  ;;  %v610_v45 = vld [vmem:[#allocation2 + $0x90] sm:$0xf] }
  0xe3   : > { %1492 = vst.msk [vmem:[#allocation3 + $0x2c] sm:$0xf] %vm1480_vm3, %v1395_v21  ;;  %6096 = vmatmul.msk.bf16.vlgmr.msra.gmra.mxu3 %vm2347_vm7, %v7484_v62  ;;  %6194 = vmatmul.msk.bf16.gmra.mxu2 %vm2347_vm7, %v6523_v3  ;;  %v802_v40 = vrot.slane %v800_v26, 4  ;;  %v805_v30 = vrot.slane %v803_v41, 5  ;;  %v1018_v35 = vrot.slane %v1016_v56, 4  ;;  %v1025_v4 = vshll.u32 %v623_v47, 16 }
  0xe4   : > { %v1431_v59 = vpop.permute.xlu0 %1430  ;;  %2198 = vst.msk [vmem:[#allocation3 + $0x2c] sm:$0xf] %vm2186_vm5, %v7441_v58  ;;  %6592 = vmatpush.bf16.msra.mxu3 %v7287_v44  ;;  %v788_v58 = vsel %vm7006_vm4, %v783_v34, %v787_v52  ;;  %v793_v44 = vrot.slane %v792_v13, 4  ;;  %v815_v52 = vrot.slane %v813_v63, 4  ;;  %v1014_v53 = vsel %vm7006_vm4, %v1009_v50, %v1013_v10  ;;  %v599_v31 = vld [vmem:[#allocation2 + $0x64] sm:$0xf] }
  0xe5   : > { %1510 = vst.msk [vmem:[#allocation3 + $0x74] sm:$0xf] %vm1480_vm3, %v1431_v59  ;;  %v999_v21 = vrot.slane %v998_v51, 4  ;;  %v1029_v5 = vshrl.u32 %v623_v47, 16  ;;  %v1021_v7 = vrot.slane %v1019_v8, 5  ;;  %v806_v59 = vor.u32 %v805_v30, %v802_v40 }
  0xe6   : > { %1111 = vst.msk [vmem:[#allocation3 + $0x30] sm:$0xf] %vm525_vm12, %v788_v58  ;;  %v798_v43 = vsel %vm7006_vm4, %v793_v44, %v797_v17  ;;  %v816_v3 = vor.u32 %v815_v52, %v811_v0  ;;  %v1027_v57 = vrot.slane %v1025_v4, 5  ;;  %v1035_v11 = vshll.u32 %v624_v16, 16  ;;  %v2139_v17 = vpop.permute.xlu2 %2138  ;;  %v611_v26 = vld [vmem:[#allocation2 + $0x94] sm:$0xf] }
  0xe7   : > { %1493 = vst.msk [vmem:[#allocation3 + $0x30] sm:$0xf] %vm1480_vm3, %v7474_v18  ;;  %v1329_v18 = vsel %vm6709_vm9, %v1327_v42, %v1328_v33  ;;  %v1004_v29 = vsel %vm7006_vm4, %v999_v21, %v7496_v22  ;;  %v1031_v34 = vrot.slane %v1029_v5, 4  ;;  %v1022_v48 = vor.u32 %v1021_v7, %v1018_v35  ;;  %v598_v42 = vld [vmem:[#allocation2 + $0x60] sm:$0xf] }
  0xe8   : > { %1418 = vrot.lane.b32.xlu2 %v1329_v18, %s6621_s30  ;;  %1112 = vst.msk [vmem:[#allocation3 + $0x34] sm:$0xf] %vm525_vm12, %v798_v43  ;;  %v817_v23 = vrot.slane %v816_v3, 4  ;;  %v807_v58 = vrot.slane %v806_v59, 4  ;;  %v1037_v13 = vrot.slane %v1035_v11, 5  ;;  %v824_v33 = vshrl.u32 %v598_v42, 16 }
  0xe9   : > { %1130 = vst.msk [vmem:[#allocation3 + $0x7c] sm:$0xf] %vm525_vm12, %v1014_v53  ;;  %v1032_v22 = vor.u32 %v1031_v34, %v1027_v57  ;;  %v1023_v12 = vrot.slane %v1022_v48, 4  ;;  %v833_v38 = vshll.u32 %v599_v31, 16  ;;  %v920_v46 = vshrl.u32 %v610_v45, 16 }
  0xea   : > { %v2099_v25 = vpop.permute.xlu1 %2098  ;;  %1512 = vst.msk [vmem:[#allocation3 + $0x7c] sm:$0xf] %vm1480_vm3, %v1435_v28  ;;  %v822_v19 = vsel %vm7006_vm4, %v817_v23, %v821_v60  ;;  %v812_v37 = vsel %vm7006_vm4, %v807_v58, %v811_v0  ;;  %v826_v63 = vrot.slane %v824_v33, 4  ;;  %v837_v43 = vshrl.u32 %v599_v31, 16  ;;  %v600_v50 = vld [vmem:[#allocation2 + $0x68] sm:$0x1] }
  0xeb   : > { %2197 = vst.msk [vmem:[#allocation3 + $0x28] sm:$0xf] %vm2186_vm5, %v2099_v25  ;;  %6087 = vmatmul.msk.bf16.gmra.mxu0 %vm2347_vm7, %v6506_v39  ;;  %6112 = vmatmul.msk.bf16.gmra.mxu1 %vm2347_vm7, %v6506_v39  ;;  %v1033_v27 = vrot.slane %v1032_v22, 4  ;;  %v1028_v15 = vsel %vm7006_vm4, %v1023_v12, %v1027_v57  ;;  %v827_v39 = vshll.u32 %v598_v42, 16  ;;  %v923_v25 = vshll.u32 %v610_v45, 16 }
  0xec   : > { %v2135_v1 = vpop.permute.xlu0 %2134  ;;  %1129 = vst.msk [vmem:[#allocation3 + $0x78] sm:$0xf] %vm525_vm12, %v1004_v29  ;;  %v835_v49 = vrot.slane %v833_v38, 5  ;;  %v922_v55 = vrot.slane %v920_v46, 4  ;;  %v929_v0 = vshll.u32 %v611_v26, 16  ;;  %v839_v52 = vrot.slane %v837_v43, 4 }
  0xed   : > { %2215 = vst.msk [vmem:[#allocation3 + $0x70] sm:$0xf] %vm2186_vm5, %v2135_v1  ;;  %v1038_v36 = vsel %vm7006_vm4, %v1033_v27, %v1037_v13  ;;  %v829_v18 = vrot.slane %v827_v39, 5  ;;  %v925_v47 = vrot.slane %v923_v25, 5  ;;  %v843_v1 = vshll.u32 %v600_v50, 16 }
  0xee   : > { %1114 = vst.msk [vmem:[#allocation3 + $0x3c] sm:$0xf] %vm525_vm12, %v822_v19  ;;  %v931_v41 = vrot.slane %v929_v0, 5  ;;  %v840_v56 = vor.u32 %v839_v52, %v835_v49  ;;  %v933_v8 = vshrl.u32 %v611_v26, 16  ;;  %v612_v23 = vld [vmem:[#allocation2 + $0x98] sm:$0x1] }
  0xef   : > { %1113 = vst.msk [vmem:[#allocation3 + $0x38] sm:$0xf] %vm525_vm12, %v812_v37  ;;  %v830_v51 = vor.u32 %v829_v18, %v826_v63  ;;  %v926_v60 = vor.u32 %v925_v47, %v922_v55  ;;  %v845_v53 = vrot.slane %v843_v1, 5  ;;  %v939_v59 = vshll.u32 %v612_v23, 16  ;;  %v1568_v11 = vld [vmem:[#allocation2 + $0xcc] sm:$0xe] }
  0xf0   : > { %1131 = vst.msk [vmem:[#allocation3 + $0x80] sm:$0xf] %vm525_vm12, %v1028_v15  ;;  %v841_v4 = vrot.slane %v840_v56, 4  ;;  %v935_v7 = vrot.slane %v933_v8, 4  ;;  %v2051_v19 = vshrl.u32 %v1568_v11, 16  ;;  %v2054_v48 = vshll.u32 %v1568_v11, 16 }
  0xf1   : > { %1132 = vst.msk [vmem:[#allocation3 + $0x84] sm:$0xf] %vm525_vm12, %v1038_v36  ;;  %v831_v40 = vrot.slane %v830_v51, 4  ;;  %v927_v3 = vrot.slane %v926_v60, 4  ;;  %v941_v34 = vrot.slane %v939_v59, 5 }
  0xf2   : > { %v2137_v2 = vpop.permute.xlu1 %2136  ;;  %v6524_v54 = vld [vmem:[#allocation3 + $0x28] sm:$0xff]  ;;  %v846_v16 = vsel %vm7006_vm4, %v841_v4, %v845_v53  ;;  %v936_v57 = vor.u32 %v935_v7, %v931_v41  ;;  %v7563_v13 = vld [vmem:[#allocation2 + $0xd0] sm:$0xf]  ;;  %v2053_v12 = vrot.slane %v2051_v19, 5  ;;  %v1188_v27 = vld [vmem:[#allocation2 + $0xd4] sm:$0x1] }
  0xf3   : > { %2216 = vst.msk [vmem:[#allocation3 + $0x74] sm:$0xf] %vm2186_vm5, %v2137_v2  ;;  %6195 = vmatmul.msk.bf16.gmra.mxu2 %vm2347_vm7, %v6524_v54  ;;  %v6507_v28 = vld [vmem:[#allocation3 + $0x28] sm:$0xff]  ;;  %v1403_v9 = vpop.permute.xlu2 %1402  ;;  %v836_v35 = vsel %vm7006_vm4, %v831_v40, %v835_v49  ;;  %v932_v29 = vsel %vm7006_vm4, %v927_v3, %v931_v41  ;;  %v1569_v2 = vld [vmem:[#allocation2 + $0xd0] sm:$0xf]  ;;  %v1367_v15 = vrot.slane %v7563_v13, 5 }
  0xf4   : > { %v1399_v24 = vpop.permute.xlu0 %1398  ;;  %1496 = vst.msk [vmem:[#allocation3 + $0x3c] sm:$0xf] %vm1480_vm3, %v1403_v9  ;;  %v2060_v36 = vshrl.u32 %v1569_v2, 16  ;;  %v1370_v42 = vrot.slane %v1188_v27, 5  ;;  %v2063_v31 = vshll.u32 %v1569_v2, 16 }
  0xf5   : > { %1494 = vst.msk [vmem:[#allocation3 + $0x34] sm:$0xf] %vm1480_vm3, %v1399_v24  ;;  %v2056_v24 = vrot.slane %v2054_v48, 6  ;;  %v1369_v39 = vrot.slane %v1367_v15, 4  ;;  %v601_v45 = vld [vmem:[#allocation2 + $0x6c] sm:$0xf] }
  0xf6   : > { %1115 = vst.msk [vmem:[#allocation3 + $0x40] sm:$0xf] %vm525_vm12, %v836_v35  ;;  %v2062_v38 = vrot.slane %v2060_v36, 5  ;;  %v2065_v63 = vrot.slane %v2063_v31, 6  ;;  %v602_v46 = vld [vmem:[#allocation2 + $0x70] sm:$0xf] }
  0xf7   : > { %1123 = vst.msk [vmem:[#allocation3 + $0x60] sm:$0xf] %vm525_vm12, %v932_v29  ;;  %v1371_v25 = vsel %vm6709_vm9, %v1369_v39, %v1370_v42  ;;  %v848_v43 = vshrl.u32 %v601_v45, 16  ;;  %v851_v18 = vshll.u32 %v601_v45, 16  ;;  %v857_v49 = vshll.u32 %v602_v46, 16 }
  0xf8   : > { %1116 = vst.msk [vmem:[#allocation3 + $0x44] sm:$0xf] %vm525_vm12, %v846_v16  ;;  %1442 = vrot.lane.b32.xlu0 %v1371_v25, %s6621_s30  ;;  %v7584_v26 = vor.u32 %v2065_v63, %v2062_v38  ;;  %v861_v0 = vshrl.u32 %v602_v46, 16  ;;  %v603_v53 = vld [vmem:[#allocation2 + $0x74] sm:$0x1] }
  0xf9   : > { %v850_v55 = vrot.slane %v848_v43, 4  ;;  %v853_v47 = vrot.slane %v851_v18, 5  ;;  %v859_v1 = vrot.slane %v857_v49, 5  ;;  %v867_v3 = vshll.u32 %v603_v53, 16  ;;  %v604_v29 = vld [vmem:[#allocation2 + $0x78] sm:$0xf] }
  0xfa   : > { %v1433_v44 = vpop.permute.xlu1 %1432  ;;  %v7542_v10 = vld [vmem:[#allocation3 + $0x70] sm:$0xff]  ;;  %v863_v40 = vrot.slane %v861_v0, 4  ;;  %v872_v23 = vshrl.u32 %v604_v29, 16  ;;  %v875_v7 = vshll.u32 %v604_v29, 16  ;;  %v2068_v38 = vrot.slane %v7584_v26, 4 }
  0xfb   : > { %1511 = vst.msk [vmem:[#allocation3 + $0x78] sm:$0xf] %vm1480_vm3, %v1433_v44  ;;  %6088 = vmatmul.msk.bf16.gmra.mxu0 %vm2347_vm7, %v6507_v28  ;;  %6097 = vmatmul.msk.bf16.gmra.mxu3 %vm2347_vm7, %v7542_v10  ;;  %v2057_v44 = vor.u32 %v2056_v24, %v2053_v12  ;;  %v854_v52 = vor.u32 %v853_v47, %v850_v55  ;;  %v869_v35 = vrot.slane %v867_v3, 5  ;;  %v1570_v24 = vld [vmem:[#allocation2 + $0xd4] sm:$0x3] }
  0xfc   : > { %v2103_v61 = vpop.permute.xlu0 %2102  ;;  %2217 = vst.msk [vmem:[#allocation3 + $0x78] sm:$0xf] %vm2186_vm5, %v2139_v17  ;;  %6113 = vmatmul.msk.bf16.gmra.mxu1 %vm2347_vm7, %v6507_v28  ;;  %v2107_v30 = vpop.permute.xlu2 %2106  ;;  %v937_v17 = vrot.slane %v936_v57, 4  ;;  %v874_v19 = vrot.slane %v872_v23, 4  ;;  %v877_v48 = vrot.slane %v875_v7, 5  ;;  %v2073_v42 = vshll.u32 %v1570_v24, 16 }
  0xfd   : > { %2199 = vst.msk [vmem:[#allocation3 + $0x30] sm:$0xf] %vm2186_vm5, %v2103_v61  ;;  %v2058_v61 = vrot.slane %v2057_v44, 4  ;;  %v855_v56 = vrot.slane %v854_v52, 4  ;;  %v606_v45 = vld [vmem:[#allocation2 + $0x80] sm:$0x1] }
  0xfe   : > { %v942_v37 = vsel %vm7006_vm4, %v937_v17, %v941_v34  ;;  %v1186_v34 = vld [vmem:[#allocation2 + $0xcc] sm:$0xe]  ;;  %v605_v17 = vld [vmem:[#allocation2 + $0x7c] sm:$0xf]  ;;  %v891_v46 = vshll.u32 %v606_v45, 16 }
  0xff   : > { %1124 = vst.msk [vmem:[#allocation3 + $0x64] sm:$0xf] %vm525_vm12, %v942_v37  ;;  %v2067_v51 = vsel %vm6719_vm10, %v2058_v61, %v7584_v26  ;;  %v860_v8 = vsel %vm7006_vm4, %v855_v56, %v859_v1  ;;  %v6015_v11 = vrot.slane %v1186_v34, 9  ;;  %v881_v2 = vshll.u32 %v605_v17, 16  ;;  %v607_v47 = vld [vmem:[#allocation2 + $0x84] sm:$0xf] }
 0x100   : > { %2146 = vrot.lane.b32.xlu1 %v2067_v51, %s6622_s8  ;;  %1117 = vst.msk [vmem:[#allocation3 + $0x48] sm:$0xf] %vm525_vm12, %v860_v8  ;;  %v885_v44 = vshrl.u32 %v605_v17, 16  ;;  %v893_v49 = vrot.slane %v891_v46, 5  ;;  %v896_v51 = vshrl.u32 %v607_v47, 16  ;;  %v899_v0 = vshll.u32 %v607_v47, 16 }
 0x101   : > { %v883_v12 = vrot.slane %v881_v2, 5 }
 0x102   : > { %v2105_v21 = vpop.permute.xlu1 %2104  ;;  %v887_v39 = vrot.slane %v885_v44, 4  ;;  %v4132_v44 = vld [vmem:[#allocation2 + $0x4] sm:$0xf] }
 0x103   : > { %2200 = vst.msk [vmem:[#allocation3 + $0x34] sm:$0xf] %vm2186_vm5, %v2105_v21  ;;  %v864_v21 = vor.u32 %v863_v40, %v859_v1  ;;  %v898_v1 = vrot.slane %v896_v51, 4  ;;  %v608_v40 = vld [vmem:[#allocation2 + $0x88] sm:$0xf]  ;;  %v4198_v45 = vshll.u32 %v4132_v44, 16 }
 0x104   : > { %v2141_v5 = vpop.permute.xlu0 %2140  ;;  %v888_v63 = vor.u32 %v887_v39, %v883_v12  ;;  %v905_v56 = vshll.u32 %v608_v40, 16  ;;  %v909_v23 = vshrl.u32 %v608_v40, 16  ;;  %v4195_v39 = vshrl.u32 %v4132_v44, 16 }
 0x105   : > { %2218 = vst.msk [vmem:[#allocation3 + $0x7c] sm:$0xf] %vm2186_vm5, %v2141_v5 }
 0x106   : > { %v889_v18 = vrot.slane %v888_v63, 4  ;;  %v4197_v63 = vrot.slane %v4195_v39, 5 }
 0x108   : > { %v894_v26 = vsel %vm7006_vm4, %v889_v18, %v893_v49 }
 0x109   : > { %1120 = vst.msk [vmem:[#allocation3 + $0x54] sm:$0xf] %vm525_vm12, %v894_v26  ;;  %v3753_v26 = vld [vmem:[#allocation2 + $0x4] sm:$0xf] }
 0x10a   : > { %v1401_v54 = vpop.permute.xlu1 %1400  ;;  %v6508_v58 = vld [vmem:[#allocation3 + $0x30] sm:$0xff]  ;;  %v3862_v51 = vrot.slane %v3753_v26, 5 }
 0x10b   : > { %v6525_v22 = vld [vmem:[#allocation3 + $0x30] sm:$0xff]  ;;  %1495 = vst.msk [vmem:[#allocation3 + $0x38] sm:$0xf] %vm1480_vm3, %v1401_v54  ;;  %6089 = vmatmul.msk.bf16.gmra.mxu0 %vm2347_vm7, %v6508_v58  ;;  %v2145_v33 = vpop.permute.xlu2 %2144 }
 0x10c   : > { %v1437_v28 = vpop.permute.xlu0 %1436  ;;  %6196 = vmatmul.msk.bf16.gmra.mxu2 %vm2347_vm7, %v6525_v22  ;;  %v7571_v9 = vld [vmem:[#allocation3 + $0x78] sm:$0xff]  ;;  %2201 = vst.msk [vmem:[#allocation3 + $0x38] sm:$0xf] %vm2186_vm5, %v2107_v30  ;;  %6114 = vmatmul.msk.bf16.gmra.mxu1 %vm2347_vm7, %v6508_v58  ;;  %v865_v30 = vrot.slane %v864_v21, 4  ;;  %v1368_v58 = vsel %vm6709_vm9, %v6015_v11, %v1367_v15  ;;  %v878_v22 = vor.u32 %v877_v48, %v874_v19  ;;  %v907_v21 = vrot.slane %v905_v56, 5 }
 0x10d   : > { %1513 = vst.msk [vmem:[#allocation3 + $0x80] sm:$0xf] %vm1480_vm3, %v1437_v28  ;;  %6098 = vmatmul.msk.bf16.gmra.mxu3 %vm2347_vm7, %v7571_v9  ;;  %1440 = vrot.lane.b32.xlu2 %v1368_v58, %s6621_s30  ;;  %v2070_v28 = vshrl.u32 %v1570_v24, 16  ;;  %v911_v19 = vrot.slane %v909_v23, 4  ;;  %v609_v48 = vld [vmem:[#allocation2 + $0x8c] sm:$0x1] }
 0x10e   : > { %v870_v5 = vsel %vm7006_vm4, %v865_v30, %v869_v35  ;;  %v879_v36 = vrot.slane %v878_v22, 4  ;;  %v4868_v35 = vld [vmem:[%s8808_s3 + $0x8] sm:$0xf]  ;;  %v915_v22 = vshll.u32 %v609_v48, 16  ;;  %s6623_s30 = smov 16   ;;  %v3864_v56 = vrot.slane %v3862_v51, 4 }
 0x10f   : > { %1118 = vst.msk [vmem:[#allocation3 + $0x4c] sm:$0xf] %vm525_vm12, %v870_v5  ;;  %v2072_v15 = vrot.slane %v2070_v28, 5  ;;  %v5610_v5 = vld [vmem:[%s8810_s5] sm:$0x3]  ;;  %v912_v58 = vor.u32 %v911_v19, %v907_v21 }
 0x110   : > { %v884_v13 = vsel %vm7006_vm4, %v879_v36, %v883_v12  ;;  %v4131_v12 = vld [vmem:[#allocation2] sm:$0xe] }
 0x111   : > { %1119 = vst.msk [vmem:[#allocation3 + $0x50] sm:$0xf] %vm525_vm12, %v884_v13  ;;  %v4186_v24 = vshrl.u32 %v4131_v12, 16  ;;  %v913_v28 = vrot.slane %v912_v58, 4 }
 0x112   : > { %v1439_v50 = vpop.permute.xlu1 %1438 }
 0x113   : > { %1514 = vst.msk [vmem:[#allocation3 + $0x84] sm:$0xf] %vm1480_vm3, %v1439_v50  ;;  %v1421_v41 = vpop.permute.xlu2 %1420 }
 0x114   : > { %v2109_v60 = vpop.permute.xlu0 %2108  ;;  %2220 = vst.msk [vmem:[#allocation3 + $0x84] sm:$0xf] %vm2186_vm5, %v2145_v33  ;;  %v2075_v33 = vrot.slane %v2073_v42, 6  ;;  %v917_v42 = vrot.slane %v915_v22, 5 }
 0x115   : > { %2202 = vst.msk [vmem:[#allocation3 + $0x3c] sm:$0xf] %vm2186_vm5, %v2109_v60  ;;  %v901_v60 = vrot.slane %v899_v0, 5 }
 0x116   : > { %1505 = vst.msk [vmem:[#allocation3 + $0x60] sm:$0xf] %vm1480_vm3, %v1421_v41  ;;  %v2076_v61 = vor.u32 %v2075_v33, %v2072_v15  ;;  %v4188_v15 = vrot.slane %v4186_v24, 5 }
 0x117   : > { %v7624_v50 = vpop.f32.mrf.mxu1  ;;  %v902_v41 = vor.u32 %v901_v60, %v898_v1  ;;  %v3754_v1 = vld [vmem:[#allocation2 + $0x8] sm:$0x1] }
 0x118   : > { %v2077_v43 = vsel %vm6719_vm10, %v2068_v38, %v2076_v61  ;;  %v918_v38 = vsel %vm7006_vm4, %v913_v28, %v917_v42 }
 0x119   : > { %2148 = vrot.lane.b32.xlu2 %v2077_v43, %s6622_s8  ;;  %v903_v53 = vrot.slane %v902_v41, 4  ;;  %1122 = vst.msk [vmem:[#allocation3 + $0x5c] sm:$0xf] %vm525_vm12, %v918_v38  ;;  %v4200_v43 = vrot.slane %v4198_v45, 6 }
 0x11a   : > { %v2143_v4 = vpop.permute.xlu1 %2142 }
 0x11b   : > { %2219 = vst.msk [vmem:[#allocation3 + $0x80] sm:$0xf] %vm2186_vm5, %v2143_v4  ;;  %v2113_v54 = vpop.permute.xlu2 %2112  ;;  %v5115_v4 = vunpack.c.l.b16 %v4868_v35  ;;  %v908_v29 = vsel %vm7006_vm4, %v903_v53, %v907_v21  ;;  %v7659_v49 = vor.u32 %v4200_v43, %v4197_v63  ;;  %v3865_v53 = vrot.slane %v3754_v1, 5  ;;  %v7679_v35 = vld [vmem:[%s8807_s2] ss:$0 sm:$0xff] }
 0x11c   : > { %v6509_v16 = vld [vmem:[#allocation3 + $0x38] sm:$0xff]  ;;  %v1405_v57 = vpop.permute.xlu0 %1404  ;;  %1121 = vst.msk [vmem:[#allocation3 + $0x58] sm:$0xf] %vm525_vm12, %v908_v29 }
 0x11d   : > { %v6526_v59 = vld [vmem:[#allocation3 + $0x38] sm:$0xff]  ;;  %1497 = vst.msk [vmem:[#allocation3 + $0x40] sm:$0xf] %vm1480_vm3, %v1405_v57  ;;  %6090 = vmatmul.msk.bf16.gmra.mxu0 %vm2347_vm7, %v6509_v16  ;;  %6115 = vmatmul.msk.bf16.gmra.mxu1 %vm2347_vm7, %v6509_v16  ;;  %v5746_v16 = vsel %vm5744_vm8, %v5610_v5, 0  ;;  %v5117_v11 = vpack.c.b16 %v5115_v4, %v5115_v4 }
 0x11e   : > { %6197 = vmatmul.msk.bf16.gmra.mxu2 %vm2347_vm7, %v6526_v59  ;;  %v5248_v59 = vld [vmem:[%s8808_s3 + $0x20] sm:$0xf] }
 0x11f   : > { %v7644_v57 = vpop.f32.mrf.mxu1  ;;  %v5334_v17 = vunpack.c.l.b16 %v5248_v59  ;;  %5755 = vmatpush.bf16.msrb.mxu2 %v5746_v16  ;;  %v5123_v2 = vsel %vm5012_vm13, %v5117_v11, 0 }
 0x120   : > { %5131 = vmatpush.bf16.msrb.mxu0 %v5123_v2 }
 0x122   : > { %v1407_v37 = vpop.permute.xlu1 %1406  ;;  %v6519_v27 = vld [vmem:[#allocation3 + $0x80] sm:$0xff] }
 0x123   : > { %1498 = vst.msk [vmem:[#allocation3 + $0x44] sm:$0xf] %vm1480_vm3, %v1407_v37  ;;  %6099 = vmatmul.msk.bf16.gmra.mxu3 %vm2347_vm7, %v6519_v27  ;;  %v1409_v25 = vpop.permute.xlu2 %1408  ;;  %v4189_v37 = vshll.u32 %v4131_v12, 16 }
 0x124   : > { %v1423_v31 = vpop.permute.xlu0 %1422  ;;  %2204 = vst.msk [vmem:[#allocation3 + $0x44] sm:$0xf] %vm2186_vm5, %v2113_v54  ;;  %v5336_v54 = vpack.c.b16 %v5334_v17, %v5334_v17 }
 0x125   : > { %1506 = vst.msk [vmem:[#allocation3 + $0x64] sm:$0xf] %vm1480_vm3, %v1423_v31  ;;  %v4191_v33 = vrot.slane %v4189_v37, 6 }
 0x126   : > { %1499 = vst.msk [vmem:[#allocation3 + $0x48] sm:$0xf] %vm1480_vm3, %v1409_v25  ;;  %v5387_v36 = vsel %vm5012_vm13, %v5336_v54, 0 }
 0x127   : > { %5395 = vmatpush.bf16.msrb.mxu1 %v5387_v36  ;;  %v4192_v61 = vor.u32 %v4191_v33, %v4188_v15  ;;  %v4133_v15 = vld [vmem:[#allocation2 + $0x8] sm:$0x3] }
 0x128   : > { %v4205_v43 = vshrl.u32 %v4133_v15, 16 }
 0x129   : > { %v4193_v18 = vrot.slane %v4192_v61, 4 }
 0x12a   : > { %v2111_v55 = vpop.permute.xlu1 %2110 }
 0x12b   : > { %2203 = vst.msk [vmem:[#allocation3 + $0x40] sm:$0xf] %vm2186_vm5, %v2111_v55  ;;  %v2117_v7 = vpop.permute.xlu2 %2116  ;;  %v3752_v55 = vld [vmem:[#allocation2] sm:$0xe] }
 0x12c   : > { %v2127_v52 = vpop.permute.xlu0 %2126  ;;  %v6208_v47 = vrot.slane %v3752_v55, 9 }
 0x12d   : > { %2211 = vst.msk [vmem:[#allocation3 + $0x60] sm:$0xf] %vm2186_vm5, %v2127_v52  ;;  %v4202_v52 = vsel %vm6719_vm10, %v4193_v18, %v7659_v49 }
 0x12e   : > { %4689 = vrot.lane.b32.xlu0 %v4202_v52, %s6623_s30  ;;  %v3863_v41 = vsel %vm6709_vm9, %v6208_v47, %v3862_v51  ;;  %v4208_v52 = vshll.u32 %v4133_v15, 16 }
 0x12f   : > { %3986 = vrot.lane.b32.xlu1 %v3863_v41, %s6622_s8 }
 0x132   : > { %v2129_v3 = vpop.permute.xlu1 %2128  ;;  %v6510_v8 = vld [vmem:[#allocation3 + $0x40] sm:$0xff] }
 0x133   : > { %v6527_v30 = vld [vmem:[#allocation3 + $0x40] sm:$0xff]  ;;  %2212 = vst.msk [vmem:[#allocation3 + $0x64] sm:$0xf] %vm2186_vm5, %v2129_v3  ;;  %6091 = vmatmul.msk.bf16.gmra.mxu0 %vm2347_vm7, %v6510_v8  ;;  %6116 = vmatmul.msk.bf16.gmra.mxu1 %vm2347_vm7, %v6510_v8  ;;  %v3866_v3 = vsel %vm6709_vm9, %v3864_v56, %v3865_v53  ;;  %v7706_v56 = vrot.slane %v4205_v43, 5 }
 0x134   : > { %6198 = vmatmul.msk.bf16.gmra.mxu2 %vm2347_vm7, %v6527_v30  ;;  %v1411_v34 = vpop.permute.xlu0 %1410  ;;  %3988 = vrot.lane.b32.xlu2 %v3866_v3, %s6622_s8 }
 0x135   : > { %1500 = vst.msk [vmem:[#allocation3 + $0x4c] sm:$0xf] %vm1480_vm3, %v1411_v34 }
 0x136   : > { %2206 = vst.msk [vmem:[#allocation3 + $0x4c] sm:$0xf] %vm2186_vm5, %v2117_v7  ;;  %v2119_v25 = vpop.permute.xlu2 %2118 }
 0x138   : > { %v2409_v27 = vpop.f32.mrf.mxu0  ;;  %v2519_v46 = vpop.f32.mrf.mxu1 }
 0x139   : > { %v2515_v30 = vadd.f32 %v7624_v50, %v2409_v27 }
 0x13a   : > { %v2115_v31 = vpop.permute.xlu1 %2114  ;;  %v7651_v13 = vld [vmem:[#allocation3 + $0x60] sm:$0xff] }
 0x13b   : > { %2205 = vst.msk [vmem:[#allocation3 + $0x48] sm:$0xf] %vm2186_vm5, %v2115_v31  ;;  %6120 = vmatmul.msk.bf16.vlgmr.msrb.gmra.mxu3 %vm2347_vm7, %v7651_v13 }
 0x13c   : > { %v1413_v21 = vpop.permute.xlu0 %1412 }
 0x13d   : > { %1501 = vst.msk [vmem:[#allocation3 + $0x50] sm:$0xf] %vm1480_vm3, %v1413_v21 }
 0x13e   : > { %2207 = vst.msk [vmem:[#allocation3 + $0x50] sm:$0xf] %vm2186_vm5, %v2119_v25 }
 0x140   : > { %v2411_v0 = vpop.f32.mrf.mxu0  ;;  %v2521_v5 = vpop.f32.mrf.mxu1 }
 0x141   : > { %v2517_v34 = vadd.f32 %v7644_v57, %v2411_v0 }
 0x142   : > { %v6511_v60 = vld [vmem:[#allocation3 + $0x48] sm:$0xff]  ;;  %v1419_v8 = vpop.permute.xlu2 %1418  ;;  %v1415_v4 = vpop.permute.xlu1 %1414 }
 0x143   : > { %v6528_v40 = vld [vmem:[#allocation3 + $0x48] sm:$0xff]  ;;  %6092 = vmatmul.msk.bf16.gmra.mxu0 %vm2347_vm7, %v6511_v60  ;;  %6117 = vmatmul.msk.bf16.gmra.mxu1 %vm2347_vm7, %v6511_v60  ;;  %1502 = vst.msk [vmem:[#allocation3 + $0x54] sm:$0xf] %vm1480_vm3, %v1415_v4 }
 0x144   : > { %6199 = vmatmul.msk.bf16.gmra.mxu2 %vm2347_vm7, %v6528_v40  ;;  %1504 = vst.msk [vmem:[#allocation3 + $0x5c] sm:$0xf] %vm1480_vm3, %v1419_v8  ;;  %v2121_v50 = vpop.permute.xlu0 %2120 }
 0x145   : > { %2208 = vst.msk [vmem:[#allocation3 + $0x54] sm:$0xf] %vm2186_vm5, %v2121_v50 }
 0x146   : > { %v2773_v29 = vpop.f32.mrf.mxu2 }
 0x147   : > { %v2853_v23 = vadd.f32 %v2773_v29, %v2515_v30  ;;  %v4210_v29 = vrot.slane %v4208_v52, 6 }
 0x148   : > { %v2414_v7 = vpop.f32.mrf.mxu0  ;;  %v2524_v2 = vpop.f32.mrf.mxu1 }
 0x149   : > { %v2889_v16 = vadd.f32 %v7679_v35, %v2853_v23  ;;  %v2520_v37 = vadd.f32 %v2519_v46, %v2414_v7  ;;  %v4211_v43 = vor.u32 %v4210_v29, %v7706_v56 }
 0x14a   : > { %v1417_v22 = vpop.permute.xlu1 %1416 }
 0x14b   : > { %v2921_v59 = vmax.f32 %v2889_v16, 0.0  ;;  %6121 = vmatmul.msk.bf16.gmra.mxu3 %vm2347_vm7, %v7484_v62  ;;  %1503 = vst.msk [vmem:[#allocation3 + $0x58] sm:$0xf] %vm1480_vm3, %v1417_v22 }
 0x14c   : > { %v6512_v62 = vld [vmem:[#allocation3 + $0x50] sm:$0xff] }
 0x14d   : > { %v2953_v11 = vpack.c.bf16 %v2921_v59, %v2921_v59  ;;  %v6529_v24 = vld [vmem:[#allocation3 + $0x50] sm:$0xff] }
 0x14e   : > { %v2775_v17 = vpop.f32.mrf.mxu2 }
 0x14f   : > { %v3017_v19 = vrot.slane %v2953_v11, 7  ;;  %v2854_v48 = vadd.f32 %v2775_v17, %v2517_v34  ;;  %v2123_v44 = vpop.permute.xlu0 %2122 }
 0x150   : > { %v2416_v54 = vpop.f32.mrf.mxu0  ;;  %2209 = vst.msk [vmem:[#allocation3 + $0x58] sm:$0xf] %vm2186_vm5, %v2123_v44  ;;  %v7700_v63 = vpop.f32.mrf.mxu1 }
 0x151   : > { %3146 = vst.msk [vmem:[#allocation2 + $0xc] sm:$0xe] %vm3145_vm14, %v3017_v19  ;;  %v2890_v58 = vadd.f32 %v7679_v35, %v2854_v48  ;;  %v3018_v36 = vrot.slane %v3017_v19, 4  ;;  %v2522_v51 = vadd.f32 %v2521_v5, %v2416_v54  ;;  %v4203_v5 = vrot.slane %v7659_v49, 4 }
 0x152   : > { %v2125_v46 = vpop.permute.xlu1 %2124 }
 0x153   : > { %v2922_v12 = vmax.f32 %v2890_v58, 0.0  ;;  %6093 = vmatmul.msk.bf16.gmra.mxu0 %vm2347_vm7, %v6512_v62  ;;  %6118 = vmatmul.msk.bf16.gmra.mxu1 %vm2347_vm7, %v6512_v62  ;;  %2210 = vst.msk [vmem:[#allocation3 + $0x5c] sm:$0xf] %vm2186_vm5, %v2125_v46 }
 0x154   : > { %6200 = vmatmul.msk.bf16.gmra.mxu2 %vm2347_vm7, %v6529_v24 }
 0x155   : > { %v2954_v27 = vpack.c.bf16 %v2922_v12, %v2922_v12 }
 0x156   : > { %v2778_v57 = vpop.f32.mrf.mxu2 }
 0x157   : > { %v3019_v28 = vrot.slane %v2954_v27, 7  ;;  %v2855_v42 = vadd.f32 %v2778_v57, %v2520_v37 }
 0x158   : > { %v2419_v31 = vpop.f32.mrf.mxu0  ;;  %v4134_v45 = vld [vmem:[#allocation2 + $0xc] sm:$0xe]  ;;  %v7713_v58 = vpop.f32.mrf.mxu1 }
 0x159   : > { %v3020_v33 = vsel %vm6742_vm11, %v3018_v36, %v3019_v28  ;;  %v3021_v39 = vrot.slane %v3019_v28, 4  ;;  %v2891_v38 = vadd.f32 %v7679_v35, %v2855_v42  ;;  %v3197_v61 = vld [vmem:[#allocation2 + $0xc] sm:$0xf]  ;;  %v4214_v18 = vshrl.u32 %v4134_v45, 16 }
 0x15a   : > { %3147 = vst.msk [vmem:[#allocation2 + $0x10] sm:$0xf] %vm280_vm0, %v3020_v33  ;;  %v4217_v55 = vshll.u32 %v4134_v45, 16  ;;  %v3273_v26 = vshrl.u32 %v3197_v61, 16  ;;  %v3276_v47 = vshll.u32 %v3197_v61, 16  ;;  %v2525_v23 = vadd.f32 %v2524_v2, %v2419_v31  ;;  %v6513_v11 = vld [vmem:[#allocation3 + $0x58] sm:$0xff] }
 0x15b   : > { %3148 = vst.msk [vmem:[#allocation2 + $0x14] sm:$0x1] %vm289_vm15, %v3021_v39  ;;  %v2923_v25 = vmax.f32 %v2891_v38, 0.0  ;;  %6122 = vmatmul.msk.bf16.gmra.mxu3 %vm2347_vm7, %v7542_v10  ;;  %v3755_v41 = vld [vmem:[#allocation2 + $0xc] sm:$0xe]  ;;  %v4216_v21 = vrot.slane %v4214_v18, 5 }
 0x15c   : > { %v4219_v10 = vrot.slane %v4217_v55, 6  ;;  %v3275_v3 = vrot.slane %v3273_v26, 4  ;;  %v3278_v8 = vrot.slane %v3276_v47, 5  ;;  %v6209_v7 = vrot.slane %v3755_v41, 9  ;;  %v6530_v17 = vld [vmem:[#allocation3 + $0x58] sm:$0xff] }
 0x15d   : > { %v2955_v0 = vpack.c.bf16 %v2923_v25, %v2923_v25 }
 0x15e   : > { %v2780_v1 = vpop.f32.mrf.mxu2  ;;  %v4220_v62 = vor.u32 %v4219_v10, %v4216_v21  ;;  %v3279_v24 = vor.u32 %v3278_v8, %v3275_v3  ;;  %v4212_v3 = vsel %vm6719_vm10, %v4203_v5, %v4211_v43 }
 0x15f   : > { %v3022_v60 = vrot.slane %v2955_v0, 7  ;;  %v2856_v40 = vadd.f32 %v2780_v1, %v2522_v51 }
 0x160   : > { %v7708_v53 = vpop.f32.mrf.mxu0  ;;  %v4221_v46 = vrot.slane %v4220_v62, 4 }
 0x161   : > { %3149 = vst.msk [vmem:[#allocation2 + $0x18] sm:$0xe] %vm3145_vm14, %v3022_v60  ;;  %v2892_v30 = vadd.f32 %v7679_v35, %v2856_v40  ;;  %v3756_v4 = vld [vmem:[#allocation2 + $0x10] sm:$0xf]  ;;  %v3023_v28 = vrot.slane %v3022_v60, 4  ;;  %v3280_v40 = vrot.slane %v3279_v24, 4  ;;  %v2527_v10 = vadd.f32 %v7700_v63, %v7708_v53 }
 0x162   : > { %v3869_v16 = vrot.slane %v3756_v4, 5  ;;  %v3757_v59 = vld [vmem:[#allocation2 + $0x14] sm:$0x1]  ;;  %v4135_v50 = vld [vmem:[#allocation2 + $0x10] sm:$0xf] }
 0x163   : > { %v2924_v34 = vmax.f32 %v2892_v30, 0.0  ;;  %v3872_v19 = vrot.slane %v3757_v59, 5  ;;  %v4223_v48 = vshrl.u32 %v4135_v50, 16  ;;  %v4226_v54 = vshll.u32 %v4135_v50, 16  ;;  %v4136_v49 = vld [vmem:[#allocation2 + $0x14] sm:$0x3]  ;;  %6094 = vmatmul.msk.bf16.gmra.mxu0 %vm2347_vm7, %v6513_v11  ;;  %6119 = vmatmul.msk.bf16.gmra.mxu1 %vm2347_vm7, %v6513_v11 }
 0x164   : > { %v3870_v22 = vsel %vm6709_vm9, %v6209_v7, %v3869_v16  ;;  %v3871_v12 = vrot.slane %v3869_v16, 4  ;;  %v7717_v2 = vld [vmem:[#allocation2 + $0x10] sm:$0xf]  ;;  %v4233_v36 = vshrl.u32 %v4136_v49, 16  ;;  %6201 = vmatmul.msk.bf16.gmra.mxu2 %vm2347_vm7, %v6530_v17  ;;  %v4236_v31 = vshll.u32 %v4136_v49, 16  ;;  %v2531_v16 = vpop.f32.mrf.mxu1 }
 0x165   : > { %v2956_v37 = vpack.c.bf16 %v2924_v34, %v2924_v34  ;;  %v4225_v27 = vrot.slane %v4223_v48, 5  ;;  %v4228_v57 = vrot.slane %v4226_v54, 6  ;;  %3990 = vrot.lane.b32.xlu0 %v3870_v22, %s6622_s8  ;;  %v3282_v15 = vshll.u32 %v7717_v2, 16  ;;  %v7747_v30 = vld [vmem:[#allocation2 + $0x14] sm:$0x1] }
 0x166   : > { %v2783_v42 = vpop.f32.mrf.mxu2  ;;  %v3873_v44 = vsel %vm6709_vm9, %v3871_v12, %v3872_v19  ;;  %v4235_v45 = vrot.slane %v4233_v36, 5  ;;  %v4238_v25 = vrot.slane %v4236_v31, 6  ;;  %v3286_v59 = vshrl.u32 %v7717_v2, 16  ;;  %v7761_v31 = vpop.f32.mrf.mxu3 }
 0x167   : > { %v3024_v33 = vrot.slane %v2956_v37, 7  ;;  %v2857_v39 = vadd.f32 %v2783_v42, %v2525_v23  ;;  %3992 = vrot.lane.b32.xlu1 %v3873_v44, %s6622_s8  ;;  %v4229_v38 = vor.u32 %v4228_v57, %v4225_v27  ;;  %v7728_v55 = vrot.slane %v3282_v15, 5  ;;  %v6531_v15 = vld [vmem:[#allocation3 + $0x60] sm:$0xff] }
 0x168   : > { %v2424_v61 = vpop.f32.mrf.mxu0  ;;  %v4137_v18 = vld [vmem:[#allocation2 + $0x18] sm:$0xe]  ;;  %v4239_v1 = vor.u32 %v4238_v25, %v4235_v45  ;;  %v3292_v19 = vshll.u32 %v7747_v30, 16  ;;  %v7759_v27 = vrot.slane %v3286_v59, 4 }
 0x169   : > { %v3025_v26 = vsel %vm6742_vm11, %v3023_v28, %v3024_v33  ;;  %v3026_v47 = vrot.slane %v3024_v33, 4  ;;  %v2893_v51 = vadd.f32 %v7679_v35, %v2857_v39  ;;  %v4230_v0 = vsel %vm6719_vm10, %v4221_v46, %v4229_v38  ;;  %v3200_v60 = vld [vmem:[#allocation2 + $0x18] sm:$0xf] }
 0x16a   : > { %3150 = vst.msk [vmem:[#allocation2 + $0x1c] sm:$0xf] %vm280_vm0, %v3025_v26  ;;  %v4231_v52 = vrot.slane %v4229_v38, 4  ;;  %4693 = vrot.lane.b32.xlu2 %v4230_v0, %s6623_s30  ;;  %v4242_v56 = vshrl.u32 %v4137_v18, 16  ;;  %v4245_v21 = vshll.u32 %v4137_v18, 16  ;;  %v3285_v8 = vsel %vm7006_vm4, %v3280_v40, %v7728_v55 }
 0x16b   : > { %3151 = vst.msk [vmem:[#allocation2 + $0x20] sm:$0x1] %vm289_vm15, %v3026_v47  ;;  %v2925_v41 = vmax.f32 %v2893_v51, 0.0  ;;  %6123 = vmatmul.msk.bf16.gmra.mxu3 %vm2347_vm7, %v7571_v9  ;;  %v3758_v23 = vld [vmem:[#allocation2 + $0x18] sm:$0xe]  ;;  %v3297_v9 = vshrl.u32 %v3200_v60, 16  ;;  %v2530_v62 = vadd.f32 %v7713_v58, %v2424_v61 }
 0x16c   : > { %v4240_v29 = vsel %vm6719_vm10, %v4231_v52, %v4239_v1  ;;  %v3300_v7 = vshll.u32 %v3200_v60, 16  ;;  %3718 = vst.msk [vmem:[#allocation3 + $0x8] sm:$0xf] %vm280_vm0, %v3285_v8  ;;  %v4244_v53 = vrot.slane %v4242_v56, 5  ;;  %v4247_v5 = vrot.slane %v4245_v21, 6  ;;  %v7775_v40 = vpop.f32.mrf.mxu1 }
 0x16d   : > { %v2957_v4 = vpack.c.bf16 %v2925_v41, %v2925_v41  ;;  %4695 = vrot.lane.b32.xlu0 %v4240_v29, %s6623_s30  ;;  %v6210_v17 = vrot.slane %v3758_v23, 9  ;;  %v3299_v22 = vrot.slane %v3297_v9, 4  ;;  %v625_v8 = vld [vmem:[#allocation2 + $0xcc] sm:$0xf] }
 0x16e   : > { %v2785_v63 = vpop.f32.mrf.mxu2  ;;  %v3302_v12 = vrot.slane %v3300_v7, 5  ;;  %v4248_v37 = vor.u32 %v4247_v5, %v4244_v53  ;;  %v6533_v7 = vld [vmem:[#allocation3 + $0x70] sm:$0xff] }
 0x16f   : > { %v3027_v50 = vrot.slane %v2957_v4, 7  ;;  %v2858_v34 = vadd.f32 %v2785_v63, %v2527_v10  ;;  %4691 = vrot.lane.b32.xlu1 %v4212_v3, %s6623_s30  ;;  %v3289_v4 = vor.u32 %v7759_v27, %v7728_v55  ;;  %v626_v63 = vld [vmem:[#allocation2 + $0xd0] sm:$0xf] }
 0x170   : > { %v2426_v11 = vpop.f32.mrf.mxu0  ;;  %v3303_v43 = vor.u32 %v3302_v12, %v3299_v22  ;;  %v4249_v21 = vrot.slane %v4248_v37, 4  ;;  %v1049_v22 = vshll.u32 %v626_v63, 16  ;;  %v1053_v12 = vshrl.u32 %v626_v63, 16 }
 0x171   : > { %3152 = vst.msk [vmem:[#allocation2 + $0x24] sm:$0xe] %vm3145_vm14, %v3027_v50  ;;  %v2894_v48 = vadd.f32 %v7679_v35, %v2858_v34  ;;  %v3759_v54 = vld [vmem:[#allocation2 + $0x1c] sm:$0xf]  ;;  %v3028_v52 = vrot.slane %v3027_v50, 4  ;;  %v2532_v41 = vadd.f32 %v2531_v16, %v2426_v11  ;;  %v1040_v11 = vshrl.u32 %v625_v8, 16 }
 0x172   : > { %v3876_v49 = vrot.slane %v3759_v54, 5  ;;  %v3760_v24 = vld [vmem:[#allocation2 + $0x20] sm:$0x1]  ;;  %v4138_v2 = vld [vmem:[#allocation2 + $0x1c] sm:$0xf]  ;;  %v3304_v53 = vrot.slane %v3303_v43, 4  ;;  %v1441_v43 = vpop.permute.xlu2 %1440 }
 0x173   : > { %v2926_v57 = vmax.f32 %v2894_v48, 0.0  ;;  %v3879_v36 = vrot.slane %v3760_v24, 5  ;;  %v4251_v28 = vshrl.u32 %v4138_v2, 16  ;;  %v4254_v42 = vshll.u32 %v4138_v2, 16  ;;  %v4139_v44 = vld [vmem:[#allocation2 + $0x20] sm:$0x3]  ;;  %6095 = vmatmul.msk.bf16.gmra.mxu0 %vm2347_vm7, %v7651_v13 }
 0x174   : > { %v3877_v33 = vsel %vm6709_vm9, %v6210_v17, %v3876_v49  ;;  %v3878_v39 = vrot.slane %v3876_v49, 4  ;;  %v4261_v38 = vshrl.u32 %v4139_v44, 16  ;;  %v4264_v58 = vshll.u32 %v4139_v44, 16  ;;  %v7765_v45 = vld [vmem:[#allocation2 + $0x1c] sm:$0xf]  ;;  %6202 = vmatmul.msk.bf16.gmra.mxu2 %vm2347_vm7, %v6531_v15  ;;  %v7814_v30 = vpop.f32.mrf.mxu1 }
 0x175   : > { %v2958_v61 = vpack.c.bf16 %v2926_v57, %v2926_v57  ;;  %3994 = vrot.lane.b32.xlu2 %v3877_v33, %s6622_s8  ;;  %v4253_v46 = vrot.slane %v4251_v28, 5  ;;  %v4256_v25 = vrot.slane %v4254_v42, 6  ;;  %v3306_v0 = vshll.u32 %v7765_v45, 16  ;;  %v7797_v57 = vpop.f32.mrf.mxu3  ;;  %v7802_v33 = vld [vmem:[#allocation2 + $0x20] sm:$0x1] }
 0x176   : > { %v2788_v18 = vpop.f32.mrf.mxu2  ;;  %v3880_v26 = vsel %vm6709_vm9, %v3878_v39, %v3879_v36  ;;  %v4263_v47 = vrot.slane %v4261_v38, 5  ;;  %v4266_v51 = vrot.slane %v4264_v58, 6  ;;  %v1043_v17 = vshll.u32 %v625_v8, 16 }
 0x177   : > { %v3029_v1 = vrot.slane %v2958_v61, 7  ;;  %v2859_v60 = vadd.f32 %v2788_v18, %v2530_v62  ;;  %3996 = vrot.lane.b32.xlu0 %v3880_v26, %s6622_s8  ;;  %v4257_v13 = vor.u32 %v4256_v25, %v4253_v46  ;;  %v7787_v50 = vrot.slane %v3306_v0, 5  ;;  %v627_v62 = vld [vmem:[#allocation2 + $0xd4] sm:$0x1] }
 0x178   : > { %v7777_v56 = vpop.f32.mrf.mxu0  ;;  %v4267_v10 = vor.u32 %v4266_v51, %v4263_v47  ;;  %v4140_v3 = vld [vmem:[#allocation2 + $0x24] sm:$0xe]  ;;  %v1042_v37 = vrot.slane %v1040_v11, 4  ;;  %v1045_v27 = vrot.slane %v1043_v17, 5  ;;  %v1051_v28 = vrot.slane %v1049_v22, 5  ;;  %v2147_v11 = vpop.permute.xlu1 %2146 }
 0x179   : > { %v3030_v29 = vsel %vm6742_vm11, %v3028_v52, %v3029_v1  ;;  %v3031_v23 = vrot.slane %v3029_v1, 4  ;;  %v2895_v9 = vadd.f32 %v7679_v35, %v2859_v60  ;;  %v4258_v16 = vsel %vm6719_vm10, %v4249_v21, %v4257_v13  ;;  %v3761_v24 = vld [vmem:[#allocation2 + $0x24] sm:$0xe] }
 0x17a   : > { %3153 = vst.msk [vmem:[#allocation2 + $0x28] sm:$0xf] %vm280_vm0, %v3030_v29  ;;  %v4259_v5 = vrot.slane %v4257_v13, 4  ;;  %v4270_v59 = vshrl.u32 %v4140_v3, 16  ;;  %4697 = vrot.lane.b32.xlu1 %v4258_v16, %s6623_s30  ;;  %v4273_v34 = vshll.u32 %v4140_v3, 16  ;;  %v1055_v42 = vrot.slane %v1053_v12, 4 }
 0x17b   : > { %3154 = vst.msk [vmem:[#allocation2 + $0x2c] sm:$0x1] %vm289_vm15, %v3031_v23  ;;  %v2927_v55 = vmax.f32 %v2895_v9, 0.0  ;;  %6204 = vmatmul.msk.bf16.vlgmr.msra.gmra.mxu3 %vm2347_vm7, %v6533_v7  ;;  %v1059_v44 = vshll.u32 %v627_v62, 16  ;;  %v3309_v15 = vsel %vm7006_vm4, %v3304_v53, %v7787_v50  ;;  %v1046_v58 = vor.u32 %v1045_v27, %v1042_v37  ;;  %v6532_v9 = vld [vmem:[#allocation3 + $0x68] sm:$0xff] }
 0x17c   : > { %v4268_v48 = vsel %vm6719_vm10, %v4259_v5, %v4267_v10  ;;  %v7794_v54 = vrot.slane %v4270_v59, 5  ;;  %v4275_v2 = vrot.slane %v4273_v34, 6  ;;  %3720 = vst.msk [vmem:[#allocation3 + $0x10] sm:$0xf] %vm280_vm0, %v3309_v15  ;;  %v3294_v61 = vrot.slane %v3292_v19, 5 }
 0x17d   : > { %v2959_v49 = vpack.c.bf16 %v2927_v55, %v2927_v55  ;;  %4699 = vrot.lane.b32.xlu2 %v4268_v48, %s6623_s30  ;;  %v6211_v25 = vrot.slane %v3761_v24, 9  ;;  %v1061_v18 = vrot.slane %v1059_v44, 5  ;;  %v3310_v26 = vshrl.u32 %v7765_v45, 16  ;;  %v7830_v62 = vld [vmem:[#allocation2 + $0x24] sm:$0xf] }
 0x17e   : > { %v2790_v36 = vpop.f32.mrf.mxu2  ;;  %v3290_v47 = vrot.slane %v3289_v4, 4  ;;  %v4276_v1 = vor.u32 %v4275_v2, %v7794_v54  ;;  %v3316_v60 = vshll.u32 %v7802_v33, 16  ;;  %v1047_v21 = vrot.slane %v1046_v58, 4  ;;  %v7824_v17 = vpop.f32.mrf.mxu3 }
 0x17f   : > { %v3032_v39 = vrot.slane %v2959_v49, 7  ;;  %v2860_v38 = vadd.f32 %v2790_v36, %v2532_v41  ;;  %v1056_v10 = vor.u32 %v1055_v42, %v1051_v28  ;;  %v3312_v37 = vrot.slane %v3310_v26, 4 }
 0x180   : > { %v7807_v46 = vpop.f32.mrf.mxu0  ;;  %v3295_v45 = vsel %vm7006_vm4, %v3290_v47, %v3294_v61  ;;  %v1052_v34 = vsel %vm7006_vm4, %v1047_v21, %v1051_v28  ;;  %v4277_v24 = vrot.slane %v4276_v1, 4  ;;  %v3318_v47 = vrot.slane %v3316_v60, 5 }
 0x181   : > { %v3033_v51 = vrot.slane %v3032_v39, 4  ;;  %3155 = vst.msk [vmem:[#allocation2 + $0x30] sm:$0xe] %vm3145_vm14, %v3032_v39  ;;  %v2896_v0 = vadd.f32 %v7679_v35, %v2860_v38  ;;  %v3762_v52 = vld [vmem:[#allocation2 + $0x28] sm:$0xf]  ;;  %v1057_v12 = vrot.slane %v1056_v10, 4  ;;  %v1443_v38 = vpop.permute.xlu0 %1442  ;;  %v2535_v21 = vadd.f32 %v7775_v40, %v7777_v56 }
 0x182   : > { %v3883_v19 = vrot.slane %v3762_v52, 5  ;;  %v3763_v13 = vld [vmem:[#allocation2 + $0x2c] sm:$0x1]  ;;  %v4141_v41 = vld [vmem:[#allocation2 + $0x28] sm:$0xf]  ;;  %v6534_v39 = vld [vmem:[#allocation3 + $0x78] sm:$0xff]  ;;  %v7853_v52 = vpop.f32.mrf.mxu1  ;;  %v2537_v60 = vadd.f32 %v7814_v30, %v7807_v46 }
 0x183   : > { %v2928_v3 = vmax.f32 %v2896_v0, 0.0  ;;  %v3886_v8 = vrot.slane %v3763_v13, 5  ;;  %v4279_v4 = vshrl.u32 %v4141_v41, 16  ;;  %v4282_v29 = vshll.u32 %v4141_v41, 16  ;;  %v4142_v23 = vld [vmem:[#allocation2 + $0x2c] sm:$0x3] }
 0x184   : > { %v3884_v7 = vsel %vm6709_vm9, %v6211_v25, %v3883_v19  ;;  %v3885_v63 = vrot.slane %v3883_v19, 4  ;;  %v4289_v53 = vshrl.u32 %v4142_v23, 16  ;;  %v4292_v16 = vshll.u32 %v4142_v23, 16  ;;  %3719 = vst.msk [vmem:[#allocation3 + $0xc] sm:$0xf] %vm280_vm0, %v3295_v45  ;;  %6203 = vmatmul.msk.bf16.gmra.mxu2 %vm2347_vm7, %v6532_v9 }
 0x185   : > { %v2960_v5 = vpack.c.bf16 %v2928_v3, %v2928_v3  ;;  %3998 = vrot.lane.b32.xlu0 %v3884_v7, %s6622_s8  ;;  %v4281_v59 = vrot.slane %v4279_v4, 5  ;;  %v4284_v55 = vrot.slane %v4282_v29, 6  ;;  %1133 = vst.msk [vmem:[#allocation3 + $0x88] sm:$0xf] %vm525_vm12, %v1052_v34  ;;  %v1062_v42 = vsel %vm7006_vm4, %v1057_v12, %v1061_v18  ;;  %v2149_v18 = vpop.permute.xlu2 %2148  ;;  %v3246_v41 = vld [vmem:[#allocation2 + $0xd0] sm:$0xf] }
 0x186   : > { %v3887_v48 = vsel %vm6709_vm9, %v3885_v63, %v3886_v8  ;;  %v4291_v54 = vrot.slane %v4289_v53, 5  ;;  %v4294_v22 = vrot.slane %v4292_v16, 6  ;;  %1515 = vst.msk [vmem:[#allocation3 + $0x88] sm:$0xf] %vm1480_vm3, %v1441_v43  ;;  %v3321_v0 = vshrl.u32 %v7830_v62, 16  ;;  %v7867_v46 = vpop.f32.mrf.mxu3 }
 0x187   : > { %v3034_v49 = vrot.slane %v2960_v5, 7  ;;  %4000 = vrot.lane.b32.xlu1 %v3887_v48, %s6622_s8  ;;  %v4285_v2 = vor.u32 %v4284_v55, %v4281_v59  ;;  %2221 = vst.msk [vmem:[#allocation3 + $0x88] sm:$0xf] %vm2186_vm5, %v2147_v11  ;;  %v3666_v10 = vshll.u32 %v3246_v41, 16  ;;  %v3670_v45 = vshrl.u32 %v3246_v41, 16  ;;  %v6573_v41 = vld [vmem:[%s8808_s3 + $0x18] sm:$0xff] }
 0x188   : > { %v4295_v27 = vor.u32 %v4294_v22, %v4291_v54  ;;  %v7834_v36 = vld [vmem:[#allocation2 + $0x30] sm:$0xe]  ;;  %1134 = vst.msk [vmem:[#allocation3 + $0x8c] sm:$0xf] %vm525_vm12, %v1062_v42  ;;  %v7845_v58 = vpop.f32.mrf.mxu0  ;;  %v3245_v29 = vld [vmem:[#allocation2 + $0xcc] sm:$0xf]  ;;  %5396 = vmatpush.bf16.msrb.mxu1 %v6573_v41 }
 0x189   : > { %v4143_v28 = vld [vmem:[#allocation2 + $0x30] sm:$0xe]  ;;  %v3035_v44 = vsel %vm6742_vm11, %v3033_v51, %v3034_v49  ;;  %v3036_v15 = vrot.slane %v3034_v49, 4  ;;  %v4286_v33 = vsel %vm6719_vm10, %v4277_v24, %v4285_v2  ;;  %v4287_v61 = vrot.slane %v4285_v2, 4  ;;  %1516 = vst.msk [vmem:[#allocation3 + $0x8c] sm:$0xf] %vm1480_vm3, %v1443_v38 }
 0x18a   : > { %3156 = vst.msk [vmem:[#allocation2 + $0x34] sm:$0xf] %vm280_vm0, %v3035_v44  ;;  %4701 = vrot.lane.b32.xlu2 %v4286_v33, %s6623_s30  ;;  %v4298_v25 = vshrl.u32 %v4143_v28, 16  ;;  %v4301_v43 = vshll.u32 %v4143_v28, 16  ;;  %v6212_v26 = vrot.slane %v7834_v36, 9  ;;  %v3313_v51 = vor.u32 %v3312_v37, %v7787_v50 }
 0x18b   : > { %3157 = vst.msk [vmem:[#allocation2 + $0x38] sm:$0x1] %vm289_vm15, %v3036_v15  ;;  %6205 = vmatmul.msk.bf16.gmra.mxu3 %vm2347_vm7, %v6534_v39  ;;  %v4296_v1 = vsel %vm6719_vm10, %v4287_v61, %v4295_v27  ;;  %v3247_v50 = vld [vmem:[#allocation2 + $0xd4] sm:$0x1]  ;;  %v3324_v9 = vshll.u32 %v7830_v62, 16  ;;  %v7865_v63 = vrot.slane %v3666_v10, 5 }
 0x18c   : > { %v4300_v19 = vrot.slane %v4298_v25, 5  ;;  %v4303_v13 = vrot.slane %v4301_v43, 6  ;;  %2222 = vst.msk [vmem:[#allocation3 + $0x8c] sm:$0xf] %vm2186_vm5, %v2149_v18  ;;  %v3676_v4 = vshll.u32 %v3247_v50, 16  ;;  %v3314_v23 = vrot.slane %v3313_v51, 4  ;;  %v7885_v51 = vpop.f32.mrf.mxu1 }
 0x18d   : > { %4703 = vrot.lane.b32.xlu0 %v4296_v1, %s6623_s30  ;;  %v3672_v40 = vrot.slane %v3670_v45, 4  ;;  %v3657_v56 = vshrl.u32 %v3245_v29, 16  ;;  %v3660_v16 = vshll.u32 %v3245_v29, 16  ;;  %v7869_v5 = vrot.slane %v3321_v0, 4  ;;  %v3204_v38 = vld [vmem:[#allocation2 + $0x28] sm:$0xf] }
 0x18e   : > { %v4304_v8 = vor.u32 %v4303_v13, %v4300_v19  ;;  %v3678_v53 = vrot.slane %v3676_v4, 5  ;;  %v3319_v54 = vsel %vm7006_vm4, %v3314_v23, %v3318_v47  ;;  %v3326_v28 = vrot.slane %v3324_v9, 5  ;;  %v6554_v13 = vld [vmem:[%s8808_s3] sm:$0xff] }
 0x18f   : > { %v2793_v3 = vpop.f32.mrf.mxu2  ;;  %v3673_v11 = vor.u32 %v3672_v40, %v7865_v63  ;;  %v3659_v48 = vrot.slane %v3657_v56, 4  ;;  %v3662_v24 = vrot.slane %v3660_v16, 5  ;;  %3721 = vst.msk [vmem:[#allocation3 + $0x14] sm:$0xf] %vm280_vm0, %v3319_v54  ;;  %5132 = vmatpush.bf16.msrb.mxu0 %v6554_v13  ;;  %v3330_v9 = vshll.u32 %v3204_v38, 16 }
 0x190   : > { %v2861_v7 = vadd.f32 %v2793_v3, %v2535_v21  ;;  %v4305_v30 = vrot.slane %v4304_v8, 4  ;;  %v7875_v42 = vpop.f32.mrf.mxu0  ;;  %v7902_v16 = vpop.f32.mrf.mxu3  ;;  %vm4094_vm12 = vcmask 126016   ;;  %vm4963_vm3 = vcmask 195584  }
 0x191   : > { %v3765_v55 = vld [vmem:[#allocation2 + $0x34] sm:$0xf]  ;;  %v3674_v36 = vrot.slane %v3673_v11, 4  ;;  %v3663_v19 = vor.u32 %v3662_v24, %v3659_v48  ;;  %v3206_v11 = vld [vmem:[#allocation2 + $0x30] sm:$0xf]  ;;  %v3334_v24 = vshrl.u32 %v3204_v38, 16 }
 0x192   : > { %v2897_v59 = vadd.f32 %v7679_v35, %v2861_v7  ;;  %v4144_v34 = vld [vmem:[#allocation2 + $0x34] sm:$0xf]  ;;  %v3890_v22 = vrot.slane %v3765_v55, 5  ;;  %v3766_v12 = vld [vmem:[#allocation2 + $0x38] sm:$0x1] }
 0x193   : > { %v4307_v62 = vshrl.u32 %v4144_v34, 16  ;;  %v4310_v49 = vshll.u32 %v4144_v34, 16  ;;  %v3893_v37 = vrot.slane %v3766_v12, 5  ;;  %v4145_v27 = vld [vmem:[#allocation2 + $0x38] sm:$0x3]  ;;  %v3679_v18 = vsel %vm7006_vm4, %v3674_v36, %v3678_v53 }
 0x194   : > { %v2929_v2 = vmax.f32 %v2897_v59, 0.0  ;;  %v3891_v44 = vsel %vm6709_vm9, %v6212_v26, %v3890_v22  ;;  %v3892_v15 = vrot.slane %v3890_v22, 4  ;;  %v4317_v25 = vshrl.u32 %v4145_v27, 16  ;;  %v7882_v47 = vld [vmem:[#allocation3 + $0x88] sm:$0xf0] }
 0x195   : > { %v4309_v33 = vrot.slane %v4307_v62, 5  ;;  %v4312_v39 = vrot.slane %v4310_v49, 6  ;;  %4002 = vrot.lane.b32.xlu1 %v3891_v44, %s6622_s8  ;;  %v4320_v43 = vshll.u32 %v4145_v27, 16  ;;  %3751 = vst.msk [vmem:[#allocation3 + $0x8c] sm:$0xf] %vm280_vm0, %v3679_v18  ;;  %v3664_v29 = vrot.slane %v3663_v19, 4 }
 0x196   : > { %v2961_v61 = vpack.c.bf16 %v2929_v2, %v2929_v2  ;;  %v3894_v26 = vsel %vm6709_vm9, %v3892_v15, %v3893_v37  ;;  %v3207_v21 = vld [vmem:[#allocation2 + $0x34] sm:$0xf]  ;;  %v4319_v45 = vrot.slane %v4317_v25, 5  ;;  %v3208_v23 = vld [vmem:[#allocation2 + $0x38] sm:$0x1]  ;;  %v3327_v34 = vor.u32 %v3326_v28, %v7869_v5 }
 0x197   : > { %v2795_v0 = vpop.f32.mrf.mxu2  ;;  %v4313_v1 = vor.u32 %v4312_v39, %v4309_v33  ;;  %4004 = vrot.lane.b32.xlu2 %v3894_v26, %s6622_s8  ;;  %v4322_v3 = vrot.slane %v4320_v43, 6  ;;  %v3354_v56 = vshll.u32 %v3207_v21, 16  ;;  %v3205_v53 = vld [vmem:[#allocation2 + $0x2c] sm:$0x1]  ;;  %v7907_v59 = vld [vmem:[#allocation3 + $0x88] sm:$0xf]  ;;  %v2540_v25 = vadd.f32 %v7853_v52, %v7845_v58  ;;  %v7925_v43 = vpop.f32.mrf.mxu1 }
 0x198   : > { %v3037_v50 = vrot.slane %v2961_v61, 7  ;;  %v2862_v10 = vadd.f32 %v2795_v0, %v2537_v60  ;;  %v6535_v60 = vld [vmem:[#allocation3 + $0x80] sm:$0xff]  ;;  %v3358_v55 = vshrl.u32 %v3207_v21, 16  ;;  %v3364_v22 = vshll.u32 %v3208_v23, 16  ;;  %v7933_v23 = vpop.f32.mrf.mxu3 }
 0x199   : > { %v4314_v8 = vsel %vm6719_vm10, %v4305_v30, %v4313_v1  ;;  %v4315_v4 = vrot.slane %v4313_v1, 4  ;;  %v4323_v40 = vor.u32 %v4322_v3, %v4319_v45  ;;  %v3669_v30 = vsel %vm7006_vm4, %v3664_v29, %v7865_v63 }
 0x19a   : > { %3158 = vst.msk [vmem:[#allocation2 + $0x3c] sm:$0xe] %vm3145_vm14, %v3037_v50  ;;  %v2898_v7 = vadd.f32 %v7679_v35, %v2862_v10  ;;  %4705 = vrot.lane.b32.xlu0 %v4314_v8, %s6623_s30  ;;  %v7914_v12 = vrot.slane %v3354_v56, 5  ;;  %v3360_v62 = vrot.slane %v3358_v55, 4  ;;  %v3328_v49 = vrot.slane %v3327_v34, 4  ;;  %v7917_v27 = vpop.f32.mrf.mxu0  ;;  %v3989_v8 = vpop.permute.xlu2 %3988 }
 0x19b   : > { %6206 = vmatmul.msk.bf16.gmra.mxu3 %vm2347_vm7, %v6535_v60  ;;  %v4324_v54 = vsel %vm6719_vm10, %v4315_v4, %v4323_v40  ;;  %3750 = vst.msk [vmem:[#allocation3 + $0x88] sm:$0xf] %vm280_vm0, %v3669_v30  ;;  %v3332_v63 = vrot.slane %v3330_v9, 5  ;;  %v3345_v5 = vshrl.u32 %v3206_v11, 16  ;;  %v3348_v37 = vshll.u32 %v3206_v11, 16 }
 0x19c   : > { %v2930_v48 = vmax.f32 %v2898_v7, 0.0  ;;  %v3361_v36 = vor.u32 %v3360_v62, %v7914_v12  ;;  %v3340_v44 = vshll.u32 %v3205_v53, 16  ;;  %v3336_v15 = vrot.slane %v3334_v24, 4  ;;  %4096 = vst.msk [vmem:[#allocation3 + $0x4] sm:$0xf] %vm4094_vm12, %v3989_v8 }
 0x19d   : > { %4707 = vrot.lane.b32.xlu1 %v4324_v54, %s6623_s30  ;;  %v3333_v28 = vsel %vm7006_vm4, %v3328_v49, %v3332_v63  ;;  %v3038_v33 = vrot.slane %v3037_v50, 4  ;;  %v3347_v61 = vrot.slane %v3345_v5, 4  ;;  %v3350_v38 = vrot.slane %v3348_v37, 5 }
 0x19e   : > { %v2962_v2 = vpack.c.bf16 %v2930_v48, %v2930_v48  ;;  %3722 = vst.msk [vmem:[#allocation3 + $0x18] sm:$0xf] %vm280_vm0, %v3333_v28  ;;  %v3366_v0 = vrot.slane %v3364_v22, 5  ;;  %v3362_v26 = vrot.slane %v3361_v36, 4  ;;  %v3337_v1 = vor.u32 %v3336_v15, %v3332_v63 }
 0x19f   : > { %v3342_v52 = vrot.slane %v3340_v44, 5  ;;  %v3351_v29 = vor.u32 %v3350_v38, %v3347_v61  ;;  %v6187_v48 = vor.u32 %v7882_v47, %v7907_v59  ;;  %v2542_v62 = vadd.f32 %v7885_v51, %v7875_v42  ;;  %v7951_v47 = vpop.f32.mrf.mxu1 }
 0x1a0   : > { %v3039_v39 = vrot.slane %v2962_v2, 7  ;;  %v3367_v58 = vsel %vm7006_vm4, %v3362_v26, %v3366_v0  ;;  %v3338_v4 = vrot.slane %v3337_v1, 4  ;;  %v4873_v1 = vld [vmem:[%s8808_s3 + $0x14] sm:$0xf] }
 0x1a1   : > { %v4146_v18 = vld [vmem:[#allocation2 + $0x3c] sm:$0xe]  ;;  %v2798_v41 = vpop.f32.mrf.mxu2  ;;  %3725 = vst.msk [vmem:[#allocation3 + $0x24] sm:$0xf] %vm280_vm0, %v3367_v58  ;;  %v3352_v30 = vrot.slane %v3351_v29, 4 }
 0x1a2   : > { %v3040_v19 = vsel %vm6742_vm11, %v3038_v33, %v3039_v39  ;;  %v3041_v13 = vrot.slane %v3039_v39, 4  ;;  %v4326_v21 = vshrl.u32 %v4146_v18, 16  ;;  %v3209_v50 = vld [vmem:[#allocation2 + $0x3c] sm:$0xf]  ;;  %v2863_v10 = vadd.f32 %v2798_v41, %v2540_v25  ;;  %v7948_v63 = vpop.f32.mrf.mxu0 }
 0x1a3   : > { %3159 = vst.msk [vmem:[#allocation2 + $0x40] sm:$0xf] %vm280_vm0, %v3040_v19  ;;  %v4329_v45 = vshll.u32 %v4146_v18, 16  ;;  %v3369_v60 = vshrl.u32 %v3209_v50, 16  ;;  %v3372_v40 = vshll.u32 %v3209_v50, 16  ;;  %v3343_v53 = vsel %vm7006_vm4, %v3338_v4, %v3342_v52 }
 0x1a4   : > { %3160 = vst.msk [vmem:[#allocation2 + $0x44] sm:$0x1] %vm289_vm15, %v3041_v13  ;;  %v4328_v3 = vrot.slane %v4326_v21, 5  ;;  %v2899_v9 = vadd.f32 %v7679_v35, %v2863_v10  ;;  %v3767_v56 = vld [vmem:[#allocation2 + $0x3c] sm:$0xe]  ;;  %v3357_v22 = vsel %vm7006_vm4, %v3352_v30, %v7914_v12 }
 0x1a5   : > { %v4331_v7 = vrot.slane %v4329_v45, 6  ;;  %3723 = vst.msk [vmem:[#allocation3 + $0x1c] sm:$0xf] %vm280_vm0, %v3343_v53  ;;  %v3371_v34 = vrot.slane %v3369_v60, 4  ;;  %v3374_v11 = vrot.slane %v3372_v40, 5  ;;  %v6213_v24 = vrot.slane %v3767_v56, 9 }
 0x1a6   : > { %v2931_v55 = vmax.f32 %v2899_v9, 0.0  ;;  %3724 = vst.msk [vmem:[#allocation3 + $0x20] sm:$0xf] %vm280_vm0, %v3357_v22  ;;  %v7955_v25 = vpop.f32.mrf.mxu3 }
 0x1a7   : > { %v4332_v54 = vor.u32 %v4331_v7, %v4328_v3  ;;  %v3375_v2 = vor.u32 %v3374_v11, %v3371_v34 }
 0x1a8   : > { %v2963_v49 = vpack.c.bf16 %v2931_v55, %v2931_v55 }
 0x1a9   : > { %v2800_v5 = vpop.f32.mrf.mxu2  ;;  %v4333_v51 = vrot.slane %v4332_v54, 4  ;;  %v3376_v19 = vrot.slane %v3375_v2, 4 }
 0x1aa   : > { %v3768_v37 = vld [vmem:[#allocation2 + $0x40] sm:$0xf]  ;;  %v3042_v59 = vrot.slane %v2963_v49, 7  ;;  %v2864_v44 = vadd.f32 %v2800_v5, %v2542_v62  ;;  %v7976_v62 = vpop.f32.mrf.mxu1 }
 0x1ab   : > { %v4147_v36 = vld [vmem:[#allocation2 + $0x40] sm:$0xf]  ;;  %v3897_v15 = vrot.slane %v3768_v37, 5  ;;  %v3769_v12 = vld [vmem:[#allocation2 + $0x44] sm:$0x1]  ;;  %6207 = vmatmul.msk.bf16.gmra.mxu3 %vm2347_vm7, %v6187_v48 }
 0x1ac   : > { %v3210_v28 = vld [vmem:[#allocation2 + $0x40] sm:$0xf]  ;;  %v4335_v33 = vshrl.u32 %v4147_v36, 16  ;;  %v3900_v42 = vrot.slane %v3769_v12, 5  ;;  %v4338_v39 = vshll.u32 %v4147_v36, 16  ;;  %v2900_v18 = vadd.f32 %v7679_v35, %v2864_v44 }
 0x1ad   : > { %v4148_v61 = vld [vmem:[#allocation2 + $0x44] sm:$0x3]  ;;  %v3378_v38 = vshll.u32 %v3210_v28, 16  ;;  %3161 = vst.msk [vmem:[#allocation2 + $0x48] sm:$0xe] %vm3145_vm14, %v3042_v59  ;;  %v3898_v0 = vsel %vm6709_vm9, %v6213_v24, %v3897_v15  ;;  %v3899_v26 = vrot.slane %v3897_v15, 4  ;;  %v4959_v35 = vunpack.c.l.b16 %v4873_v1 }
 0x1ae   : > { %4006 = vrot.lane.b32.xlu2 %v3898_v0, %s6622_s8  ;;  %v4337_v13 = vrot.slane %v4335_v33, 5  ;;  %v4340_v41 = vrot.slane %v4338_v39, 6  ;;  %v4345_v21 = vshrl.u32 %v4148_v61, 16  ;;  %v4348_v50 = vshll.u32 %v4148_v61, 16  ;;  %v3211_v40 = vld [vmem:[#allocation2 + $0x44] sm:$0x1] }
 0x1af   : > { %v2932_v10 = vmax.f32 %v2900_v18, 0.0  ;;  %v3901_v45 = vsel %vm6709_vm9, %v3899_v26, %v3900_v42  ;;  %v3380_v58 = vrot.slane %v3378_v38, 5  ;;  %v3382_v4 = vshrl.u32 %v3210_v28, 16  ;;  %v7987_v28 = vpop.f32.mrf.mxu3  ;;  %v3987_v38 = vpop.permute.xlu1 %3986 }
 0x1b0   : > { %4008 = vrot.lane.b32.xlu0 %v3901_v45, %s6622_s8  ;;  %v4341_v52 = vor.u32 %v4340_v41, %v4337_v13  ;;  %v4347_v3 = vrot.slane %v4345_v21, 5  ;;  %v4350_v8 = vrot.slane %v4348_v50, 6  ;;  %v7967_v9 = vpop.f32.mrf.mxu0  ;;  %v4961_v7 = vpack.c.b16 %v4959_v35, %v4959_v35  ;;  %4095 = vst.msk [vmem:[#allocation3] sm:$0xf] %vm4094_vm12, %v3987_v38 }
 0x1b1   : > { %v2964_v29 = vpack.c.bf16 %v2932_v10, %v2932_v10  ;;  %v3381_v60 = vsel %vm7006_vm4, %v3376_v19, %v3380_v58  ;;  %v3043_v55 = vrot.slane %v3042_v59, 4  ;;  %v3384_v48 = vrot.slane %v3382_v4, 4 }
 0x1b2   : > { %v4342_v56 = vsel %vm6719_vm10, %v4333_v51, %v4341_v52  ;;  %v4343_v53 = vrot.slane %v4341_v52, 4  ;;  %v4351_v30 = vor.u32 %v4350_v8, %v4347_v3  ;;  %3726 = vst.msk [vmem:[#allocation3 + $0x28] sm:$0xf] %vm280_vm0, %v3381_v60  ;;  %v5014_v11 = vsel %vm5012_vm13, %v4961_v7, 0  ;;  %v4690_v3 = vpop.permute.xlu0 %4689  ;;  %v8003_v4 = vpop.f32.mrf.mxu1 }
 0x1b3   : > { %v3044_v34 = vrot.slane %v2964_v29, 7  ;;  %4709 = vrot.lane.b32.xlu1 %v4342_v56, %s6623_s30  ;;  %5022 = vmatpush.bf16.msrb.mxu3 %v5014_v11  ;;  %v3388_v22 = vshll.u32 %v3211_v40, 16  ;;  %v3385_v37 = vor.u32 %v3384_v48, %v3380_v58  ;;  %v2545_v36 = vadd.f32 %v7925_v43, %v7917_v27  ;;  %v7994_v27 = vld [vmem:[%s8807_s2] ss:$0 sm:$0xff]  ;;  %4798 = vst.msk [vmem:[#allocation3] sm:$0xf] %vm4797_vm1, %v4690_v3 }
 0x1b4   : > { %v4149_v54 = vld [vmem:[#allocation2 + $0x48] sm:$0xe]  ;;  %v4352_v2 = vsel %vm6719_vm10, %v4343_v53, %v4351_v30  ;;  %v2547_v8 = vadd.f32 %v7951_v47, %v7948_v63 }
 0x1b5   : > { %v3045_v49 = vsel %vm6742_vm11, %v3043_v55, %v3044_v34  ;;  %v3046_v24 = vrot.slane %v3044_v34, 4  ;;  %v3212_v5 = vld [vmem:[#allocation2 + $0x48] sm:$0xf]  ;;  %v4354_v59 = vshrl.u32 %v4149_v54, 16  ;;  %v4357_v44 = vshll.u32 %v4149_v54, 16 }
 0x1b6   : > { %3162 = vst.msk [vmem:[#allocation2 + $0x4c] sm:$0xf] %vm280_vm0, %v3045_v49  ;;  %4711 = vrot.lane.b32.xlu2 %v4352_v2, %s6623_s30  ;;  %v3390_v12 = vrot.slane %v3388_v22, 5  ;;  %v3386_v33 = vrot.slane %v3385_v37, 4  ;;  %v3393_v42 = vshrl.u32 %v3212_v5, 16  ;;  %v3396_v51 = vshll.u32 %v3212_v5, 16 }
 0x1b7   : > { %3163 = vst.msk [vmem:[#allocation2 + $0x50] sm:$0x1] %vm289_vm15, %v3046_v24  ;;  %v2803_v15 = vpop.f32.mrf.mxu2  ;;  %v3770_v61 = vld [vmem:[#allocation2 + $0x48] sm:$0xe]  ;;  %v4356_v26 = vrot.slane %v4354_v59, 5  ;;  %v4359_v1 = vrot.slane %v4357_v44, 6 }
 0x1b8   : > { %v2865_v39 = vadd.f32 %v2803_v15, %v2545_v36  ;;  %v3391_v18 = vsel %vm7006_vm4, %v3386_v33, %v3390_v12  ;;  %v7997_v0 = vpop.f32.mrf.mxu0  ;;  %v3395_v19 = vrot.slane %v3393_v42, 4  ;;  %v3398_v13 = vrot.slane %v3396_v51, 5 }
 0x1b9   : > { %3727 = vst.msk [vmem:[#allocation3 + $0x2c] sm:$0xf] %vm280_vm0, %v3391_v18  ;;  %v6214_v50 = vrot.slane %v3770_v61, 9  ;;  %v4360_v40 = vor.u32 %v4359_v1, %v4356_v26 }
 0x1ba   : > { %v2901_v43 = vadd.f32 %v7994_v27, %v2865_v39  ;;  %v3399_v11 = vor.u32 %v3398_v13, %v3395_v19  ;;  %v2550_v19 = vadd.f32 %v7976_v62, %v7967_v9  ;;  %v2554_v13 = vpop.f32.mrf.mxu1 }
 0x1bb   : > { %v4361_v37 = vrot.slane %v4360_v40, 4 }
 0x1bc   : > { %v2933_v41 = vmax.f32 %v2901_v43, 0.0  ;;  %v3400_v12 = vrot.slane %v3399_v11, 4  ;;  %v2552_v11 = vadd.f32 %v8003_v4, %v7997_v0 }
 0x1bd   : > { %v3771_v21 = vld [vmem:[#allocation2 + $0x4c] sm:$0xf] }
 0x1be   : > { %v4150_v10 = vld [vmem:[#allocation2 + $0x4c] sm:$0xf]  ;;  %v3904_v45 = vrot.slane %v3771_v21, 5  ;;  %v3772_v35 = vld [vmem:[#allocation2 + $0x50] sm:$0x1]  ;;  %v2965_v29 = vpack.c.bf16 %v2933_v41, %v2933_v41  ;;  %v8005_v7 = vpop.f32.mrf.mxu3 }
 0x1bf   : > { %v4363_v58 = vshrl.u32 %v4150_v10, 16  ;;  %v4366_v52 = vshll.u32 %v4150_v10, 16  ;;  %v3907_v60 = vrot.slane %v3772_v35, 5  ;;  %v4151_v56 = vld [vmem:[#allocation2 + $0x50] sm:$0x3]  ;;  %v2805_v53 = vpop.f32.mrf.mxu2 }
 0x1c0   : > { %v3905_v30 = vsel %vm6709_vm9, %v6214_v50, %v3904_v45  ;;  %v3906_v55 = vrot.slane %v3904_v45, 4  ;;  %v3213_v48 = vld [vmem:[#allocation2 + $0x4c] sm:$0xf]  ;;  %v3047_v54 = vrot.slane %v2965_v29, 7  ;;  %v2866_v63 = vadd.f32 %v2805_v53, %v2547_v8  ;;  %v3214_v44 = vld [vmem:[#allocation2 + $0x50] sm:$0x1]  ;;  %v2449_v39 = vpop.f32.mrf.mxu0 }
 0x1c1   : > { %v4365_v34 = vrot.slane %v4363_v58, 5  ;;  %4010 = vrot.lane.b32.xlu0 %v3905_v30, %s6622_s8  ;;  %v4368_v47 = vrot.slane %v4366_v52, 6  ;;  %v4373_v22 = vshrl.u32 %v4151_v56, 16  ;;  %v4376_v24 = vshll.u32 %v4151_v56, 16 }
 0x1c2   : > { %v3908_v49 = vsel %vm6709_vm9, %v3906_v55, %v3907_v60  ;;  %v3402_v2 = vshll.u32 %v3213_v48, 16  ;;  %3164 = vst.msk [vmem:[#allocation2 + $0x54] sm:$0xe] %vm3145_vm14, %v3047_v54  ;;  %v2902_v5 = vadd.f32 %v7994_v27, %v2866_v63  ;;  %v3406_v42 = vshrl.u32 %v3213_v48, 16 }
 0x1c3   : > { %4012 = vrot.lane.b32.xlu1 %v3908_v49, %s6622_s8  ;;  %v4369_v36 = vor.u32 %v4368_v47, %v4365_v34  ;;  %v4375_v59 = vrot.slane %v4373_v22, 5  ;;  %v4378_v15 = vrot.slane %v4376_v24, 6  ;;  %v3412_v26 = vshll.u32 %v3214_v44, 16  ;;  %v6556_v47 = vld [vmem:[%s8808_s3 + $0xc] sm:$0xff] }
 0x1c4   : > { %v3404_v33 = vrot.slane %v3402_v2, 5  ;;  %v2934_v51 = vmax.f32 %v2902_v5, 0.0  ;;  %v3408_v1 = vrot.slane %v3406_v42, 4  ;;  %v8026_v50 = vpop.permute.xlu2 %4693  ;;  %v3048_v58 = vrot.slane %v3047_v54, 4  ;;  %5023 = vmatpush.bf16.msrb.mxu3 %v6556_v47 }
 0x1c5   : > { %v4370_v61 = vsel %vm6719_vm10, %v4361_v37, %v4369_v36  ;;  %v4371_v38 = vrot.slane %v4369_v36, 4  ;;  %v4379_v18 = vor.u32 %v4378_v15, %v4375_v59  ;;  %v3414_v9 = vrot.slane %v3412_v26, 5  ;;  %v8048_v36 = vpop.f32.mrf.mxu1 }
 0x1c6   : > { %4713 = vrot.lane.b32.xlu2 %v4370_v61, %s6623_s30  ;;  %v3405_v43 = vsel %vm7006_vm4, %v3400_v12, %v3404_v33  ;;  %v2966_v41 = vpack.c.bf16 %v2934_v51, %v2934_v51  ;;  %v8023_v21 = vpop.f32.mrf.mxu3  ;;  %v3409_v35 = vor.u32 %v3408_v1, %v3404_v33  ;;  %v2555_v42 = vadd.f32 %v2554_v13, %v2449_v39 }
 0x1c7   : > { %3728 = vst.msk [vmem:[#allocation3 + $0x30] sm:$0xf] %vm280_vm0, %v3405_v43  ;;  %v2808_v10 = vpop.f32.mrf.mxu2  ;;  %v4380_v45 = vsel %vm6719_vm10, %v4371_v38, %v4379_v18 }
 0x1c8   : > { %v3049_v52 = vrot.slane %v2966_v41, 7  ;;  %v2867_v3 = vadd.f32 %v2808_v10, %v2550_v19  ;;  %v3410_v62 = vrot.slane %v3409_v35, 4  ;;  %v8041_v54 = vpop.f32.mrf.mxu0 }
 0x1c9   : > { %4715 = vrot.lane.b32.xlu0 %v4380_v45, %s6623_s30  ;;  %v4152_v8 = vld [vmem:[#allocation2 + $0x54] sm:$0xe] }
 0x1ca   : > { %v3050_v29 = vsel %vm6742_vm11, %v3048_v58, %v3049_v52  ;;  %v3051_v60 = vrot.slane %v3049_v52, 4  ;;  %v2903_v40 = vadd.f32 %v7994_v27, %v2867_v3  ;;  %v4382_v56 = vshrl.u32 %v4152_v8, 16  ;;  %v3215_v55 = vld [vmem:[#allocation2 + $0x54] sm:$0xf] }
 0x1cb   : > { %3165 = vst.msk [vmem:[#allocation2 + $0x58] sm:$0xf] %vm280_vm0, %v3050_v29  ;;  %v4385_v53 = vshll.u32 %v4152_v8, 16  ;;  %v3415_v30 = vsel %vm7006_vm4, %v3410_v62, %v3414_v9  ;;  %v3417_v22 = vshrl.u32 %v3215_v55, 16  ;;  %v3420_v49 = vshll.u32 %v3215_v55, 16 }
 0x1cc   : > { %3166 = vst.msk [vmem:[#allocation2 + $0x5c] sm:$0x1] %vm289_vm15, %v3051_v60  ;;  %v2935_v34 = vmax.f32 %v2903_v40, 0.0  ;;  %v4384_v5 = vrot.slane %v4382_v56, 5  ;;  %v3773_v0 = vld [vmem:[#allocation2 + $0x54] sm:$0xe] }
 0x1cd   : > { %3729 = vst.msk [vmem:[#allocation3 + $0x34] sm:$0xf] %vm280_vm0, %v3415_v30  ;;  %v4387_v37 = vrot.slane %v4385_v53, 6  ;;  %v3419_v12 = vrot.slane %v3417_v22, 4  ;;  %v3422_v33 = vrot.slane %v3420_v49, 5  ;;  %v6215_v51 = vrot.slane %v3773_v0, 9 }
 0x1ce   : > { %v2967_v48 = vpack.c.bf16 %v2935_v34, %v2935_v34  ;;  %v8043_v63 = vpop.f32.mrf.mxu3 }
 0x1cf   : > { %v2810_v24 = vpop.f32.mrf.mxu2  ;;  %v3995_v2 = vpop.permute.xlu2 %3994  ;;  %v4388_v43 = vor.u32 %v4387_v37, %v4384_v5  ;;  %v3423_v62 = vor.u32 %v3422_v33, %v3419_v12 }
 0x1d0   : > { %v3052_v59 = vrot.slane %v2967_v48, 7  ;;  %v2868_v44 = vadd.f32 %v2810_v24, %v2552_v11  ;;  %4099 = vst.msk [vmem:[#allocation3 + $0x10] sm:$0xf] %vm4094_vm12, %v3995_v2  ;;  %v2454_v55 = vpop.f32.mrf.mxu0  ;;  %v2559_v5 = vpop.f32.mrf.mxu1 }
 0x1d1   : > { %v4389_v60 = vrot.slane %v4388_v43, 4  ;;  %v3424_v12 = vrot.slane %v3423_v62, 4 }
 0x1d2   : > { %3167 = vst.msk [vmem:[#allocation2 + $0x60] sm:$0xe] %vm3145_vm14, %v3052_v59  ;;  %v2904_v4 = vadd.f32 %v7994_v27, %v2868_v44  ;;  %v3774_v15 = vld [vmem:[#allocation2 + $0x58] sm:$0xf]  ;;  %v3053_v53 = vrot.slane %v3052_v59, 4 }
 0x1d3   : > { %v3911_v61 = vrot.slane %v3774_v15, 5  ;;  %v3775_v38 = vld [vmem:[#allocation2 + $0x5c] sm:$0x1]  ;;  %v4153_v18 = vld [vmem:[#allocation2 + $0x58] sm:$0xf] }
 0x1d4   : > { %v2936_v26 = vmax.f32 %v2904_v4, 0.0  ;;  %v3914_v1 = vrot.slane %v3775_v38, 5  ;;  %v4391_v19 = vshrl.u32 %v4153_v18, 16  ;;  %v4394_v41 = vshll.u32 %v4153_v18, 16  ;;  %v4154_v10 = vld [vmem:[#allocation2 + $0x5c] sm:$0x3] }
 0x1d5   : > { %v3912_v45 = vsel %vm6709_vm9, %v6215_v51, %v3911_v61  ;;  %v3913_v35 = vrot.slane %v3911_v61, 4  ;;  %v4401_v58 = vshrl.u32 %v4154_v10, 16  ;;  %v4404_v52 = vshll.u32 %v4154_v10, 16  ;;  %v3216_v9 = vld [vmem:[#allocation2 + $0x58] sm:$0xf] }
 0x1d6   : > { %v2968_v3 = vpack.c.bf16 %v2936_v26, %v2936_v26  ;;  %4014 = vrot.lane.b32.xlu1 %v3912_v45, %s6622_s8  ;;  %v8056_v39 = vpop.f32.mrf.mxu3  ;;  %v4393_v13 = vrot.slane %v4391_v19, 5  ;;  %v4396_v8 = vrot.slane %v4394_v41, 6  ;;  %v3426_v48 = vshll.u32 %v3216_v9, 16  ;;  %v3217_v2 = vld [vmem:[#allocation2 + $0x5c] sm:$0x1]  ;;  %v6574_v41 = vld [vmem:[%s6689_s29] sm:$0xff] }
 0x1d7   : > { %v3915_v29 = vsel %vm6709_vm9, %v3913_v35, %v3914_v1  ;;  %v4403_v40 = vrot.slane %v4401_v58, 5  ;;  %v4406_v56 = vrot.slane %v4404_v52, 6  ;;  %v3991_v34 = vpop.permute.xlu0 %3990  ;;  %v2813_v47 = vpop.f32.mrf.mxu2  ;;  %v3436_v38 = vshll.u32 %v3217_v2, 16  ;;  %6482 = vmatmul.msk.bf16.vlgmr.msrb.gmra.mxu2 %vm5695_vm2, %v6574_v41 }
 0x1d8   : > { %v3054_v30 = vrot.slane %v2968_v3, 7  ;;  %4016 = vrot.lane.b32.xlu2 %v3915_v29, %s6622_s8  ;;  %v4397_v11 = vor.u32 %v4396_v8, %v4393_v13  ;;  %4097 = vst.msk [vmem:[#allocation3 + $0x8] sm:$0xf] %vm4094_vm12, %v3991_v34  ;;  %v2869_v59 = vadd.f32 %v2813_v47, %v2555_v42  ;;  %v3428_v61 = vrot.slane %v3426_v48, 5  ;;  %v8083_v3 = vpop.permute.xlu2 %4699  ;;  %v8089_v48 = vpop.f32.mrf.mxu0 }
 0x1d9   : > { %v3993_v22 = vpop.permute.xlu1 %3992  ;;  %v4407_v49 = vor.u32 %v4406_v56, %v4403_v40  ;;  %v4155_v24 = vld [vmem:[#allocation2 + $0x60] sm:$0xe]  ;;  %4800 = vst.msk [vmem:[#allocation3 + $0x8] sm:$0xf] %vm4797_vm1, %v8026_v50  ;;  %v3430_v18 = vshrl.u32 %v3216_v9, 16  ;;  %v2557_v58 = vadd.f32 %v8048_v36, %v8041_v54  ;;  %v3438_v40 = vrot.slane %v3436_v38, 5  ;;  %v8091_v2 = vpop.f32.mrf.mxu1 }
 0x1da   : > { %v3055_v37 = vsel %vm6742_vm11, %v3053_v53, %v3054_v30  ;;  %v3056_v44 = vrot.slane %v3054_v30, 4  ;;  %v4398_v0 = vsel %vm6719_vm10, %v4389_v60, %v4397_v11  ;;  %v3218_v4 = vld [vmem:[#allocation2 + $0x60] sm:$0xf]  ;;  %v4399_v15 = vrot.slane %v4397_v11, 4  ;;  %4098 = vst.msk [vmem:[#allocation3 + $0xc] sm:$0xf] %vm4094_vm12, %v3993_v22 }
 0x1db   : > { %3168 = vst.msk [vmem:[#allocation2 + $0x64] sm:$0xf] %vm280_vm0, %v3055_v37  ;;  %4717 = vrot.lane.b32.xlu0 %v4398_v0, %s6623_s30  ;;  %v2905_v33 = vadd.f32 %v7994_v27, %v2869_v59  ;;  %v4410_v51 = vshrl.u32 %v4155_v24, 16  ;;  %v4413_v42 = vshll.u32 %v4155_v24, 16  ;;  %v3441_v43 = vshrl.u32 %v3218_v4, 16 }
 0x1dc   : > { %3169 = vst.msk [vmem:[#allocation2 + $0x68] sm:$0x1] %vm289_vm15, %v3056_v44  ;;  %v4408_v50 = vsel %vm6719_vm10, %v4399_v15, %v4407_v49  ;;  %v3776_v19 = vld [vmem:[#allocation2 + $0x60] sm:$0xe]  ;;  %v3444_v10 = vshll.u32 %v3218_v4, 16  ;;  %v3432_v45 = vrot.slane %v3430_v18, 4  ;;  %v3429_v35 = vsel %vm7006_vm4, %v3424_v12, %v3428_v61 }
 0x1dd   : > { %v2937_v26 = vmax.f32 %v2905_v33, 0.0  ;;  %v4412_v8 = vrot.slane %v4410_v51, 5  ;;  %v4415_v9 = vrot.slane %v4413_v42, 6  ;;  %3730 = vst.msk [vmem:[#allocation3 + $0x38] sm:$0xf] %vm280_vm0, %v3429_v35  ;;  %v6216_v60 = vrot.slane %v3776_v19, 9 }
 0x1de   : > { %4719 = vrot.lane.b32.xlu1 %v4408_v50, %s6623_s30  ;;  %v8076_v1 = vpop.f32.mrf.mxu3  ;;  %v3433_v56 = vor.u32 %v3432_v45, %v3428_v61  ;;  %v3443_v53 = vrot.slane %v3441_v43, 4  ;;  %v3446_v34 = vrot.slane %v3444_v10, 5  ;;  %v2560_v11 = vadd.f32 %v2559_v5, %v2454_v55 }
 0x1df   : > { %v2969_v52 = vpack.c.bf16 %v2937_v26, %v2937_v26  ;;  %v4696_v13 = vpop.permute.xlu0 %4695  ;;  %v2815_v62 = vpop.f32.mrf.mxu2  ;;  %v4416_v59 = vor.u32 %v4415_v9, %v4412_v8 }
 0x1e0   : > { %4801 = vst.msk [vmem:[#allocation3 + $0xc] sm:$0xf] %vm4797_vm1, %v4696_v13  ;;  %v2870_v54 = vadd.f32 %v2815_v62, %v2557_v58  ;;  %v3434_v24 = vrot.slane %v3433_v56, 4  ;;  %v3447_v26 = vor.u32 %v3446_v34, %v3443_v53 }
 0x1e1   : > { %v4692_v29 = vpop.permute.xlu1 %4691  ;;  %v3057_v30 = vrot.slane %v2969_v52, 7  ;;  %v4417_v9 = vrot.slane %v4416_v59, 4 }
 0x1e2   : > { %4799 = vst.msk [vmem:[#allocation3 + $0x4] sm:$0xf] %vm4797_vm1, %v4692_v29  ;;  %v3777_v36 = vld [vmem:[#allocation2 + $0x64] sm:$0xf]  ;;  %v2906_v37 = vadd.f32 %v7994_v27, %v2870_v54  ;;  %v3439_v12 = vsel %vm7006_vm4, %v3434_v24, %v3438_v40  ;;  %v3448_v34 = vrot.slane %v3447_v26, 4 }
 0x1e3   : > { %v3918_v47 = vrot.slane %v3777_v36, 5  ;;  %v3778_v22 = vld [vmem:[#allocation2 + $0x68] sm:$0x1]  ;;  %v4156_v49 = vld [vmem:[#allocation2 + $0x64] sm:$0xf]  ;;  %v3058_v52 = vrot.slane %v3057_v30, 4 }
 0x1e4   : > { %3170 = vst.msk [vmem:[#allocation2 + $0x6c] sm:$0xe] %vm3145_vm14, %v3057_v30  ;;  %v3921_v44 = vrot.slane %v3778_v22, 5  ;;  %v4419_v0 = vshrl.u32 %v4156_v49, 16  ;;  %v4422_v55 = vshll.u32 %v4156_v49, 16  ;;  %v2938_v51 = vmax.f32 %v2906_v37, 0.0  ;;  %v8105_v41 = vpop.permute.xlu2 %4701 }
 0x1e5   : > { %v3919_v4 = vsel %vm6709_vm9, %v6216_v60, %v3918_v47  ;;  %v3920_v15 = vrot.slane %v3918_v47, 4  ;;  %v4157_v5 = vld [vmem:[#allocation2 + $0x68] sm:$0x3]  ;;  %v3219_v33 = vld [vmem:[#allocation2 + $0x64] sm:$0xf] }
 0x1e6   : > { %4018 = vrot.lane.b32.xlu2 %v3919_v4, %s6622_s8  ;;  %v8100_v42 = vpop.f32.mrf.mxu3  ;;  %v4421_v61 = vrot.slane %v4419_v0, 5  ;;  %v4429_v50 = vshrl.u32 %v4157_v5, 16  ;;  %v4432_v38 = vshll.u32 %v4157_v5, 16  ;;  %3731 = vst.msk [vmem:[#allocation3 + $0x3c] sm:$0xf] %vm280_vm0, %v3439_v12  ;;  %v4424_v43 = vrot.slane %v4422_v55, 6 }
 0x1e7   : > { %v3922_v18 = vsel %vm6709_vm9, %v3920_v15, %v3921_v44  ;;  %v2970_v19 = vpack.c.bf16 %v2938_v51, %v2938_v51  ;;  %v8108_v10 = vld [vmem:[#allocation3 + $0x8] sm:$0xff]  ;;  %v3450_v58 = vshll.u32 %v3219_v33, 16  ;;  %v2818_v13 = vpop.f32.mrf.mxu2  ;;  %v3454_v60 = vshrl.u32 %v3219_v33, 16  ;;  %v3220_v47 = vld [vmem:[#allocation2 + $0x68] sm:$0x1]  ;;  %v2564_v15 = vpop.f32.mrf.mxu1 }
 0x1e8   : > { %4020 = vrot.lane.b32.xlu0 %v3922_v18, %s6622_s8  ;;  %v4431_v45 = vrot.slane %v4429_v50, 5  ;;  %v4434_v35 = vrot.slane %v4432_v38, 6  ;;  %v4425_v62 = vor.u32 %v4424_v43, %v4421_v61  ;;  %v2871_v56 = vadd.f32 %v2818_v13, %v2560_v11  ;;  %6294 = vmatmul.msk.bf16.vlgmr.msrb.gmra.mxu3 %vm4963_vm3, %v8108_v10  ;;  %v6575_v13 = vld [vmem:[%s6689_s29 + $0x8] sm:$0xff] }
 0x1e9   : > { %v3997_v8 = vpop.permute.xlu0 %3996  ;;  %v6538_v29 = vld [vmem:[#allocation3] sm:$0xff]  ;;  %v3059_v40 = vrot.slane %v2970_v19, 7  ;;  %v3452_v54 = vrot.slane %v3450_v58, 5  ;;  %v3460_v12 = vshll.u32 %v3220_v47, 16  ;;  %v3456_v33 = vrot.slane %v3454_v60, 4  ;;  %6483 = vmatmul.msk.bf16.gmra.mxu2 %vm5695_vm2, %v6575_v13 }
 0x1ea   : > { %4100 = vst.msk [vmem:[#allocation3 + $0x14] sm:$0xf] %vm4094_vm12, %v3997_v8  ;;  %v4435_v53 = vor.u32 %v4434_v35, %v4431_v45  ;;  %v4426_v30 = vsel %vm6719_vm10, %v4417_v9, %v4425_v62  ;;  %6318 = vmatmul.msk.bf16.vlgmr.msrb.gmra.mxu0 %vm4963_vm3, %v6538_v29  ;;  %v4427_v36 = vrot.slane %v4425_v62, 4  ;;  %v2907_v49 = vadd.f32 %v7994_v27, %v2871_v56 }
 0x1eb   : > { %4803 = vst.msk [vmem:[#allocation3 + $0x14] sm:$0xf] %vm4797_vm1, %v8083_v3  ;;  %v3060_v11 = vsel %vm6742_vm11, %v3058_v52, %v3059_v40  ;;  %v3061_v22 = vrot.slane %v3059_v40, 4  ;;  %4721 = vrot.lane.b32.xlu1 %v4426_v30, %s6623_s30  ;;  %v4158_v24 = vld [vmem:[#allocation2 + $0x6c] sm:$0xe]  ;;  %v2459_v3 = vpop.f32.mrf.mxu0  ;;  %v3453_v4 = vsel %vm7006_vm4, %v3448_v34, %v3452_v54  ;;  %v2562_v51 = vadd.f32 %v8091_v2, %v8089_v48 }
 0x1ec   : > { %3171 = vst.msk [vmem:[#allocation2 + $0x70] sm:$0xf] %vm280_vm0, %v3060_v11  ;;  %v4698_v37 = vpop.permute.xlu1 %4697  ;;  %v4436_v44 = vsel %vm6719_vm10, %v4427_v36, %v4435_v53  ;;  %v4438_v59 = vshrl.u32 %v4158_v24, 16  ;;  %v4441_v0 = vshll.u32 %v4158_v24, 16  ;;  %v2939_v55 = vmax.f32 %v2907_v49, 0.0 }
 0x1ed   : > { %3172 = vst.msk [vmem:[#allocation2 + $0x74] sm:$0x1] %vm289_vm15, %v3061_v22  ;;  %v3457_v50 = vor.u32 %v3456_v33, %v3452_v54  ;;  %v3779_v43 = vld [vmem:[#allocation2 + $0x6c] sm:$0xe]  ;;  %v3462_v58 = vrot.slane %v3460_v12, 5  ;;  %v2565_v47 = vadd.f32 %v2564_v15, %v2459_v3 }
 0x1ee   : > { %4723 = vrot.lane.b32.xlu2 %v4436_v44, %s6623_s30  ;;  %v8129_v5 = vpop.f32.mrf.mxu3  ;;  %4802 = vst.msk [vmem:[#allocation3 + $0x10] sm:$0xf] %vm4797_vm1, %v4698_v37  ;;  %v2971_v61 = vpack.c.bf16 %v2939_v55, %v2939_v55  ;;  %v4440_v26 = vrot.slane %v4438_v59, 5  ;;  %v4443_v19 = vrot.slane %v4441_v0, 6  ;;  %v6217_v9 = vrot.slane %v3779_v43, 9 }
 0x1ef   : > { %3732 = vst.msk [vmem:[#allocation3 + $0x40] sm:$0xf] %vm280_vm0, %v3453_v4  ;;  %v2820_v38 = vpop.f32.mrf.mxu2  ;;  %v3458_v52 = vrot.slane %v3457_v50, 4  ;;  %v2566_v44 = vpop.f32.mrf.mxu1 }
 0x1f0   : > { %v3062_v45 = vrot.slane %v2971_v61, 7  ;;  %v2872_v35 = vadd.f32 %v2820_v38, %v2562_v51  ;;  %v4444_v40 = vor.u32 %v4443_v19, %v4440_v26 }
 0x1f1   : > { %v4005_v18 = vpop.permute.xlu2 %4004  ;;  %v3463_v8 = vsel %vm7006_vm4, %v3458_v52, %v3462_v58 }
 0x1f2   : > { %4104 = vst.msk [vmem:[#allocation3 + $0x24] sm:$0xf] %vm4094_vm12, %v4005_v18  ;;  %v2908_v48 = vadd.f32 %v7994_v27, %v2872_v35  ;;  %v3063_v55 = vrot.slane %v3062_v45, 4  ;;  %v4445_v61 = vrot.slane %v4444_v40, 4 }
 0x1f3   : > { %3173 = vst.msk [vmem:[#allocation2 + $0x78] sm:$0xe] %vm3145_vm14, %v3062_v45  ;;  %v3780_v2 = vld [vmem:[#allocation2 + $0x70] sm:$0xf]  ;;  %v2461_v11 = vpop.f32.mrf.mxu0 }
 0x1f4   : > { %v3925_v62 = vrot.slane %v3780_v2, 5  ;;  %v3781_v29 = vld [vmem:[#allocation2 + $0x74] sm:$0x1]  ;;  %v4159_v60 = vld [vmem:[#allocation2 + $0x70] sm:$0xf]  ;;  %v2940_v56 = vmax.f32 %v2908_v48, 0.0  ;;  %v2575_v48 = vadd.f32 %v8005_v7, %v7761_v31 }
 0x1f5   : > { %v6557_v54 = vld [vmem:[#allocation3 + $0x10] sm:$0xff]  ;;  %v3928_v30 = vrot.slane %v3781_v29, 5  ;;  %v4447_v36 = vshrl.u32 %v4159_v60, 16  ;;  %v4450_v34 = vshll.u32 %v4159_v60, 16  ;;  %v4160_v37 = vld [vmem:[#allocation2 + $0x74] sm:$0x3] }
 0x1f6   : > { %v8141_v53 = vpop.f32.mrf.mxu3  ;;  %v3926_v22 = vsel %vm6709_vm9, %v6217_v9, %v3925_v62  ;;  %v3927_v24 = vrot.slane %v3925_v62, 4  ;;  %3733 = vst.msk [vmem:[#allocation3 + $0x44] sm:$0xf] %vm280_vm0, %v3463_v8  ;;  %v2972_v59 = vpack.c.bf16 %v2940_v56, %v2940_v56  ;;  %6402 = vmatmul.msk.bf16.vlgmr.msrb.gmra.mxu1 %vm4963_vm3, %v6557_v54  ;;  %v8150_v3 = vld [vmem:[#allocation3 + $0x10] sm:$0xff]  ;;  %v4457_v15 = vshrl.u32 %v4160_v37, 16 }
 0x1f7   : > { %v3999_v49 = vpop.permute.xlu0 %3998  ;;  %4022 = vrot.lane.b32.xlu0 %v3926_v22, %s6622_s8  ;;  %v4449_v0 = vrot.slane %v4447_v36, 5  ;;  %v4452_v4 = vrot.slane %v4450_v34, 6  ;;  %v2823_v12 = vpop.f32.mrf.mxu2  ;;  %v4460_v50 = vshll.u32 %v4160_v37, 16  ;;  %v2567_v56 = vadd.f32 %v2566_v44, %v2461_v11  ;;  %v3221_v22 = vld [vmem:[#allocation2 + $0x6c] sm:$0xf] }
 0x1f8   : > { %4101 = vst.msk [vmem:[#allocation3 + $0x18] sm:$0xf] %vm4094_vm12, %v3999_v49  ;;  %v3929_v33 = vsel %vm6709_vm9, %v3927_v24, %v3928_v30  ;;  %v3064_v38 = vrot.slane %v2972_v59, 7  ;;  %v2873_v18 = vadd.f32 %v2823_v12, %v2565_v47  ;;  %6295 = vmatmul.msk.bf16.gmra.mxu3 %vm4963_vm3, %v8150_v3  ;;  %v4459_v26 = vrot.slane %v4457_v15, 5  ;;  %v2569_v11 = vpop.f32.mrf.mxu1 }
 0x1f9   : > { %4804 = vst.msk [vmem:[#allocation3 + $0x18] sm:$0xf] %vm4797_vm1, %v8105_v41  ;;  %v4001_v51 = vpop.permute.xlu1 %4000  ;;  %4024 = vrot.lane.b32.xlu1 %v3929_v33, %s6622_s8  ;;  %v4453_v43 = vor.u32 %v4452_v4, %v4449_v0  ;;  %v4462_v41 = vrot.slane %v4460_v50, 6  ;;  %v2577_v37 = vadd.f32 %v8023_v21, %v7797_v57  ;;  %v6576_v0 = vld [vmem:[%s6689_s29 + $0x10] sm:$0xff]  ;;  %v3465_v12 = vshrl.u32 %v3221_v22, 16 }
 0x1fa   : > { %4102 = vst.msk [vmem:[#allocation3 + $0x1c] sm:$0xf] %vm4094_vm12, %v4001_v51  ;;  %6319 = vmatmul.msk.bf16.gmra.mxu0 %vm4963_vm3, %v8108_v10  ;;  %v4161_v19 = vld [vmem:[#allocation2 + $0x78] sm:$0xe]  ;;  %v3065_v45 = vsel %vm6742_vm11, %v3063_v55, %v3064_v38  ;;  %v3066_v35 = vrot.slane %v3064_v38, 4  ;;  %v2909_v58 = vadd.f32 %v7994_v27, %v2873_v18  ;;  %v3468_v33 = vshll.u32 %v3221_v22, 16  ;;  %6484 = vmatmul.msk.bf16.gmra.mxu2 %vm5695_vm2, %v6576_v0 }
 0x1fb   : > { %v4454_v52 = vsel %vm6719_vm10, %v4445_v61, %v4453_v43  ;;  %3174 = vst.msk [vmem:[#allocation2 + $0x7c] sm:$0xf] %vm280_vm0, %v3065_v45  ;;  %v4455_v2 = vrot.slane %v4453_v43, 4  ;;  %v4463_v10 = vor.u32 %v4462_v41, %v4459_v26  ;;  %v4466_v13 = vshrl.u32 %v4161_v19, 16  ;;  %v3782_v31 = vld [vmem:[#allocation2 + $0x78] sm:$0xe]  ;;  %v2464_v7 = vpop.f32.mrf.mxu0 }
 0x1fc   : > { %4725 = vrot.lane.b32.xlu2 %v4454_v52, %s6623_s30  ;;  %3175 = vst.msk [vmem:[#allocation2 + $0x80] sm:$0x1] %vm289_vm15, %v3066_v35  ;;  %v2941_v8 = vmax.f32 %v2909_v58, 0.0  ;;  %v4469_v62 = vshll.u32 %v4161_v19, 16  ;;  %v6218_v59 = vrot.slane %v3782_v31, 9  ;;  %v2570_v4 = vadd.f32 %v2569_v11, %v2464_v7 }
 0x1fd   : > { %v4464_v29 = vsel %vm6719_vm10, %v4455_v2, %v4463_v10  ;;  %v4468_v34 = vrot.slane %v4466_v13, 5  ;;  %v3467_v11 = vrot.slane %v3465_v12, 4 }
 0x1fe   : > { %v2833_v9 = vpop.f32.mrf.mxu3  ;;  %v2973_v54 = vpack.c.bf16 %v2941_v8, %v2941_v8  ;;  %v4471_v47 = vrot.slane %v4469_v62, 6 }
 0x1ff   : > { %v2877_v60 = vadd.f32 %v2833_v9, %v2575_v48  ;;  %v4704_v40 = vpop.permute.xlu0 %4703  ;;  %4727 = vrot.lane.b32.xlu0 %v4464_v29, %s6623_s30  ;;  %v2825_v30 = vpop.f32.mrf.mxu2 }
 0x200   : > { %4805 = vst.msk [vmem:[#allocation3 + $0x1c] sm:$0xf] %vm4797_vm1, %v4704_v40  ;;  %v3067_v49 = vrot.slane %v2973_v54, 7  ;;  %v2874_v24 = vadd.f32 %v2825_v30, %v2567_v56  ;;  %v4472_v43 = vor.u32 %v4471_v47, %v4468_v34 }
 0x201   : > { %v2913_v36 = vadd.f32 %v7994_v27, %v2877_v60 }
 0x202   : > { %3176 = vst.msk [vmem:[#allocation2 + $0x84] sm:$0xe] %vm3145_vm14, %v3067_v49  ;;  %v2910_v15 = vadd.f32 %v7994_v27, %v2874_v24  ;;  %v3783_v55 = vld [vmem:[#allocation2 + $0x7c] sm:$0xf]  ;;  %v3068_v51 = vrot.slane %v3067_v49, 4  ;;  %v4473_v31 = vrot.slane %v4472_v43, 4  ;;  %v2571_v43 = vpop.f32.mrf.mxu1 }
 0x203   : > { %v2945_v44 = vmax.f32 %v2913_v36, 0.0  ;;  %v3932_v50 = vrot.slane %v3783_v55, 5  ;;  %v3784_v38 = vld [vmem:[#allocation2 + $0x80] sm:$0x1]  ;;  %v4162_v18 = vld [vmem:[#allocation2 + $0x7c] sm:$0xf]  ;;  %v2580_v55 = vadd.f32 %v8043_v63, %v7824_v17 }
 0x204   : > { %v2942_v57 = vmax.f32 %v2910_v15, 0.0  ;;  %v3935_v26 = vrot.slane %v3784_v38, 5  ;;  %v4475_v41 = vshrl.u32 %v4162_v18, 16  ;;  %v4478_v19 = vshll.u32 %v4162_v18, 16  ;;  %v4163_v45 = vld [vmem:[#allocation2 + $0x80] sm:$0x3] }
 0x205   : > { %v8182_v61 = vpack.c.bf16 %v2945_v44, %v2945_v44  ;;  %v3933_v58 = vsel %vm6709_vm9, %v6218_v59, %v3932_v50  ;;  %v3934_v10 = vrot.slane %v3932_v50, 4  ;;  %v4485_v60 = vshrl.u32 %v4163_v45, 16 }
 0x206   : > { %v2835_v21 = vpop.f32.mrf.mxu3  ;;  %v2974_v9 = vpack.c.bf16 %v2942_v57, %v2942_v57  ;;  %4026 = vrot.lane.b32.xlu1 %v3933_v58, %s6622_s8  ;;  %v4477_v62 = vrot.slane %v4475_v41, 5  ;;  %v4480_v29 = vrot.slane %v4478_v19, 6  ;;  %v4488_v7 = vshll.u32 %v4163_v45, 16 }
 0x207   : > { %v3077_v35 = vrot.slane %v8182_v61, 7  ;;  %v2878_v52 = vadd.f32 %v2835_v21, %v2577_v37  ;;  %v4003_v48 = vpop.permute.xlu1 %4002  ;;  %v8188_v13 = vld [vmem:[#allocation3 + $0x18] sm:$0xff]  ;;  %v2828_v40 = vpop.f32.mrf.mxu2  ;;  %v3936_v54 = vsel %vm6709_vm9, %v3934_v10, %v3935_v26  ;;  %v4487_v47 = vrot.slane %v4485_v60, 5 }
 0x208   : > { %v4007_v2 = vpop.permute.xlu2 %4006  ;;  %v6558_v8 = vld [vmem:[#allocation3 + $0x18] sm:$0xff]  ;;  %4103 = vst.msk [vmem:[#allocation3 + $0x20] sm:$0xf] %vm4094_vm12, %v4003_v48  ;;  %v3069_v30 = vrot.slane %v2974_v9, 7  ;;  %v2875_v36 = vadd.f32 %v2828_v40, %v2570_v4  ;;  %4028 = vrot.lane.b32.xlu2 %v3936_v54, %s6622_s8  ;;  %v4481_v34 = vor.u32 %v4480_v29, %v4477_v62  ;;  %6296 = vmatmul.msk.bf16.gmra.mxu3 %vm4963_vm3, %v8188_v13  ;;  %v4490_v24 = vrot.slane %v4488_v7, 6  ;;  %v2466_v61 = vpop.f32.mrf.mxu0  ;;  %v6577_v40 = vld [vmem:[%s6689_s29 + $0x18] sm:$0xff] }
 0x209   : > { %3182 = vst.msk [vmem:[#allocation2 + $0x9c] sm:$0xe] %vm3145_vm14, %v3077_v35  ;;  %v2914_v56 = vadd.f32 %v7994_v27, %v2878_v52  ;;  %6403 = vmatmul.msk.bf16.gmra.mxu1 %vm4963_vm3, %v6558_v8  ;;  %v4164_v37 = vld [vmem:[#allocation2 + $0x84] sm:$0xe]  ;;  %v3470_v44 = vrot.slane %v3468_v33, 5  ;;  %v3078_v57 = vrot.slane %v3077_v35, 4  ;;  %v2572_v41 = vadd.f32 %v2571_v43, %v2466_v61 }
 0x20a   : > { %4105 = vst.msk [vmem:[#allocation3 + $0x28] sm:$0xf] %vm4094_vm12, %v4007_v2  ;;  %6320 = vmatmul.msk.bf16.gmra.mxu0 %vm4963_vm3, %v8150_v3  ;;  %v3070_v59 = vsel %vm6742_vm11, %v3068_v51, %v3069_v30  ;;  %v3071_v0 = vrot.slane %v3069_v30, 4  ;;  %v2911_v4 = vadd.f32 %v7994_v27, %v2875_v36  ;;  %v4482_v15 = vsel %vm6719_vm10, %v4473_v31, %v4481_v34  ;;  %v3785_v10 = vld [vmem:[#allocation2 + $0x84] sm:$0xe] }
 0x20b   : > { %v2946_v22 = vmax.f32 %v2914_v56, 0.0  ;;  %3177 = vst.msk [vmem:[#allocation2 + $0x88] sm:$0xf] %vm280_vm0, %v3070_v59  ;;  %4729 = vrot.lane.b32.xlu0 %v4482_v15, %s6623_s30  ;;  %v4483_v12 = vrot.slane %v4481_v34, 4  ;;  %v4491_v33 = vor.u32 %v4490_v24, %v4487_v47  ;;  %v4494_v38 = vshrl.u32 %v4164_v37, 16  ;;  %6485 = vmatmul.msk.bf16.gmra.mxu2 %vm5695_vm2, %v6577_v40 }
 0x20c   : > { %v4706_v49 = vpop.permute.xlu0 %4705  ;;  %3178 = vst.msk [vmem:[#allocation2 + $0x8c] sm:$0x1] %vm289_vm15, %v3071_v0  ;;  %v2943_v51 = vmax.f32 %v2911_v4, 0.0  ;;  %v4497_v18 = vshll.u32 %v4164_v37, 16  ;;  %v3471_v58 = vor.u32 %v3470_v44, %v3467_v11  ;;  %v8222_v29 = vld [vmem:[#allocation2 + $0x80] sm:$0x1]  ;;  %v2582_v56 = vadd.f32 %v8056_v39, %v7867_v46 }
 0x20d   : > { %4806 = vst.msk [vmem:[#allocation3 + $0x20] sm:$0xf] %vm4797_vm1, %v4706_v49  ;;  %v2978_v3 = vpack.c.bf16 %v2946_v22, %v2946_v22  ;;  %v4492_v17 = vsel %vm6719_vm10, %v4483_v12, %v4491_v33  ;;  %v4496_v45 = vrot.slane %v4494_v38, 5  ;;  %v6219_v7 = vrot.slane %v3785_v10, 9 }
 0x20e   : > { %v2838_v50 = vpop.f32.mrf.mxu3  ;;  %v2975_v19 = vpack.c.bf16 %v2943_v51, %v2943_v51  ;;  %4731 = vrot.lane.b32.xlu1 %v4492_v17, %s6623_s30  ;;  %v4499_v8 = vrot.slane %v4497_v18, 6  ;;  %v8230_v30 = vrot.slane %v3471_v58, 4  ;;  %v3508_v24 = vshll.u32 %v8222_v29, 16 }
 0x20f   : > { %v3079_v21 = vrot.slane %v2978_v3, 7  ;;  %v2879_v63 = vadd.f32 %v2838_v50, %v2580_v55  ;;  %v4708_v26 = vpop.permute.xlu1 %4707  ;;  %v2830_v35 = vpop.f32.mrf.mxu2 }
 0x210   : > { %4807 = vst.msk [vmem:[#allocation3 + $0x24] sm:$0xf] %vm4797_vm1, %v4708_v26  ;;  %v3072_v9 = vrot.slane %v2975_v19, 7  ;;  %v2876_v62 = vadd.f32 %v2830_v35, %v2572_v41  ;;  %v4500_v49 = vor.u32 %v4499_v8, %v4496_v45  ;;  %v8247_v41 = vld [vmem:[#allocation2 + $0x7c] sm:$0xf] }
 0x211   : > { %v3080_v52 = vsel %vm6742_vm11, %v3078_v57, %v3079_v21  ;;  %v3081_v48 = vrot.slane %v3079_v21, 4  ;;  %v2915_v2 = vadd.f32 %v7994_v27, %v2879_v63 }
 0x212   : > { %3183 = vst.msk [vmem:[#allocation2 + $0xa0] sm:$0xf] %vm280_vm0, %v3080_v52  ;;  %v2912_v54 = vadd.f32 %v7994_v27, %v2876_v62  ;;  %v3786_v31 = vld [vmem:[#allocation2 + $0x88] sm:$0xf]  ;;  %v3073_v38 = vrot.slane %v3072_v9, 4  ;;  %v4501_v17 = vrot.slane %v4500_v49, 4 }
 0x213   : > { %3184 = vst.msk [vmem:[#allocation2 + $0xa4] sm:$0x1] %vm289_vm15, %v3081_v48  ;;  %v2947_v60 = vmax.f32 %v2915_v2, 0.0  ;;  %v3939_v34 = vrot.slane %v3786_v31, 5  ;;  %v3787_v47 = vld [vmem:[#allocation2 + $0x8c] sm:$0x1] }
 0x214   : > { %3179 = vst.msk [vmem:[#allocation2 + $0x90] sm:$0xe] %vm3145_vm14, %v3072_v9  ;;  %v4165_v22 = vld [vmem:[#allocation2 + $0x88] sm:$0xf]  ;;  %v2944_v37 = vmax.f32 %v2912_v54, 0.0  ;;  %v3942_v44 = vrot.slane %v3787_v47, 5 }
 0x215   : > { %v2979_v36 = vpack.c.bf16 %v2947_v60, %v2947_v60  ;;  %v4503_v59 = vshrl.u32 %v4165_v22, 16  ;;  %v4506_v46 = vshll.u32 %v4165_v22, 16  ;;  %v4166_v39 = vld [vmem:[#allocation2 + $0x8c] sm:$0x3]  ;;  %v3940_v4 = vsel %vm6709_vm9, %v6219_v7, %v3939_v34  ;;  %v4170_v52 = vld [vmem:[#allocation2 + $0x9c] sm:$0xe] }
 0x216   : > { %v2840_v11 = vpop.f32.mrf.mxu3  ;;  %v3941_v55 = vrot.slane %v3939_v34, 4  ;;  %v2976_v12 = vpack.c.bf16 %v2944_v37, %v2944_v37  ;;  %4030 = vrot.lane.b32.xlu2 %v3940_v4, %s6622_s8  ;;  %v4513_v50 = vshrl.u32 %v4166_v39, 16  ;;  %v4516_v57 = vshll.u32 %v4166_v39, 16  ;;  %v8261_v9 = vld [vmem:[#allocation2 + $0x9c] sm:$0xe] }
 0x217   : > { %v3082_v0 = vrot.slane %v2979_v36, 7  ;;  %v2880_v15 = vadd.f32 %v2840_v11, %v2582_v56  ;;  %v8236_v61 = vld [vmem:[#allocation3 + $0x20] sm:$0xff]  ;;  %v4505_v33 = vrot.slane %v4503_v59, 5  ;;  %v4508_v51 = vrot.slane %v4506_v46, 6  ;;  %v8277_v39 = vld [vmem:[%s8807_s2] ss:$0 sm:$0xff] }
 0x218   : > { %v6559_v3 = vld [vmem:[#allocation3 + $0x20] sm:$0xff]  ;;  %v3943_v43 = vsel %vm6709_vm9, %v3941_v55, %v3942_v44  ;;  %v3074_v21 = vrot.slane %v2976_v12, 7  ;;  %6297 = vmatmul.msk.bf16.gmra.mxu3 %vm4963_vm3, %v8236_v61  ;;  %v4515_v26 = vrot.slane %v4513_v50, 5  ;;  %v4518_v45 = vrot.slane %v4516_v57, 6 }
 0x219   : > { %3185 = vst.msk [vmem:[#allocation2 + $0xa8] sm:$0xe] %vm3145_vm14, %v3082_v0  ;;  %v2916_v18 = vadd.f32 %v7994_v27, %v2880_v15  ;;  %6404 = vmatmul.msk.bf16.gmra.mxu1 %vm4963_vm3, %v6559_v3  ;;  %4032 = vrot.lane.b32.xlu0 %v3943_v43, %s6622_s8  ;;  %v4509_v63 = vor.u32 %v4508_v51, %v4505_v33  ;;  %v8257_v8 = vld [vmem:[#allocation2 + $0xa0] sm:$0xf]  ;;  %v3498_v62 = vshll.u32 %v8247_v41, 16  ;;  %v3083_v60 = vrot.slane %v3082_v0, 4  ;;  %v4712_v51 = vpop.permute.xlu2 %4711 }
 0x21a   : > { %v2585_v27 = vadd.f32 %v8076_v1, %v7902_v16  ;;  %6321 = vmatmul.msk.bf16.gmra.mxu0 %vm4963_vm3, %v8188_v13  ;;  %v3075_v48 = vsel %vm6742_vm11, %v3073_v38, %v3074_v21  ;;  %v3076_v35 = vrot.slane %v3074_v21, 4  ;;  %v4519_v1 = vor.u32 %v4518_v45, %v4515_v26  ;;  %v8270_v11 = vld [vmem:[#allocation2 + $0xa4] sm:$0x1]  ;;  %v4171_v44 = vld [vmem:[#allocation2 + $0xa0] sm:$0xf] }
 0x21b   : > { %v2948_v19 = vmax.f32 %v2916_v18, 0.0  ;;  %v4167_v58 = vld [vmem:[#allocation2 + $0x90] sm:$0xe]  ;;  %v4510_v2 = vsel %vm6719_vm10, %v4501_v17, %v4509_v63  ;;  %v4511_v10 = vrot.slane %v4509_v63, 4  ;;  %3180 = vst.msk [vmem:[#allocation2 + $0x94] sm:$0xf] %vm280_vm0, %v3075_v48  ;;  %v2587_v57 = vadd.f32 %v8100_v42, %v7933_v23 }
 0x21c   : > { %4733 = vrot.lane.b32.xlu1 %v4510_v2, %s6623_s30  ;;  %v4522_v13 = vshrl.u32 %v4167_v58, 16  ;;  %3181 = vst.msk [vmem:[#allocation2 + $0x98] sm:$0x1] %vm289_vm15, %v3076_v35  ;;  %v4525_v56 = vshll.u32 %v4167_v58, 16  ;;  %v4550_v54 = vshrl.u32 %v4170_v52, 16  ;;  %v4553_v31 = vshll.u32 %v4170_v52, 16 }
 0x21d   : > { %v2980_v16 = vpack.c.bf16 %v2948_v19, %v2948_v19  ;;  %v4520_v36 = vsel %vm6719_vm10, %v4511_v10, %v4519_v1  ;;  %v3788_v47 = vld [vmem:[#allocation2 + $0x90] sm:$0xe]  ;;  %v3953_v22 = vrot.slane %v8257_v8, 5  ;;  %v6221_v37 = vrot.slane %v8261_v9, 9 }
 0x21e   : > { %v2843_v40 = vpop.f32.mrf.mxu3  ;;  %4735 = vrot.lane.b32.xlu2 %v4520_v36, %s6623_s30  ;;  %v4524_v49 = vrot.slane %v4522_v13, 5  ;;  %v4527_v15 = vrot.slane %v4525_v56, 6  ;;  %v6220_v55 = vrot.slane %v3788_v47, 9  ;;  %v8281_v3 = vrot.slane %v4550_v54, 5  ;;  %v4172_v56 = vld [vmem:[#allocation2 + $0xa4] sm:$0x3] }
 0x21f   : > { %v3084_v7 = vrot.slane %v2980_v16, 7  ;;  %v2881_v34 = vadd.f32 %v2843_v40, %v2585_v27  ;;  %v8283_v12 = vrot.slane %v4553_v31, 6  ;;  %v8287_v33 = vrot.slane %v3508_v24, 5  ;;  %v6578_v16 = vld [vmem:[%s6689_s29 + $0x20] sm:$0xff] }
 0x220   : > { %v3955_v38 = vrot.slane %v3953_v22, 4  ;;  %v3956_v18 = vrot.slane %v8270_v11, 5  ;;  %v4559_v43 = vshrl.u32 %v4171_v44, 16  ;;  %v8297_v21 = vadd.f32 %v8129_v5, %v7955_v25  ;;  %6486 = vmatmul.msk.bf16.gmra.mxu2 %vm5695_vm2, %v6578_v16 }
 0x221   : > { %v3085_v59 = vsel %vm6742_vm11, %v3083_v60, %v3084_v7  ;;  %v3086_v46 = vrot.slane %v3084_v7, 4  ;;  %v2917_v0 = vadd.f32 %v8277_v39, %v2881_v34  ;;  %v4528_v19 = vor.u32 %v4527_v15, %v4524_v49  ;;  %v4173_v15 = vld [vmem:[#allocation2 + $0xa8] sm:$0xe] }
 0x222   : > { %v4009_v4 = vpop.permute.xlu0 %4008  ;;  %3186 = vst.msk [vmem:[#allocation2 + $0xac] sm:$0xf] %vm280_vm0, %v3085_v59  ;;  %v3789_v24 = vld [vmem:[#allocation2 + $0x94] sm:$0xf]  ;;  %v4562_v45 = vshll.u32 %v4171_v44, 16  ;;  %v4556_v5 = vor.u32 %v8283_v12, %v8281_v3  ;;  %v4561_v7 = vrot.slane %v4559_v43, 5  ;;  %v8316_v44 = vadd.f32 %v8141_v53, %v7987_v28  ;;  %v8318_v59 = vpop.permute.xlu2 %4713 }
 0x223   : > { %3187 = vst.msk [vmem:[#allocation2 + $0xb0] sm:$0x1] %vm289_vm15, %v3086_v46  ;;  %v2949_v50 = vmax.f32 %v2917_v0, 0.0  ;;  %v4168_v17 = vld [vmem:[#allocation2 + $0x94] sm:$0xf]  ;;  %v3946_v26 = vrot.slane %v3789_v24, 5  ;;  %v3954_v0 = vsel %vm6709_vm9, %v6221_v37, %v3953_v22  ;;  %v3957_v9 = vsel %vm6709_vm9, %v3955_v38, %v3956_v18 }
 0x224   : > { %4106 = vst.msk [vmem:[#allocation3 + $0x2c] sm:$0xf] %vm4094_vm12, %v4009_v4  ;;  %v3790_v27 = vld [vmem:[#allocation2 + $0x98] sm:$0x1]  ;;  %v4531_v58 = vshrl.u32 %v4168_v17, 16  ;;  %v4534_v25 = vshll.u32 %v4168_v17, 16 }
 0x225   : > { %v4710_v29 = vpop.permute.xlu1 %4709  ;;  %v2981_v63 = vpack.c.bf16 %v2949_v50, %v2949_v50  ;;  %4809 = vst.msk [vmem:[#allocation3 + $0x2c] sm:$0xf] %vm4797_vm1, %v4712_v51  ;;  %v3949_v42 = vrot.slane %v3790_v27, 5  ;;  %v3947_v48 = vsel %vm6709_vm9, %v6220_v55, %v3946_v26  ;;  %v3948_v2 = vrot.slane %v3946_v26, 4  ;;  %v4169_v10 = vld [vmem:[#allocation2 + $0x98] sm:$0x3] }
 0x226   : > { %4808 = vst.msk [vmem:[#allocation3 + $0x28] sm:$0xf] %vm4797_vm1, %v4710_v29  ;;  %v2845_v23 = vpop.f32.mrf.mxu3  ;;  %4034 = vrot.lane.b32.xlu0 %v3947_v48, %s6622_s8  ;;  %v4533_v1 = vrot.slane %v4531_v58, 5  ;;  %v4536_v13 = vrot.slane %v4534_v25, 6  ;;  %v4541_v60 = vshrl.u32 %v4169_v10, 16  ;;  %v4544_v40 = vshll.u32 %v4169_v10, 16 }
 0x227   : > { %v3087_v52 = vrot.slane %v2981_v63, 7  ;;  %v2882_v35 = vadd.f32 %v2845_v23, %v2587_v57  ;;  %v3950_v31 = vsel %vm6709_vm9, %v3948_v2, %v3949_v42  ;;  %v4564_v36 = vrot.slane %v4562_v45, 6  ;;  %v8339_v57 = vld [vmem:[#allocation2 + $0xa8] sm:$0xe]  ;;  %v8356_v2 = vld [vmem:[#allocation2 + $0x70] sm:$0xf] }
 0x228   : > { %4036 = vrot.lane.b32.xlu1 %v3950_v31, %s6622_s8  ;;  %v4529_v34 = vrot.slane %v4528_v19, 4  ;;  %v4537_v47 = vor.u32 %v4536_v13, %v4533_v1  ;;  %v4543_v49 = vrot.slane %v4541_v60, 5  ;;  %v4546_v11 = vrot.slane %v4544_v40, 6 }
 0x229   : > { %3188 = vst.msk [vmem:[#allocation2 + $0xb4] sm:$0xe] %vm3145_vm14, %v3087_v52  ;;  %v2918_v54 = vadd.f32 %v8277_v39, %v2882_v35  ;;  %v4569_v4 = vshrl.u32 %v4172_v56, 16  ;;  %v4174_v55 = vld [vmem:[#allocation2 + $0xac] sm:$0xf]  ;;  %v4572_v12 = vshll.u32 %v4172_v56, 16  ;;  %v8337_v22 = vor.u32 %v4564_v36, %v4561_v7 }
 0x22a   : > { %6322 = vmatmul.msk.bf16.gmra.mxu0 %vm4963_vm3, %v8236_v61  ;;  %v4538_v28 = vsel %vm6719_vm10, %v4529_v34, %v4537_v47  ;;  %v4539_v53 = vrot.slane %v4537_v47, 4  ;;  %v4547_v3 = vor.u32 %v4546_v11, %v4543_v49  ;;  %v8335_v50 = vrot.slane %v4556_v5, 4  ;;  %v8347_v18 = vld [vmem:[#allocation2 + $0xac] sm:$0xf]  ;;  %v8350_v45 = vld [vmem:[#allocation2 + $0xb0] sm:$0x1] }
 0x22b   : > { %v2950_v46 = vmax.f32 %v2918_v54, 0.0  ;;  %4737 = vrot.lane.b32.xlu2 %v4538_v28, %s6623_s30  ;;  %v3088_v37 = vrot.slane %v3087_v52, 4  ;;  %v4578_v29 = vshrl.u32 %v4173_v15, 16  ;;  %v4581_v24 = vshll.u32 %v4173_v15, 16  ;;  %v4175_v48 = vld [vmem:[#allocation2 + $0xb0] sm:$0x3] }
 0x22c   : > { %v4587_v17 = vshrl.u32 %v4174_v55, 16  ;;  %v4548_v26 = vsel %vm6719_vm10, %v4539_v53, %v4547_v3  ;;  %v4571_v38 = vrot.slane %v4569_v4, 5  ;;  %v4574_v19 = vrot.slane %v4572_v12, 6  ;;  %v6579_v15 = vld [vmem:[%s6689_s29 + $0x28] sm:$0xff] }
 0x22d   : > { %v2982_v51 = vpack.c.bf16 %v2950_v46, %v2950_v46  ;;  %v8331_v61 = vld [vmem:[#allocation3 + $0x28] sm:$0xff]  ;;  %v4580_v23 = vrot.slane %v4578_v29, 5  ;;  %v4583_v42 = vrot.slane %v4581_v24, 6  ;;  %v4590_v58 = vshll.u32 %v4174_v55, 16  ;;  %v8392_v29 = vld [vmem:[#allocation2 + $0x74] sm:$0x1] }
 0x22e   : > { %v6560_v8 = vld [vmem:[#allocation3 + $0x28] sm:$0xff]  ;;  %v2848_v43 = vpop.f32.mrf.mxu3  ;;  %6298 = vmatmul.msk.bf16.gmra.mxu3 %vm4963_vm3, %v8331_v61  ;;  %4739 = vrot.lane.b32.xlu0 %v4548_v26, %s6623_s30  ;;  %v6222_v52 = vrot.slane %v8339_v57, 9  ;;  %v4566_v16 = vsel %vm6719_vm10, %v8335_v50, %v8337_v22  ;;  %v3960_v1 = vrot.slane %v8347_v18, 5  ;;  %v4589_v13 = vrot.slane %v4587_v17, 5 }
 0x22f   : > { %v3089_v63 = vrot.slane %v2982_v51, 7  ;;  %v2883_v27 = vadd.f32 %v2848_v43, %v8297_v21  ;;  %6405 = vmatmul.msk.bf16.gmra.mxu1 %vm4963_vm3, %v6560_v8  ;;  %v4592_v60 = vrot.slane %v4590_v58, 6  ;;  %v4567_v54 = vrot.slane %v8337_v22, 4  ;;  %v3227_v57 = vld [vmem:[#allocation2 + $0x84] sm:$0xf] }
 0x230   : > { %v4176_v35 = vld [vmem:[#allocation2 + $0xb4] sm:$0xe]  ;;  %4038 = vrot.lane.b32.xlu1 %v3954_v0, %s6622_s8  ;;  %v4575_v34 = vor.u32 %v4574_v19, %v4571_v38  ;;  %v3963_v47 = vrot.slane %v8350_v45, 5  ;;  %v4584_v49 = vor.u32 %v4583_v42, %v4580_v23  ;;  %v4597_v11 = vshrl.u32 %v4175_v48, 16  ;;  %6487 = vmatmul.msk.bf16.gmra.mxu2 %vm5695_vm2, %v6579_v15 }
 0x231   : > { %v3090_v25 = vsel %vm6742_vm11, %v3088_v37, %v3089_v63  ;;  %v3091_v21 = vrot.slane %v3089_v63, 4  ;;  %v2919_v5 = vadd.f32 %v8277_v39, %v2883_v27  ;;  %v4606_v31 = vshrl.u32 %v4176_v35, 16  ;;  %v8369_v46 = vld [vmem:[#allocation2 + $0xb4] sm:$0xe] }
 0x232   : > { %3189 = vst.msk [vmem:[#allocation2 + $0xb8] sm:$0xf] %vm280_vm0, %v3090_v25  ;;  %v4017_v56 = vpop.permute.xlu2 %4016  ;;  %v4609_v7 = vshll.u32 %v4176_v35, 16  ;;  %v4600_v4 = vshll.u32 %v4175_v48, 16  ;;  %v8377_v55 = vrot.slane %v3498_v62, 5  ;;  %v3502_v28 = vshrl.u32 %v8247_v41, 16 }
 0x233   : > { %v4011_v10 = vpop.permute.xlu0 %4010  ;;  %3190 = vst.msk [vmem:[#allocation2 + $0xbc] sm:$0x1] %vm289_vm15, %v3091_v21  ;;  %v2951_v40 = vmax.f32 %v2919_v5, 0.0  ;;  %4040 = vrot.lane.b32.xlu2 %v3957_v9, %s6622_s8  ;;  %v3962_v3 = vrot.slane %v3960_v1, 4  ;;  %v8381_v12 = vor.u32 %v4592_v60, %v4589_v13  ;;  %v4608_v51 = vrot.slane %v4606_v31, 5 }
 0x234   : > { %4107 = vst.msk [vmem:[#allocation3 + $0x30] sm:$0xf] %vm4094_vm12, %v4011_v10  ;;  %v3474_v8 = vshll.u32 %v8356_v2, 16  ;;  %v4611_v50 = vrot.slane %v4609_v7, 6  ;;  %v3504_v22 = vrot.slane %v3502_v28, 4  ;;  %v4576_v41 = vsel %vm6719_vm10, %v4567_v54, %v4575_v34 }
 0x235   : > { %v4013_v36 = vpop.permute.xlu1 %4012  ;;  %v2983_v0 = vpack.c.bf16 %v2951_v40, %v2951_v40  ;;  %4810 = vst.msk [vmem:[#allocation3 + $0x30] sm:$0xf] %vm4797_vm1, %v8318_v59  ;;  %v4599_v62 = vrot.slane %v4597_v11, 5  ;;  %v6223_v37 = vrot.slane %v8369_v46, 9  ;;  %v4585_v17 = vrot.slane %v4584_v49, 4 }
 0x236   : > { %4110 = vst.msk [vmem:[#allocation3 + $0x3c] sm:$0xf] %vm4094_vm12, %v4017_v56  ;;  %v2850_v53 = vpop.f32.mrf.mxu3  ;;  %4741 = vrot.lane.b32.xlu0 %v4566_v16, %s6623_s30  ;;  %v8390_v43 = vrot.slane %v3474_v8, 5  ;;  %v3505_v26 = vor.u32 %v3504_v22, %v8377_v55  ;;  %v4595_v38 = vrot.slane %v8381_v12, 4  ;;  %v3961_v42 = vsel %vm6709_vm9, %v6222_v52, %v3960_v1 }
 0x237   : > { %v3092_v59 = vrot.slane %v2983_v0, 7  ;;  %4108 = vst.msk [vmem:[#allocation3 + $0x34] sm:$0xf] %vm4094_vm12, %v4013_v36  ;;  %v2884_v9 = vadd.f32 %v2850_v53, %v8316_v44  ;;  %v4602_v44 = vrot.slane %v4600_v4, 6  ;;  %v4612_v25 = vor.u32 %v4611_v50, %v4608_v51  ;;  %v3224_v4 = vld [vmem:[#allocation2 + $0x78] sm:$0xf] }
 0x238   : > { %4743 = vrot.lane.b32.xlu1 %v4576_v41, %s6623_s30  ;;  %v3477_v45 = vsel %vm7006_vm4, %v8230_v30, %v8390_v43  ;;  %v3964_v5 = vsel %vm6709_vm9, %v3962_v3, %v3963_v47  ;;  %v4594_v30 = vsel %vm6719_vm10, %v4585_v17, %v8381_v12  ;;  %v3506_v35 = vrot.slane %v3505_v26, 4  ;;  %v3228_v3 = vld [vmem:[#allocation2 + $0x88] sm:$0xf] }
 0x239   : > { %3191 = vst.msk [vmem:[#allocation2 + $0xc0] sm:$0xe] %vm3145_vm14, %v3092_v59  ;;  %v2920_v24 = vadd.f32 %v8277_v39, %v2884_v9  ;;  %v3798_v63 = vld [vmem:[#allocation2 + $0xb8] sm:$0xf]  ;;  %v3478_v39 = vshrl.u32 %v8356_v2, 16  ;;  %v3093_v2 = vrot.slane %v3092_v59, 4 }
 0x23a   : > { %v3967_v18 = vrot.slane %v3798_v63, 5  ;;  %v4177_v19 = vld [vmem:[#allocation2 + $0xb8] sm:$0xf]  ;;  %6323 = vmatmul.msk.bf16.gmra.mxu0 %vm4963_vm3, %v8331_v61  ;;  %v3799_v58 = vld [vmem:[#allocation2 + $0xbc] sm:$0x1]  ;;  %v4603_v61 = vor.u32 %v4602_v44, %v4599_v62  ;;  %v3484_v16 = vshll.u32 %v8392_v29, 16  ;;  %v3511_v60 = vsel %vm7006_vm4, %v3506_v35, %v8287_v33 }
 0x23b   : > { %v4716_v27 = vpop.permute.xlu0 %4715  ;;  %v2952_v23 = vmax.f32 %v2920_v24, 0.0  ;;  %v4615_v21 = vshrl.u32 %v4177_v19, 16  ;;  %v4618_v48 = vshll.u32 %v4177_v19, 16  ;;  %3734 = vst.msk [vmem:[#allocation3 + $0x48] sm:$0xf] %vm280_vm0, %v3477_v45  ;;  %4042 = vrot.lane.b32.xlu2 %v3961_v42, %s6622_s8  ;;  %v3970_v13 = vrot.slane %v3799_v58, 5 }
 0x23c   : > { %4811 = vst.msk [vmem:[#allocation3 + $0x34] sm:$0xf] %vm4797_vm1, %v4716_v27  ;;  %v4178_v10 = vld [vmem:[#allocation2 + $0xbc] sm:$0x3]  ;;  %v3969_v1 = vrot.slane %v3967_v18, 4  ;;  %v3480_v40 = vrot.slane %v3478_v39, 4  ;;  %v4604_v28 = vsel %vm6719_vm10, %v4595_v38, %v4603_v61  ;;  %v3968_v32 = vsel %vm6709_vm9, %v6223_v37, %v3967_v18 }
 0x23d   : > { %v2984_v52 = vpack.c.bf16 %v2952_v23, %v2952_v23  ;;  %v8423_v54 = vrot.slane %v4612_v25, 4  ;;  %v4617_v31 = vrot.slane %v4615_v21, 5  ;;  %3737 = vst.msk [vmem:[#allocation3 + $0x54] sm:$0xf] %vm280_vm0, %v3511_v60  ;;  %v3513_v7 = vshrl.u32 %v3227_v57, 16  ;;  %v6580_v63 = vld [vmem:[%s6689_s29 + $0x30] sm:$0xff] }
 0x23e   : > { %4044 = vrot.lane.b32.xlu0 %v3964_v5, %s6622_s8  ;;  %v4620_v34 = vrot.slane %v4618_v48, 6  ;;  %v4625_v47 = vshrl.u32 %v4178_v10, 16  ;;  %v3481_v11 = vor.u32 %v3480_v40, %v8390_v43  ;;  %v3516_v0 = vshll.u32 %v3227_v57, 16  ;;  %v3229_v24 = vld [vmem:[#allocation2 + $0x8c] sm:$0x1] }
 0x23f   : > { %v3094_v56 = vrot.slane %v2984_v52, 7  ;;  %v4628_v53 = vshll.u32 %v4178_v10, 16  ;;  %v3971_v8 = vsel %vm6709_vm9, %v3969_v1, %v3970_v13  ;;  %v3486_v9 = vrot.slane %v3484_v16, 5  ;;  %v3234_v21 = vld [vmem:[#allocation2 + $0xa0] sm:$0xf] }
 0x240   : > { %v4019_v36 = vpop.permute.xlu2 %4018  ;;  %v4179_v49 = vld [vmem:[#allocation2 + $0xc0] sm:$0xe]  ;;  %4745 = vrot.lane.b32.xlu1 %v4594_v30, %s6623_s30  ;;  %v3482_v22 = vrot.slane %v3481_v11, 4  ;;  %v3515_v41 = vrot.slane %v3513_v7, 4  ;;  %v3518_v62 = vrot.slane %v3516_v0, 5  ;;  %v8444_v46 = vor.u32 %v4620_v34, %v4617_v31  ;;  %6488 = vmatmul.msk.bf16.gmra.mxu2 %vm5695_vm2, %v6580_v63 }
 0x241   : > { %v3095_v33 = vsel %vm6742_vm11, %v3093_v2, %v3094_v56  ;;  %v3096_v15 = vrot.slane %v3094_v56, 4  ;;  %4111 = vst.msk [vmem:[#allocation3 + $0x40] sm:$0xf] %vm4094_vm12, %v4019_v36  ;;  %v4634_v59 = vshrl.u32 %v4179_v49, 16  ;;  %v4637_v50 = vshll.u32 %v4179_v49, 16 }
 0x242   : > { %3192 = vst.msk [vmem:[#allocation2 + $0xc4] sm:$0xf] %vm280_vm0, %v3095_v33  ;;  %v8446_v43 = vrot.slane %v4625_v47, 5  ;;  %v3522_v37 = vshll.u32 %v3228_v3, 16  ;;  %v3526_v29 = vshrl.u32 %v3228_v3, 16  ;;  %v4630_v17 = vrot.slane %v4628_v53, 6 }
 0x243   : > { %v6544_v12 = vld [vmem:[#allocation3 + $0x30] sm:$0xff]  ;;  %3193 = vst.msk [vmem:[#allocation2 + $0xc8] sm:$0x1] %vm289_vm15, %v3096_v15  ;;  %4747 = vrot.lane.b32.xlu2 %v4604_v28, %s6623_s30  ;;  %v8449_v44 = vld [vmem:[#allocation2 + $0xc0] sm:$0xe]  ;;  %v3487_v26 = vsel %vm7006_vm4, %v3482_v22, %v3486_v9  ;;  %v3519_v27 = vor.u32 %v3518_v62, %v3515_v41  ;;  %v3489_v38 = vshrl.u32 %v3224_v4, 16  ;;  %v4622_v2 = vsel %vm6719_vm10, %v8423_v54, %v8444_v46 }
 0x244   : > { %v6561_v51 = vld [vmem:[#allocation3 + $0x30] sm:$0xff]  ;;  %6299 = vmatmul.msk.bf16.gmra.mxu3 %vm4963_vm3, %v6544_v12  ;;  %v4636_v18 = vrot.slane %v4634_v59, 5  ;;  %3735 = vst.msk [vmem:[#allocation3 + $0x4c] sm:$0xf] %vm280_vm0, %v3487_v26  ;;  %v3524_v19 = vrot.slane %v3522_v37, 5  ;;  %v3492_v45 = vshll.u32 %v3224_v4, 16  ;;  %v4631_v52 = vor.u32 %v4630_v17, %v8446_v43 }
 0x245   : > { %6406 = vmatmul.msk.bf16.gmra.mxu1 %vm4963_vm3, %v6561_v51  ;;  %v3528_v39 = vrot.slane %v3526_v29, 4  ;;  %v4639_v23 = vrot.slane %v4637_v50, 6  ;;  %v3520_v42 = vrot.slane %v3519_v27, 4  ;;  %v3491_v58 = vrot.slane %v3489_v38, 4  ;;  %v3230_v4 = vld [vmem:[#allocation2 + $0x90] sm:$0xf] }
 0x246   : > { %v3532_v25 = vshll.u32 %v3229_v24, 16  ;;  %4046 = vrot.lane.b32.xlu0 %v3968_v32, %s6622_s8  ;;  %v4623_v30 = vrot.slane %v8444_v46, 4  ;;  %v6224_v48 = vrot.slane %v8449_v44, 9  ;;  %v3494_v35 = vrot.slane %v3492_v45, 5  ;;  %v3231_v38 = vld [vmem:[#allocation2 + $0x94] sm:$0xf] }
 0x247   : > { %v3529_v57 = vor.u32 %v3528_v39, %v3524_v19  ;;  %v3525_v16 = vsel %vm7006_vm4, %v3520_v42, %v3524_v19  ;;  %v3570_v56 = vshll.u32 %v3234_v21, 16  ;;  %v4640_v31 = vor.u32 %v4639_v23, %v4636_v18  ;;  %v3233_v18 = vld [vmem:[#allocation2 + $0x9c] sm:$0xf] }
 0x248   : > { %v4015_v5 = vpop.permute.xlu1 %4014  ;;  %4048 = vrot.lane.b32.xlu1 %v3971_v8, %s6622_s8  ;;  %3738 = vst.msk [vmem:[#allocation3 + $0x58] sm:$0xf] %vm280_vm0, %v3525_v16  ;;  %v3495_v7 = vor.u32 %v3494_v35, %v3491_v58  ;;  %v3534_v36 = vrot.slane %v3532_v25, 5  ;;  %v3574_v32 = vshrl.u32 %v3234_v21, 16  ;;  %v3236_v8 = vld [vmem:[#allocation2 + $0xa8] sm:$0xf]  ;;  %v4632_v59 = vsel %vm6719_vm10, %v4623_v30, %v4631_v52  ;;  %v4724_v42 = vpop.permute.xlu2 %4723 }
 0x249   : > { %4109 = vst.msk [vmem:[#allocation3 + $0x38] sm:$0xf] %vm4094_vm12, %v4015_v5  ;;  %v3801_v61 = vld [vmem:[#allocation2 + $0xc4] sm:$0xf]  ;;  %v3530_v34 = vrot.slane %v3529_v57, 4  ;;  %v8474_v51 = vrot.slane %v3570_v56, 5 }
 0x24a   : > { %v4180_v10 = vld [vmem:[#allocation2 + $0xc4] sm:$0xf]  ;;  %v3974_v1 = vrot.slane %v3801_v61, 5  ;;  %v3802_v13 = vld [vmem:[#allocation2 + $0xc8] sm:$0x1]  ;;  %6324 = vmatmul.msk.bf16.gmra.mxu0 %vm4963_vm3, %v6544_v12  ;;  %v3496_v53 = vrot.slane %v3495_v7, 4 }
 0x24b   : > { %v4643_v60 = vshrl.u32 %v4180_v10, 16  ;;  %v4646_v40 = vshll.u32 %v4180_v10, 16  ;;  %v4181_v54 = vld [vmem:[#allocation2 + $0xc8] sm:$0x3]  ;;  %v3977_v49 = vrot.slane %v3802_v13, 5  ;;  %4749 = vrot.lane.b32.xlu2 %v4622_v2, %s6623_s30  ;;  %v3535_v3 = vsel %vm7006_vm4, %v3530_v34, %v3534_v36  ;;  %v6581_v35 = vld [vmem:[%s6689_s29 + $0x38] sm:$0xff] }
 0x24c   : > { %v3976_v47 = vrot.slane %v3974_v1, 4  ;;  %v4653_v15 = vshrl.u32 %v4181_v54, 16  ;;  %v4656_v28 = vshll.u32 %v4181_v54, 16  ;;  %v3235_v12 = vld [vmem:[#allocation2 + $0xa4] sm:$0x1]  ;;  %v4641_v9 = vrot.slane %v4640_v31, 4 }
 0x24d   : > { %v4645_v11 = vrot.slane %v4643_v60, 5  ;;  %v4648_v0 = vrot.slane %v4646_v40, 6  ;;  %v4718_v33 = vpop.permute.xlu0 %4717  ;;  %v3501_v22 = vsel %vm7006_vm4, %v3496_v53, %v8377_v55  ;;  %3739 = vst.msk [vmem:[#allocation3 + $0x5c] sm:$0xf] %vm280_vm0, %v3535_v3  ;;  %v3975_v62 = vsel %vm6709_vm9, %v6224_v48, %v3974_v1  ;;  %v3232_v30 = vld [vmem:[#allocation2 + $0x98] sm:$0x1] }
 0x24e   : > { %4812 = vst.msk [vmem:[#allocation3 + $0x38] sm:$0xf] %vm4797_vm1, %v4718_v33  ;;  %4751 = vrot.lane.b32.xlu0 %v4632_v59, %s6623_s30  ;;  %v3576_v46 = vrot.slane %v3574_v32, 4  ;;  %v3580_v43 = vshll.u32 %v3235_v12, 16  ;;  %v3585_v37 = vshrl.u32 %v3236_v8, 16  ;;  %v4655_v29 = vrot.slane %v4653_v15, 5 }
 0x24f   : > { %v4649_v50 = vor.u32 %v4648_v0, %v4645_v11  ;;  %3736 = vst.msk [vmem:[#allocation3 + $0x50] sm:$0xf] %vm280_vm0, %v3501_v22  ;;  %v4658_v24 = vrot.slane %v4656_v28, 6  ;;  %v3588_v17 = vshll.u32 %v3236_v8, 16  ;;  %v3537_v44 = vshrl.u32 %v3230_v4, 16 }
 0x250   : > { %v4720_v41 = vpop.permute.xlu1 %4719  ;;  %4050 = vrot.lane.b32.xlu1 %v3975_v62, %s6622_s8  ;;  %v3978_v55 = vsel %vm6709_vm9, %v3976_v47, %v3977_v49  ;;  %v3577_v63 = vor.u32 %v3576_v46, %v8474_v51  ;;  %v3587_v26 = vrot.slane %v3585_v37, 4  ;;  %v3540_v27 = vshll.u32 %v3230_v4, 16  ;;  %v3237_v60 = vld [vmem:[#allocation2 + $0xac] sm:$0xf]  ;;  %6489 = vmatmul.msk.bf16.gmra.mxu2 %vm5695_vm2, %v6581_v35  ;;  %v3238_v0 = vld [vmem:[#allocation2 + $0xb0] sm:$0x1] }
 0x251   : > { %4813 = vst.msk [vmem:[#allocation3 + $0x3c] sm:$0xf] %vm4797_vm1, %v4720_v41  ;;  %v4651_v19 = vrot.slane %v4649_v50, 4  ;;  %v3590_v45 = vrot.slane %v3588_v17, 5  ;;  %v3539_v39 = vrot.slane %v3537_v44, 4  ;;  %v3546_v23 = vshll.u32 %v3231_v38, 16 }
 0x252   : > { %v3578_v58 = vrot.slane %v3577_v63, 4  ;;  %v3582_v25 = vrot.slane %v3580_v43, 5  ;;  %v3542_v21 = vrot.slane %v3540_v27, 5  ;;  %v3550_v5 = vshrl.u32 %v3231_v38, 16  ;;  %v3239_v43 = vld [vmem:[#allocation2 + $0xb4] sm:$0xf] }
 0x253   : > { %4052 = vrot.lane.b32.xlu2 %v3978_v55, %s6622_s8  ;;  %v4659_v48 = vor.u32 %v4658_v24, %v4655_v29  ;;  %v3548_v57 = vrot.slane %v3546_v23, 5  ;;  %v3561_v2 = vshrl.u32 %v3233_v18, 16  ;;  %v3564_v52 = vshll.u32 %v3233_v18, 16  ;;  %v3805_v27 = vld [vmem:[#allocation2 + $0xd4] sm:$0x1] }
 0x254   : > { %v3583_v61 = vsel %vm7006_vm4, %v3578_v58, %v3582_v25  ;;  %v3591_v10 = vor.u32 %v3590_v45, %v3587_v26  ;;  %v3543_v16 = vor.u32 %v3542_v21, %v3539_v39  ;;  %v3552_v1 = vrot.slane %v3550_v5, 4  ;;  %v8526_v26 = vld [vmem:[#allocation2 + $0xd0] sm:$0xf]  ;;  %v4182_v38 = vld [vmem:[#allocation2 + $0xcc] sm:$0xe] }
 0x255   : > { %v4650_v13 = vsel %vm6719_vm10, %v4641_v9, %v4649_v50  ;;  %3743 = vst.msk [vmem:[#allocation3 + $0x6c] sm:$0xf] %vm280_vm0, %v3583_v61  ;;  %v3556_v40 = vshll.u32 %v3232_v30, 16  ;;  %v3563_v56 = vrot.slane %v3561_v2, 4  ;;  %v3594_v7 = vshll.u32 %v3237_v60, 16 }
 0x256   : > { %4753 = vrot.lane.b32.xlu0 %v4650_v13, %s6623_s30  ;;  %v3598_v36 = vshrl.u32 %v3237_v60, 16  ;;  %v3553_v34 = vor.u32 %v3552_v1, %v3548_v57  ;;  %v4660_v47 = vsel %vm6719_vm10, %v4651_v19, %v4659_v48  ;;  %v3544_v49 = vrot.slane %v3543_v16, 4  ;;  %v8509_v59 = vpop.permute.xlu2 %4725  ;;  %v3240_v61 = vld [vmem:[#allocation2 + $0xb8] sm:$0xf]  ;;  %v6582_v13 = vld [vmem:[%s6689_s29 + $0x40] sm:$0xff] }
 0x257   : > { %v3566_v11 = vrot.slane %v3564_v52, 5  ;;  %v3592_v33 = vrot.slane %v3591_v10, 4  ;;  %v3596_v15 = vrot.slane %v3594_v7, 5  ;;  %v3558_v12 = vrot.slane %v3556_v40, 5 }
 0x258   : > { %v6545_v31 = vld [vmem:[#allocation3 + $0x38] sm:$0xff]  ;;  %4755 = vrot.lane.b32.xlu1 %v4660_v47, %s6623_s30  ;;  %v3554_v28 = vrot.slane %v3553_v34, 4  ;;  %v3600_v53 = vrot.slane %v3598_v36, 4  ;;  %v3549_v3 = vsel %vm7006_vm4, %v3544_v49, %v3548_v57  ;;  %v3604_v8 = vshll.u32 %v3238_v0, 16 }
 0x259   : > { %v6562_v54 = vld [vmem:[#allocation3 + $0x38] sm:$0xff]  ;;  %6300 = vmatmul.msk.bf16.gmra.mxu3 %vm4963_vm3, %v6545_v31  ;;  %v3567_v32 = vor.u32 %v3566_v11, %v3563_v56  ;;  %v3597_v9 = vsel %vm7006_vm4, %v3592_v33, %v3596_v15  ;;  %3740 = vst.msk [vmem:[#allocation3 + $0x60] sm:$0xf] %vm280_vm0, %v3549_v3  ;;  %v3609_v24 = vshrl.u32 %v3239_v43, 16  ;;  %v3612_v17 = vshll.u32 %v3239_v43, 16 }
 0x25a   : > { %v4021_v4 = vpop.permute.xlu0 %4020  ;;  %6407 = vmatmul.msk.bf16.gmra.mxu1 %vm4963_vm3, %v6562_v54  ;;  %6325 = vmatmul.msk.bf16.gmra.mxu0 %vm4963_vm3, %v6545_v31  ;;  %v3601_v50 = vor.u32 %v3600_v53, %v3596_v15  ;;  %3744 = vst.msk [vmem:[#allocation3 + $0x70] sm:$0xf] %vm280_vm0, %v3597_v9  ;;  %v3559_v22 = vsel %vm7006_vm4, %v3554_v28, %v3558_v12  ;;  %v3606_v29 = vrot.slane %v3604_v8, 5  ;;  %v3981_v18 = vrot.slane %v8526_v26, 5  ;;  %v5757_v57 = vpop.f32.mrf.mxu2  ;;  %v3241_v56 = vld [vmem:[#allocation2 + $0xbc] sm:$0x1] }
 0x25b   : > { %4112 = vst.msk [vmem:[#allocation3 + $0x44] sm:$0xf] %vm4094_vm12, %v4021_v4  ;;  %v3568_v41 = vrot.slane %v3567_v32, 4  ;;  %v3611_v55 = vrot.slane %v3609_v24, 4  ;;  %v3614_v63 = vrot.slane %v3612_v17, 5  ;;  %v3984_v19 = vrot.slane %v3805_v27, 5 }
 0x25c   : > { %4815 = vst.msk [vmem:[#allocation3 + $0x44] sm:$0xf] %vm4797_vm1, %v4724_v42  ;;  %v3602_v46 = vrot.slane %v3601_v50, 4  ;;  %v4662_v45 = vshrl.u32 %v4182_v38, 16  ;;  %v4665_v39 = vshll.u32 %v4182_v38, 16  ;;  %v3983_v25 = vrot.slane %v3981_v18, 4 }
 0x25d   : > { %v4722_v62 = vpop.permute.xlu1 %4721  ;;  %v3573_v37 = vsel %vm7006_vm4, %v3568_v41, %v8474_v51  ;;  %3741 = vst.msk [vmem:[#allocation3 + $0x64] sm:$0xf] %vm280_vm0, %v3559_v22  ;;  %v4183_v51 = vld [vmem:[#allocation2 + $0xd0] sm:$0xf]  ;;  %v3615_v35 = vor.u32 %v3614_v63, %v3611_v55  ;;  %v3618_v60 = vshll.u32 %v3240_v61, 16  ;;  %v3622_v40 = vshrl.u32 %v3240_v61, 16 }
 0x25e   : > { %4814 = vst.msk [vmem:[#allocation3 + $0x40] sm:$0xf] %vm4797_vm1, %v4722_v62  ;;  %v3607_v44 = vsel %vm7006_vm4, %v3602_v46, %v3606_v29  ;;  %v4671_v42 = vshrl.u32 %v4183_v51, 16  ;;  %v4674_v58 = vshll.u32 %v4183_v51, 16  ;;  %v4664_v21 = vrot.slane %v4662_v45, 5  ;;  %v6583_v27 = vld [vmem:[%s6689_s29 + $0x48] sm:$0xff] }
 0x25f   : > { %3742 = vst.msk [vmem:[#allocation3 + $0x68] sm:$0xf] %vm280_vm0, %v3573_v37  ;;  %v4667_v5 = vrot.slane %v4665_v39, 6  ;;  %v3985_v2 = vsel %vm6709_vm9, %v3983_v25, %v3984_v19  ;;  %v3616_v36 = vrot.slane %v3615_v35, 4  ;;  %v3620_v34 = vrot.slane %v3618_v60, 5 }
 0x260   : > { %3745 = vst.msk [vmem:[#allocation3 + $0x74] sm:$0xf] %vm280_vm0, %v3607_v44  ;;  %v4673_v30 = vrot.slane %v4671_v42, 5  ;;  %v4676_v48 = vrot.slane %v4674_v58, 6  ;;  %4056 = vrot.lane.b32.xlu0 %v3985_v2, %s6622_s8  ;;  %6490 = vmatmul.msk.bf16.gmra.mxu2 %vm5695_vm2, %v6582_v13  ;;  %v3624_v47 = vrot.slane %v3622_v40, 4  ;;  %v3628_v49 = vshll.u32 %v3241_v56, 16 }
 0x261   : > { %v4668_v52 = vor.u32 %v4667_v5, %v4664_v21  ;;  %v3621_v4 = vsel %vm7006_vm4, %v3616_v36, %v3620_v34  ;;  %v3242_v3 = vld [vmem:[#allocation2 + $0xc0] sm:$0xf]  ;;  %v3803_v41 = vld [vmem:[#allocation2 + $0xcc] sm:$0xe]  ;;  %v3243_v19 = vld [vmem:[#allocation2 + $0xc4] sm:$0xf] }
 0x262   : > { %v4029_v23 = vpop.permute.xlu2 %4028  ;;  %v8536_v1 = vor.u32 %v4676_v48, %v4673_v30  ;;  %v3625_v33 = vor.u32 %v3624_v47, %v3620_v34  ;;  %3746 = vst.msk [vmem:[#allocation3 + $0x78] sm:$0xf] %vm280_vm0, %v3621_v4  ;;  %v3630_v53 = vrot.slane %v3628_v49, 5  ;;  %v3633_v12 = vshrl.u32 %v3242_v3, 16  ;;  %v8556_v9 = vpop.f32.mrf.mxu2  ;;  %v8564_v29 = vld [vmem:[%s8809_s4] ss:$0 sm:$0xff] }
 0x263   : > { %4116 = vst.msk [vmem:[#allocation3 + $0x54] sm:$0xf] %vm4094_vm12, %v4029_v23  ;;  %v4669_v54 = vrot.slane %v4668_v52, 4  ;;  %v3636_v32 = vshll.u32 %v3242_v3, 16  ;;  %v6225_v43 = vrot.slane %v3803_v41, 9  ;;  %v3642_v42 = vshll.u32 %v3243_v19, 16 }
 0x264   : > { %v3626_v28 = vrot.slane %v3625_v33, 4  ;;  %v3635_v62 = vrot.slane %v3633_v12, 4  ;;  %v8569_v24 = vld [vmem:[%s8811_s6] ss:$0 sm:$0xff]  ;;  %v3244_v23 = vld [vmem:[#allocation2 + $0xc8] sm:$0x1] }
 0x265   : > { %v6546_v16 = vld [vmem:[#allocation3 + $0x40] sm:$0xff]  ;;  %v4678_v11 = vsel %vm6719_vm10, %v4669_v54, %v8536_v1  ;;  %v3638_v46 = vrot.slane %v3636_v32, 5  ;;  %v3982_v55 = vsel %vm6709_vm9, %v6225_v43, %v3981_v18  ;;  %v5758_v45 = vadd.f32 %v8569_v24, %v5757_v57  ;;  %v4184_v26 = vld [vmem:[#allocation2 + $0xd4] sm:$0x3] }
 0x266   : > { %v6563_v31 = vld [vmem:[#allocation3 + $0x40] sm:$0xff]  ;;  %4757 = vrot.lane.b32.xlu1 %v4678_v11, %s6623_s30  ;;  %4054 = vrot.lane.b32.xlu2 %v3982_v55, %s6622_s8  ;;  %v3646_v58 = vshrl.u32 %v3243_v19, 16  ;;  %v4681_v30 = vshrl.u32 %v4184_v26, 16  ;;  %v4684_v48 = vshll.u32 %v4184_v26, 16  ;;  %v3644_v57 = vrot.slane %v3642_v42, 5 }
 0x267   : > { %v5134_v10 = vpop.f32.mrf.mxu0  ;;  %v3639_v38 = vor.u32 %v3638_v46, %v3635_v62  ;;  %v3652_v61 = vshll.u32 %v3244_v23, 16  ;;  %vm5901_vm9 = vcmask 64512   ;;  %v5760_v4 = vadd.f32 %v8569_v24, %v8556_v9 }
 0x268   : > { %v3648_v52 = vrot.slane %v3646_v58, 4  ;;  %v4683_v13 = vrot.slane %v4681_v30, 5  ;;  %v4686_v60 = vrot.slane %v4684_v48, 6 }
 0x269   : > { %v4023_v7 = vpop.permute.xlu0 %4022  ;;  %6301 = vmatmul.msk.bf16.gmra.mxu3 %vm4963_vm3, %v6546_v16  ;;  %v3640_v35 = vrot.slane %v3639_v38, 4  ;;  %v3654_v11 = vrot.slane %v3652_v61, 5 }
 0x26a   : > { %4113 = vst.msk [vmem:[#allocation3 + $0x48] sm:$0xf] %vm4094_vm12, %v4023_v7  ;;  %6408 = vmatmul.msk.bf16.gmra.mxu1 %vm4963_vm3, %v6563_v31  ;;  %6326 = vmatmul.msk.bf16.gmra.mxu0 %vm4963_vm3, %v6546_v16  ;;  %v4679_v16 = vrot.slane %v8536_v1, 4  ;;  %v3649_v31 = vor.u32 %v3648_v52, %v3644_v57  ;;  %v4687_v1 = vor.u32 %v4686_v60, %v4683_v13 }
 0x26b   : > { %4816 = vst.msk [vmem:[#allocation3 + $0x48] sm:$0xf] %vm4797_vm1, %v8509_v59  ;;  %v4025_v0 = vpop.permute.xlu1 %4024  ;;  %v5025_v15 = vpop.f32.mrf.mxu3  ;;  %v3631_v59 = vsel %vm7006_vm4, %v3626_v28, %v3630_v53  ;;  %v3645_v54 = vsel %vm7006_vm4, %v3640_v35, %v3644_v57 }
 0x26c   : > { %4114 = vst.msk [vmem:[#allocation3 + $0x4c] sm:$0xf] %vm4094_vm12, %v4025_v0  ;;  %v5135_v37 = vadd.f32 %v5134_v10, %v5025_v15  ;;  %v5762_v25 = vpop.f32.mrf.mxu2  ;;  %v3650_v49 = vrot.slane %v3649_v31, 4  ;;  %v4688_v15 = vsel %vm6719_vm10, %v4679_v16, %v4687_v1 }
 0x26d   : > { %3747 = vst.msk [vmem:[#allocation3 + $0x7c] sm:$0xf] %vm280_vm0, %v3631_v59  ;;  %v5763_v46 = vadd.f32 %v8569_v24, %v5762_v25 }
 0x26e   : > { %3748 = vst.msk [vmem:[#allocation3 + $0x80] sm:$0xf] %vm280_vm0, %v3645_v54  ;;  %4759 = vrot.lane.b32.xlu2 %v4688_v15, %s6623_s30  ;;  %v3655_v53 = vsel %vm7006_vm4, %v3650_v49, %v3654_v11 }
 0x26f   : > { %v5136_v8 = vpop.f32.mrf.mxu0  ;;  %3749 = vst.msk [vmem:[#allocation3 + $0x84] sm:$0xf] %vm280_vm0, %v3655_v53 }
 0x270   : > { %v4031_v22 = vpop.permute.xlu2 %4030  ;;  %6491 = vmatmul.msk.bf16.gmra.mxu2 %vm5695_vm2, %v6583_v27 }
 0x271   : > { %v4728_v50 = vpop.permute.xlu0 %4727  ;;  %4117 = vst.msk [vmem:[#allocation3 + $0x58] sm:$0xf] %vm4094_vm12, %v4031_v22 }
 0x272   : > { %4817 = vst.msk [vmem:[#allocation3 + $0x4c] sm:$0xf] %vm4797_vm1, %v4728_v50  ;;  %v6584_v50 = vld [vmem:[%s6689_s29 + $0x50] sm:$0xff] }
 0x273   : > { %v5398_v17 = vpop.f32.mrf.mxu1  ;;  %v5027_v44 = vpop.f32.mrf.mxu3 }
 0x274   : > { %v5478_v63 = vadd.f32 %v5398_v17, %v5135_v37  ;;  %v5137_v2 = vadd.f32 %v5136_v8, %v5027_v44  ;;  %v5764_v28 = vpop.f32.mrf.mxu2 }
 0x275   : > { %v5765_v25 = vadd.f32 %v8569_v24, %v5764_v28 }
 0x276   : > { %v5514_v51 = vadd.f32 %v8564_v29, %v5478_v63 }
 0x277   : > { %v5139_v39 = vpop.f32.mrf.mxu0 }
 0x278   : > { %v5546_v21 = vmax.f32 %v5514_v51, 0.0  ;;  %v4027_v14 = vpop.permute.xlu1 %4026  ;;  %v4736_v34 = vpop.permute.xlu2 %4735 }
 0x279   : > { %v6547_v18 = vld [vmem:[#allocation3 + $0x48] sm:$0xff]  ;;  %4115 = vst.msk [vmem:[#allocation3 + $0x50] sm:$0xf] %vm4094_vm12, %v4027_v14 }
 0x27a   : > { %v6564_v5 = vld [vmem:[#allocation3 + $0x48] sm:$0xff]  ;;  %v5837_v10 = vadd.f32 %v5758_v45, %v5546_v21  ;;  %6302 = vmatmul.msk.bf16.gmra.mxu3 %vm4963_vm3, %v6547_v18  ;;  %6327 = vmatmul.msk.bf16.gmra.mxu0 %vm4963_vm3, %v6547_v18 }
 0x27b   : > { %6409 = vmatmul.msk.bf16.gmra.mxu1 %vm4963_vm3, %v6564_v5  ;;  %v5400_v40 = vpop.f32.mrf.mxu1  ;;  %v5030_v56 = vpop.f32.mrf.mxu3 }
 0x27c   : > { %v5869_v7 = vmax.f32 %v5837_v10, 0.0  ;;  %v5479_v36 = vadd.f32 %v5400_v40, %v5137_v2  ;;  %v5140_v8 = vadd.f32 %v5139_v39, %v5030_v56  ;;  %v6585_v2 = vld [vmem:[%s6689_s29 + $0x58] sm:$0xff] }
 0x27d   : > { %v4730_v47 = vpop.permute.xlu0 %4729  ;;  %v5767_v43 = vpop.f32.mrf.mxu2 }
 0x27e   : > { %5902 = vst.msk [vmem:[%s8588_s10] sm:$0xff] %vm5901_vm9, %v5869_v7  ;;  %v5515_v0 = vadd.f32 %v8564_v29, %v5479_v36  ;;  %v5768_v61 = vadd.f32 %v8569_v24, %v5767_v43 }
 0x27f   : > { %v5141_v33 = vpop.f32.mrf.mxu0  ;;  %4818 = vst.msk [vmem:[#allocation3 + $0x50] sm:$0xf] %vm4797_vm1, %v4730_v47 }
 0x280   : > { %v5547_v3 = vmax.f32 %v5515_v0, 0.0  ;;  %v4732_v12 = vpop.permute.xlu1 %4731  ;;  %6492 = vmatmul.msk.bf16.gmra.mxu2 %vm5695_vm2, %v6584_v50 }
 0x281   : > { %4819 = vst.msk [vmem:[#allocation3 + $0x54] sm:$0xf] %vm4797_vm1, %v4732_v12  ;;  %v6586_v12 = vld [vmem:[%s6689_s29 + $0x60] sm:$0xff] }
 0x282   : > { %v5838_v32 = vadd.f32 %v5760_v4, %v5547_v3 }
 0x283   : > { %v5032_v20 = vpop.f32.mrf.mxu3 }
 0x284   : > { %v5870_v59 = vmax.f32 %v5838_v32, 0.0  ;;  %v5142_v63 = vadd.f32 %v5141_v33, %v5032_v20 }
 0x285   : > { %v4738_v22 = vpop.permute.xlu2 %4737  ;;  %v5769_v21 = vpop.f32.mrf.mxu2 }
 0x286   : > { %v5403_v9 = vpop.f32.mrf.mxu1  ;;  %5903 = vst.msk [vmem:[%s8588_s10 + $0x8] sm:$0xff] %vm5901_vm9, %v5870_v59  ;;  %v5770_v0 = vadd.f32 %v8569_v24, %v5769_v21 }
 0x287   : > { %v5480_v41 = vadd.f32 %v5403_v9, %v5140_v8  ;;  %v5144_v62 = vpop.f32.mrf.mxu0 }
 0x288   : > { %v6548_v37 = vld [vmem:[#allocation3 + $0x50] sm:$0xff] }
 0x289   : > { %v5516_v6 = vadd.f32 %v8564_v29, %v5480_v41  ;;  %v6565_v17 = vld [vmem:[#allocation3 + $0x50] sm:$0xff] }
 0x28a   : > { %6303 = vmatmul.msk.bf16.gmra.mxu3 %vm4963_vm3, %v6548_v37  ;;  %6328 = vmatmul.msk.bf16.gmra.mxu0 %vm4963_vm3, %v6548_v37 }
 0x28b   : > { %v5548_v44 = vmax.f32 %v5516_v6, 0.0  ;;  %v4033_v55 = vpop.permute.xlu0 %4032  ;;  %6410 = vmatmul.msk.bf16.gmra.mxu1 %vm4963_vm3, %v6565_v17  ;;  %v5035_v23 = vpop.f32.mrf.mxu3 }
 0x28c   : > { %4118 = vst.msk [vmem:[#allocation3 + $0x5c] sm:$0xf] %vm4094_vm12, %v4033_v55  ;;  %v5145_v14 = vadd.f32 %v5144_v62, %v5035_v23 }
 0x28d   : > { %v5839_v27 = vadd.f32 %v5763_v46, %v5548_v44  ;;  %4821 = vst.msk [vmem:[#allocation3 + $0x5c] sm:$0xf] %vm4797_vm1, %v4736_v34  ;;  %v4041_v45 = vpop.permute.xlu2 %4040 }
 0x28e   : > { %v5405_v38 = vpop.f32.mrf.mxu1  ;;  %v4734_v51 = vpop.permute.xlu1 %4733  ;;  %4122 = vst.msk [vmem:[#allocation3 + $0x6c] sm:$0xf] %vm4094_vm12, %v4041_v45 }
 0x28f   : > { %v5871_v19 = vmax.f32 %v5839_v27, 0.0  ;;  %v5481_v39 = vadd.f32 %v5405_v38, %v5142_v63  ;;  %4820 = vst.msk [vmem:[#allocation3 + $0x58] sm:$0xf] %vm4797_vm1, %v4734_v51  ;;  %v5146_v42 = vpop.f32.mrf.mxu0  ;;  %v5772_v56 = vpop.f32.mrf.mxu2 }
 0x290   : > { %6493 = vmatmul.msk.bf16.gmra.mxu2 %vm5695_vm2, %v6585_v2  ;;  %v5773_v17 = vadd.f32 %v8569_v24, %v5772_v56 }
 0x291   : > { %5904 = vst.msk [vmem:[%s8588_s10 + $0x10] sm:$0xff] %vm5901_vm9, %v5871_v19  ;;  %v5517_v58 = vadd.f32 %v8564_v29, %v5481_v39 }
 0x293   : > { %v5549_v26 = vmax.f32 %v5517_v58, 0.0  ;;  %v5037_v10 = vpop.f32.mrf.mxu3  ;;  %v6587_v58 = vld [vmem:[%s6689_s29 + $0x68] sm:$0xff] }
 0x294   : > { %v5147_v54 = vadd.f32 %v5146_v42, %v5037_v10 }
 0x295   : > { %v5840_v18 = vadd.f32 %v5765_v25, %v5549_v26  ;;  %v4043_v48 = vpop.permute.xlu2 %4042 }
 0x296   : > { %v5408_v5 = vpop.f32.mrf.mxu1  ;;  %4123 = vst.msk [vmem:[#allocation3 + $0x70] sm:$0xf] %vm4094_vm12, %v4043_v48  ;;  %v6549_v13 = vld [vmem:[#allocation3 + $0x58] sm:$0xff] }
 0x297   : > { %v5872_v30 = vmax.f32 %v5840_v18, 0.0  ;;  %v5482_v35 = vadd.f32 %v5408_v5, %v5145_v14  ;;  %v5149_v57 = vpop.f32.mrf.mxu0  ;;  %v6566_v60 = vld [vmem:[#allocation3 + $0x58] sm:$0xff]  ;;  %v5774_v53 = vpop.f32.mrf.mxu2 }
 0x298   : > { %v4035_v16 = vpop.permute.xlu0 %4034  ;;  %v5775_v26 = vadd.f32 %v8569_v24, %v5774_v53  ;;  %v6588_v53 = vld [vmem:[%s6689_s29 + $0x70] sm:$0xff] }
 0x299   : > { %5905 = vst.msk [vmem:[%s8588_s10 + $0x18] sm:$0xff] %vm5901_vm9, %v5872_v30  ;;  %v5518_v52 = vadd.f32 %v8564_v29, %v5482_v35 }
 0x29a   : > { %4119 = vst.msk [vmem:[#allocation3 + $0x60] sm:$0xf] %vm4094_vm12, %v4035_v16  ;;  %v4037_v31 = vpop.permute.xlu1 %4036  ;;  %6304 = vmatmul.msk.bf16.gmra.mxu3 %vm4963_vm3, %v6549_v13  ;;  %6329 = vmatmul.msk.bf16.gmra.mxu0 %vm4963_vm3, %v6549_v13 }
 0x29b   : > { %v5550_v40 = vmax.f32 %v5518_v52, 0.0  ;;  %4822 = vst.msk [vmem:[#allocation3 + $0x60] sm:$0xf] %vm4797_vm1, %v4738_v22  ;;  %6411 = vmatmul.msk.bf16.gmra.mxu1 %vm4963_vm3, %v6566_v60  ;;  %v5040_v3 = vpop.f32.mrf.mxu3 }
 0x29c   : > { %4120 = vst.msk [vmem:[#allocation3 + $0x64] sm:$0xf] %vm4094_vm12, %v4037_v31  ;;  %v5150_v22 = vadd.f32 %v5149_v57, %v5040_v3 }
 0x29d   : > { %v5841_v7 = vadd.f32 %v5768_v61, %v5550_v40  ;;  %v4748_v34 = vpop.permute.xlu2 %4747 }
 0x29e   : > { %v5410_v36 = vpop.f32.mrf.mxu1 }
 0x29f   : > { %v5873_v1 = vmax.f32 %v5841_v7, 0.0  ;;  %v5483_v47 = vadd.f32 %v5410_v36, %v5147_v54  ;;  %v5151_v49 = vpop.f32.mrf.mxu0 }
 0x2a0   : > { %v4740_v4 = vpop.permute.xlu0 %4739  ;;  %6494 = vmatmul.msk.bf16.gmra.mxu2 %vm5695_vm2, %v6586_v12 }
 0x2a1   : > { %5906 = vst.msk [vmem:[%s8588_s10 + $0x20] sm:$0xff] %vm5901_vm9, %v5873_v1  ;;  %v5519_v11 = vadd.f32 %v8564_v29, %v5483_v47 }
 0x2a2   : > { %4823 = vst.msk [vmem:[#allocation3 + $0x64] sm:$0xf] %vm4797_vm1, %v4740_v4  ;;  %v4039_v15 = vpop.permute.xlu1 %4038 }
 0x2a3   : > { %v5551_v33 = vmax.f32 %v5519_v11, 0.0  ;;  %4121 = vst.msk [vmem:[#allocation3 + $0x68] sm:$0xf] %vm4094_vm12, %v4039_v15  ;;  %v5777_v46 = vpop.f32.mrf.mxu2  ;;  %v5042_v44 = vpop.f32.mrf.mxu3 }
 0x2a4   : > { %v5152_v38 = vadd.f32 %v5151_v49, %v5042_v44  ;;  %v5778_v54 = vadd.f32 %v8569_v24, %v5777_v46 }
 0x2a5   : > { %v5842_v28 = vadd.f32 %v5770_v0, %v5551_v33  ;;  %v4750_v8 = vpop.permute.xlu2 %4749 }
 0x2a7   : > { %v5874_v32 = vmax.f32 %v5842_v28, 0.0  ;;  %v5154_v59 = vpop.f32.mrf.mxu0 }
 0x2a8   : > { %v4742_v20 = vpop.permute.xlu0 %4741 }
 0x2a9   : > { %5907 = vst.msk [vmem:[%s8588_s10 + $0x28] sm:$0xff] %vm5901_vm9, %v5874_v32  ;;  %v6550_v9 = vld [vmem:[#allocation3 + $0x60] sm:$0xff] }
 0x2aa   : > { %v6567_v50 = vld [vmem:[#allocation3 + $0x60] sm:$0xff]  ;;  %4824 = vst.msk [vmem:[#allocation3 + $0x68] sm:$0xf] %vm4797_vm1, %v4742_v20  ;;  %v4744_v41 = vpop.permute.xlu1 %4743  ;;  %6305 = vmatmul.msk.bf16.gmra.mxu3 %vm4963_vm3, %v6550_v9  ;;  %6330 = vmatmul.msk.bf16.gmra.mxu0 %vm4963_vm3, %v6550_v9 }
 0x2ab   : > { %6412 = vmatmul.msk.bf16.gmra.mxu1 %vm4963_vm3, %v6567_v50  ;;  %4825 = vst.msk [vmem:[#allocation3 + $0x6c] sm:$0xf] %vm4797_vm1, %v4744_v41  ;;  %v5779_v42 = vpop.f32.mrf.mxu2 }
 0x2ac   : > { %v5413_v62 = vpop.f32.mrf.mxu1  ;;  %v5780_v32 = vadd.f32 %v8569_v24, %v5779_v42 }
 0x2ad   : > { %v5484_v6 = vadd.f32 %v5413_v62, %v5150_v22  ;;  %v4053_v37 = vpop.permute.xlu2 %4052 }
 0x2ae   : > { %4128 = vst.msk [vmem:[#allocation3 + $0x84] sm:$0xf] %vm4094_vm12, %v4053_v37 }
 0x2af   : > { %v5520_v43 = vadd.f32 %v8564_v29, %v5484_v6  ;;  %v5156_v55 = vpop.f32.mrf.mxu0 }
 0x2b0   : > { %v4045_v27 = vpop.permute.xlu0 %4044  ;;  %6495 = vmatmul.msk.bf16.gmra.mxu2 %vm5695_vm2, %v6587_v58 }
 0x2b1   : > { %v5552_v63 = vmax.f32 %v5520_v43, 0.0  ;;  %4124 = vst.msk [vmem:[#allocation3 + $0x74] sm:$0xf] %vm4094_vm12, %v4045_v27  ;;  %v5045_v14 = vpop.f32.mrf.mxu3 }
 0x2b2   : > { %4827 = vst.msk [vmem:[#allocation3 + $0x74] sm:$0xf] %vm4797_vm1, %v4748_v34  ;;  %v4746_v51 = vpop.permute.xlu1 %4745  ;;  %v6551_v30 = vld [vmem:[#allocation3 + $0x68] sm:$0xff]  ;;  %v5155_v61 = vadd.f32 %v5154_v59, %v5045_v14 }
 0x2b3   : > { %v5843_v19 = vadd.f32 %v5773_v17, %v5552_v63  ;;  %4826 = vst.msk [vmem:[#allocation3 + $0x70] sm:$0xf] %vm4797_vm1, %v4746_v51  ;;  %v6568_v48 = vld [vmem:[#allocation3 + $0x68] sm:$0xff]  ;;  %v5782_v52 = vpop.f32.mrf.mxu2 }
 0x2b4   : > { %v5415_v45 = vpop.f32.mrf.mxu1  ;;  %v5783_v63 = vadd.f32 %v8569_v24, %v5782_v52 }
 0x2b5   : > { %v5875_v39 = vmax.f32 %v5843_v19, 0.0  ;;  %v5485_v23 = vadd.f32 %v5415_v45, %v5152_v38  ;;  %v6589_v19 = vld [vmem:[%s6689_s29 + $0x78] sm:$0xff] }
 0x2b7   : > { %5908 = vst.msk [vmem:[%s8588_s10 + $0x30] sm:$0xff] %vm5901_vm9, %v5875_v39  ;;  %v5521_v25 = vadd.f32 %v8564_v29, %v5485_v23  ;;  %v5159_v21 = vpop.f32.mrf.mxu0 }
 0x2b8   : > { %v4047_v5 = vpop.permute.xlu0 %4046 }
 0x2b9   : > { %v5553_v18 = vmax.f32 %v5521_v25, 0.0  ;;  %4125 = vst.msk [vmem:[#allocation3 + $0x78] sm:$0xf] %vm4094_vm12, %v4047_v5  ;;  %v5047_v40 = vpop.f32.mrf.mxu3 }
 0x2ba   : > { %4828 = vst.msk [vmem:[#allocation3 + $0x78] sm:$0xf] %vm4797_vm1, %v4750_v8  ;;  %v4049_v2 = vpop.permute.xlu1 %4048  ;;  %6306 = vmatmul.msk.bf16.gmra.mxu3 %vm4963_vm3, %v6551_v30  ;;  %6331 = vmatmul.msk.bf16.gmra.mxu0 %vm4963_vm3, %v6551_v30  ;;  %v5157_v1 = vadd.f32 %v5156_v55, %v5047_v40  ;;  %v6552_v33 = vld [vmem:[#allocation3 + $0x70] sm:$0xff] }
 0x2bb   : > { %v5844_v35 = vadd.f32 %v5775_v26, %v5553_v18  ;;  %6413 = vmatmul.msk.bf16.gmra.mxu1 %vm4963_vm3, %v6568_v48  ;;  %4126 = vst.msk [vmem:[#allocation3 + $0x7c] sm:$0xf] %vm4094_vm12, %v4049_v2  ;;  %v8678_v7 = vpop.f32.mrf.mxu2  ;;  %v6569_v15 = vld [vmem:[#allocation3 + $0x70] sm:$0xff] }
 0x2bc   : > { %v5785_v5 = vadd.f32 %v8569_v24, %v8678_v7 }
 0x2bd   : > { %v5876_v57 = vmax.f32 %v5844_v35, 0.0 }
 0x2bf   : > { %5909 = vst.msk [vmem:[%s8588_s10 + $0x38] sm:$0xff] %vm5901_vm9, %v5876_v57  ;;  %v8672_v10 = vpop.f32.mrf.mxu0 }
 0x2c0   : > { %v4752_v13 = vpop.permute.xlu0 %4751  ;;  %6496 = vmatmul.msk.bf16.gmra.mxu2 %vm5695_vm2, %v6588_v53  ;;  %v4055_v22 = vpop.permute.xlu2 %4054 }
 0x2c1   : > { %4829 = vst.msk [vmem:[#allocation3 + $0x7c] sm:$0xf] %vm4797_vm1, %v4752_v13 }
 0x2c2   : > { %v5418_v16 = vpop.f32.mrf.mxu1  ;;  %v4051_v31 = vpop.permute.xlu1 %4050  ;;  %4129 = vst.msk [vmem:[#allocation3 + $0x88] sm:$0xf] %vm4094_vm12, %v4055_v22 }
 0x2c3   : > { %v5486_v60 = vadd.f32 %v5418_v16, %v5155_v61  ;;  %4127 = vst.msk [vmem:[#allocation3 + $0x80] sm:$0xf] %vm4094_vm12, %v4051_v31  ;;  %v5787_v8 = vpop.f32.mrf.mxu2 }
 0x2c4   : > { %v5788_v40 = vadd.f32 %v8569_v24, %v5787_v8 }
 0x2c5   : > { %v5522_v56 = vadd.f32 %v8564_v29, %v5486_v60 }
 0x2c7   : > { %v5554_v36 = vmax.f32 %v5522_v56, 0.0  ;;  %v8680_v47 = vpop.f32.mrf.mxu0  ;;  %v5050_v28 = vpop.f32.mrf.mxu3 }
 0x2c8   : > { %v4754_v0 = vpop.permute.xlu0 %4753  ;;  %v5160_v6 = vadd.f32 %v5159_v21, %v5050_v28  ;;  %v6553_v17 = vld [vmem:[#allocation3 + $0x78] sm:$0xff]  ;;  %v4760_v38 = vpop.permute.xlu2 %4759 }
 0x2c9   : > { %v5845_v34 = vadd.f32 %v5778_v54, %v5554_v36  ;;  %4830 = vst.msk [vmem:[#allocation3 + $0x80] sm:$0xf] %vm4797_vm1, %v4754_v0  ;;  %v6570_v44 = vld [vmem:[#allocation3 + $0x78] sm:$0xff] }
 0x2ca   : > { %v5420_v49 = vpop.f32.mrf.mxu1  ;;  %v4756_v12 = vpop.permute.xlu1 %4755  ;;  %6307 = vmatmul.msk.bf16.gmra.mxu3 %vm4963_vm3, %v6552_v33  ;;  %6332 = vmatmul.msk.bf16.gmra.mxu0 %vm4963_vm3, %v6552_v33 }
 0x2cb   : > { %v5877_v11 = vmax.f32 %v5845_v34, 0.0  ;;  %v5487_v4 = vadd.f32 %v5420_v49, %v5157_v1  ;;  %6414 = vmatmul.msk.bf16.gmra.mxu1 %vm4963_vm3, %v6569_v15  ;;  %4831 = vst.msk [vmem:[#allocation3 + $0x84] sm:$0xf] %vm4797_vm1, %v4756_v12  ;;  %v5789_v62 = vpop.f32.mrf.mxu2 }
 0x2cd   : > { %5910 = vst.msk [vmem:[%s8588_s10 + $0x40] sm:$0xff] %vm5901_vm9, %v5877_v11  ;;  %v5523_v3 = vadd.f32 %v8564_v29, %v5487_v4  ;;  %v5790_v4 = vadd.f32 %v8569_v24, %v5789_v62 }
 0x2cf   : > { %v5555_v59 = vmax.f32 %v5523_v3, 0.0  ;;  %v5166_v9 = vpop.f32.mrf.mxu0  ;;  %v5052_v41 = vpop.f32.mrf.mxu3 }
 0x2d0   : > { %6497 = vmatmul.msk.bf16.gmra.mxu2 %vm5695_vm2, %v6589_v19  ;;  %v5162_v42 = vadd.f32 %v8672_v10, %v5052_v41 }
 0x2d1   : > { %v5846_v20 = vadd.f32 %v5780_v32, %v5555_v59 }
 0x2d2   : > { %v4057_v55 = vpop.permute.xlu0 %4056  ;;  %v6555_v13 = vld [vmem:[#allocation3 + $0x80] sm:$0xff] }
 0x2d3   : > { %v5878_v50 = vmax.f32 %v5846_v20, 0.0  ;;  %4130 = vst.msk [vmem:[#allocation3 + $0x8c] sm:$0xf] %vm4094_vm12, %v4057_v55  ;;  %v5792_v39 = vpop.f32.mrf.mxu2  ;;  %v6571_v60 = vld [vmem:[#allocation3 + $0x80] sm:$0xff] }
 0x2d4   : > { %4833 = vst.msk [vmem:[#allocation3 + $0x8c] sm:$0xf] %vm4797_vm1, %v4760_v38  ;;  %v5793_v20 = vadd.f32 %v8569_v24, %v5792_v39 }
 0x2d5   : > { %5911 = vst.msk [vmem:[%s8588_s10 + $0x48] sm:$0xff] %vm5901_vm9, %v5878_v50 }
 0x2d7   : > { %v5423_v46 = vpop.f32.mrf.mxu1  ;;  %v5169_v43 = vpop.f32.mrf.mxu0 }
 0x2d8   : > { %v5488_v37 = vadd.f32 %v5423_v46, %v5160_v6  ;;  %v4758_v23 = vpop.permute.xlu1 %4757 }
 0x2d9   : > { %4832 = vst.msk [vmem:[#allocation3 + $0x88] sm:$0xf] %vm4797_vm1, %v4758_v23 }
 0x2da   : > { %v5524_v27 = vadd.f32 %v8564_v29, %v5488_v37  ;;  %6308 = vmatmul.msk.bf16.gmra.mxu3 %vm4963_vm3, %v6553_v17  ;;  %6333 = vmatmul.msk.bf16.gmra.mxu0 %vm4963_vm3, %v6553_v17 }
 0x2db   : > { %6415 = vmatmul.msk.bf16.gmra.mxu1 %vm4963_vm3, %v6570_v44  ;;  %v5794_v35 = vpop.f32.mrf.mxu2 }
 0x2dc   : > { %v5556_v51 = vmax.f32 %v5524_v27, 0.0  ;;  %v5055_v45 = vpop.f32.mrf.mxu3  ;;  %v5795_v55 = vadd.f32 %v8569_v24, %v5794_v35 }
 0x2dd   : > { %v5165_v2 = vadd.f32 %v8680_v47, %v5055_v45 }
 0x2de   : > { %v5847_v58 = vadd.f32 %v5783_v63, %v5556_v51 }
 0x2df   : > { %v5425_v25 = vpop.f32.mrf.mxu1  ;;  %v5171_v26 = vpop.f32.mrf.mxu0 }
 0x2e0   : > { %v5879_v21 = vmax.f32 %v5847_v58, 0.0  ;;  %v5489_v14 = vadd.f32 %v5425_v25, %v5162_v42  ;;  %v6572_v12 = vld [vmem:[#allocation3 + $0x88] sm:$0xff] }
 0x2e2   : > { %5912 = vst.msk [vmem:[%s8588_s10 + $0x50] sm:$0xff] %vm5901_vm9, %v5879_v21  ;;  %v5525_v18 = vadd.f32 %v8564_v29, %v5489_v14 }
 0x2e3   : > { %v5797_v7 = vpop.f32.mrf.mxu2 }
 0x2e4   : > { %v5557_v30 = vmax.f32 %v5525_v18, 0.0  ;;  %v5057_v48 = vpop.f32.mrf.mxu3  ;;  %v5798_v58 = vadd.f32 %v8569_v24, %v5797_v7 }
 0x2e5   : > { %v5167_v36 = vadd.f32 %v5166_v9, %v5057_v48 }
 0x2e6   : > { %v5848_v57 = vadd.f32 %v5785_v5, %v5557_v30 }
 0x2e7   : > { %v5428_v52 = vpop.f32.mrf.mxu1  ;;  %v5174_v16 = vpop.f32.mrf.mxu0 }
 0x2e8   : > { %v5880_v61 = vmax.f32 %v5848_v57, 0.0  ;;  %v5490_v10 = vadd.f32 %v5428_v52, %v5165_v2 }
 0x2ea   : > { %5913 = vst.msk [vmem:[%s8588_s10 + $0x58] sm:$0xff] %vm5901_vm9, %v5880_v61  ;;  %v5526_v56 = vadd.f32 %v8564_v29, %v5490_v10  ;;  %6309 = vmatmul.msk.bf16.gmra.mxu3 %vm4963_vm3, %v6555_v13 }
 0x2eb   : > { %6416 = vmatmul.msk.bf16.gmra.mxu1 %vm4963_vm3, %v6571_v60  ;;  %v5799_v53 = vpop.f32.mrf.mxu2 }
 0x2ec   : > { %v5558_v31 = vmax.f32 %v5526_v56, 0.0  ;;  %v5060_v54 = vpop.f32.mrf.mxu3  ;;  %v5800_v52 = vadd.f32 %v8569_v24, %v5799_v53 }
 0x2ed   : > { %v5170_v3 = vadd.f32 %v5169_v43, %v5060_v54 }
 0x2ee   : > { %v5849_v1 = vadd.f32 %v5788_v40, %v5558_v31 }
 0x2ef   : > { %v5430_v34 = vpop.f32.mrf.mxu1  ;;  %v5176_v0 = vpop.f32.mrf.mxu0 }
 0x2f0   : > { %v5881_v47 = vmax.f32 %v5849_v1, 0.0  ;;  %v5491_v49 = vadd.f32 %v5430_v34, %v5167_v36 }
 0x2f2   : > { %5914 = vst.msk [vmem:[%s8588_s10 + $0x60] sm:$0xff] %vm5901_vm9, %v5881_v47  ;;  %v5527_v11 = vadd.f32 %v8564_v29, %v5491_v49 }
 0x2f3   : > { %v5802_v43 = vpop.f32.mrf.mxu2 }
 0x2f4   : > { %v5559_v33 = vmax.f32 %v5527_v11, 0.0  ;;  %v5062_v15 = vpop.f32.mrf.mxu3  ;;  %v5803_v54 = vadd.f32 %v8569_v24, %v5802_v43 }
 0x2f5   : > { %v5172_v62 = vadd.f32 %v5171_v26, %v5062_v15 }
 0x2f6   : > { %v5850_v28 = vadd.f32 %v5790_v4, %v5559_v33 }
 0x2f7   : > { %v5179_v50 = vpop.f32.mrf.mxu0 }
 0x2f8   : > { %v5882_v32 = vmax.f32 %v5850_v28, 0.0  ;;  %v5433_v8 = vpop.f32.mrf.mxu1 }
 0x2f9   : > { %v5492_v59 = vadd.f32 %v5433_v8, %v5170_v3 }
 0x2fa   : > { %5915 = vst.msk [vmem:[%s8588_s10 + $0x68] sm:$0xff] %vm5901_vm9, %v5882_v32 }
 0x2fb   : > { %v5528_v9 = vadd.f32 %v8564_v29, %v5492_v59  ;;  %6417 = vmatmul.msk.bf16.gmra.mxu1 %vm4963_vm3, %v6572_v12  ;;  %v5804_v42 = vpop.f32.mrf.mxu2 }
 0x2fc   : > { %v5805_v28 = vadd.f32 %v8569_v24, %v5804_v42 }
 0x2fd   : > { %v5560_v22 = vmax.f32 %v5528_v9, 0.0  ;;  %v5065_v41 = vpop.f32.mrf.mxu3 }
 0x2fe   : > { %v5175_v19 = vadd.f32 %v5174_v16, %v5065_v41 }
 0x2ff   : > { %v5851_v6 = vadd.f32 %v5793_v20, %v5560_v22  ;;  %v5181_v27 = vpop.f32.mrf.mxu0 }
 0x300   : > { %v5435_v46 = vpop.f32.mrf.mxu1 }
 0x301   : > { %v5883_v37 = vmax.f32 %v5851_v6, 0.0  ;;  %v5493_v17 = vadd.f32 %v5435_v46, %v5172_v62 }
 0x303   : > { %5916 = vst.msk [vmem:[%s8588_s10 + $0x70] sm:$0xff] %vm5901_vm9, %v5883_v37  ;;  %v5529_v44 = vadd.f32 %v8564_v29, %v5493_v17  ;;  %v5807_v57 = vpop.f32.mrf.mxu2 }
 0x305   : > { %v5561_v63 = vmax.f32 %v5529_v44, 0.0  ;;  %v5067_v38 = vpop.f32.mrf.mxu3 }
 0x306   : > { %v5177_v14 = vadd.f32 %v5176_v0, %v5067_v38 }
 0x307   : > { %v5852_v51 = vadd.f32 %v5795_v55, %v5561_v63  ;;  %v5184_v5 = vpop.f32.mrf.mxu0 }
 0x308   : > { %v5438_v45 = vpop.f32.mrf.mxu1 }
 0x309   : > { %v5884_v39 = vmax.f32 %v5852_v51, 0.0  ;;  %v5494_v23 = vadd.f32 %v5438_v45, %v5175_v19 }
 0x30b   : > { %5917 = vst.msk [vmem:[%s8588_s10 + $0x78] sm:$0xff] %vm5901_vm9, %v5884_v39  ;;  %v5530_v25 = vadd.f32 %v8564_v29, %v5494_v23  ;;  %v5809_v34 = vpop.f32.mrf.mxu2 }
 0x30d   : > { %v5562_v26 = vmax.f32 %v5530_v25, 0.0  ;;  %v5070_v21 = vpop.f32.mrf.mxu3 }
 0x30e   : > { %v5180_v16 = vadd.f32 %v5179_v50, %v5070_v21  ;;  %v5808_v50 = vadd.f32 %v8569_v24, %v5807_v57 }
 0x30f   : > { %v5853_v18 = vadd.f32 %v5798_v58, %v5562_v26  ;;  %v5186_v31 = vpop.f32.mrf.mxu0 }
 0x310   : > { %v5440_v30 = vpop.f32.mrf.mxu1 }
 0x311   : > { %v5885_v48 = vmax.f32 %v5853_v18, 0.0  ;;  %v5495_v35 = vadd.f32 %v5440_v30, %v5177_v14 }
 0x313   : > { %5918 = vst.msk [vmem:[%s8588_s10 + $0x80] sm:$0xff] %vm5901_vm9, %v5885_v48  ;;  %v5531_v2 = vadd.f32 %v8564_v29, %v5495_v35  ;;  %v5812_v59 = vpop.f32.mrf.mxu2 }
 0x314   : > { %v5813_v25 = vadd.f32 %v8569_v24, %v5812_v59 }
 0x315   : > { %v5563_v61 = vmax.f32 %v5531_v2, 0.0  ;;  %v5072_v10 = vpop.f32.mrf.mxu3 }
 0x316   : > { %v5182_v47 = vadd.f32 %v5181_v27, %v5072_v10  ;;  %v5810_v27 = vadd.f32 %v8569_v24, %v5809_v34 }
 0x317   : > { %v5854_v13 = vadd.f32 %v5800_v52, %v5563_v61  ;;  %v5189_v15 = vpop.f32.mrf.mxu0 }
 0x318   : > { %v5443_v60 = vpop.f32.mrf.mxu1 }
 0x319   : > { %v5886_v40 = vmax.f32 %v5854_v13, 0.0  ;;  %v5496_v56 = vadd.f32 %v5443_v60, %v5180_v16 }
 0x31b   : > { %5919 = vst.msk [vmem:[%s8588_s10 + $0x88] sm:$0xff] %vm5901_vm9, %v5886_v40  ;;  %v5532_v7 = vadd.f32 %v8564_v29, %v5496_v56  ;;  %v5814_v55 = vpop.f32.mrf.mxu2 }
 0x31c   : > { %v5815_v61 = vadd.f32 %v8569_v24, %v5814_v55 }
 0x31d   : > { %v5564_v36 = vmax.f32 %v5532_v7, 0.0  ;;  %v5075_v1 = vpop.f32.mrf.mxu3 }
 0x31e   : > { %v5185_v12 = vadd.f32 %v5184_v5, %v5075_v1 }
 0x31f   : > { %v5855_v49 = vadd.f32 %v5803_v54, %v5564_v36  ;;  %v5191_v62 = vpop.f32.mrf.mxu0 }
 0x320   : > { %v5445_v11 = vpop.f32.mrf.mxu1 }
 0x321   : > { %v5887_v0 = vmax.f32 %v5855_v49, 0.0  ;;  %v5497_v4 = vadd.f32 %v5445_v11, %v5182_v47 }
 0x323   : > { %5920 = vst.msk [vmem:[%s8588_s10 + $0x90] sm:$0xff] %vm5901_vm9, %v5887_v0  ;;  %v5533_v33 = vadd.f32 %v8564_v29, %v5497_v4  ;;  %v5817_v21 = vpop.f32.mrf.mxu2 }
 0x324   : > { %v5818_v7 = vadd.f32 %v8569_v24, %v5817_v21 }
 0x325   : > { %v5565_v53 = vmax.f32 %v5533_v33, 0.0  ;;  %v5077_v3 = vpop.f32.mrf.mxu3 }
 0x326   : > { %v5187_v46 = vadd.f32 %v5186_v31, %v5077_v3 }
 0x327   : > { %v5856_v32 = vadd.f32 %v5805_v28, %v5565_v53  ;;  %v5194_v39 = vpop.f32.mrf.mxu0 }
 0x328   : > { %v5448_v8 = vpop.f32.mrf.mxu1 }
 0x329   : > { %v5888_v20 = vmax.f32 %v5856_v32, 0.0  ;;  %v5498_v9 = vadd.f32 %v5448_v8, %v5185_v12 }
 0x32b   : > { %5921 = vst.msk [vmem:[%s8588_s10 + $0x98] sm:$0xff] %vm5901_vm9, %v5888_v20  ;;  %v5534_v22 = vadd.f32 %v8564_v29, %v5498_v9  ;;  %v5819_v13 = vpop.f32.mrf.mxu2 }
 0x32c   : > { %v5820_v53 = vadd.f32 %v8569_v24, %v5819_v13 }
 0x32d   : > { %v5566_v41 = vmax.f32 %v5534_v22, 0.0  ;;  %v5080_v6 = vpop.f32.mrf.mxu3 }
 0x32e   : > { %v5190_v51 = vadd.f32 %v5189_v15, %v5080_v6 }
 0x32f   : > { %v5857_v43 = vadd.f32 %v5808_v50, %v5566_v41  ;;  %v5196_v57 = vpop.f32.mrf.mxu0 }
 0x330   : > { %v5450_v37 = vpop.f32.mrf.mxu1 }
 0x331   : > { %v5889_v17 = vmax.f32 %v5857_v43, 0.0  ;;  %v5499_v44 = vadd.f32 %v5450_v37, %v5187_v46 }
 0x333   : > { %5922 = vst.msk [vmem:[%s8588_s10 + $0xa0] sm:$0xff] %vm5901_vm9, %v5889_v17  ;;  %v5535_v63 = vadd.f32 %v8564_v29, %v5499_v44  ;;  %v5822_v4 = vpop.f32.mrf.mxu2 }
 0x334   : > { %v5823_v41 = vadd.f32 %v8569_v24, %v5822_v4 }
 0x335   : > { %v5567_v38 = vmax.f32 %v5535_v63, 0.0  ;;  %v5082_v19 = vpop.f32.mrf.mxu3 }
 0x336   : > { %v5192_v5 = vadd.f32 %v5191_v62, %v5082_v19 }
 0x337   : > { %v5858_v45 = vadd.f32 %v5810_v27, %v5567_v38  ;;  %v5199_v1 = vpop.f32.mrf.mxu0 }
 0x338   : > { %v5453_v23 = vpop.f32.mrf.mxu1 }
 0x339   : > { %v5890_v42 = vmax.f32 %v5858_v45, 0.0  ;;  %v5500_v58 = vadd.f32 %v5453_v23, %v5190_v51 }
 0x33b   : > { %5923 = vst.msk [vmem:[%s8588_s10 + $0xa8] sm:$0xff] %vm5901_vm9, %v5890_v42  ;;  %v5536_v26 = vadd.f32 %v8564_v29, %v5500_v58  ;;  %v5824_v22 = vpop.f32.mrf.mxu2 }
 0x33c   : > { %v5825_v19 = vadd.f32 %v8569_v24, %v5824_v22 }
 0x33d   : > { %v5568_v14 = vmax.f32 %v5536_v26, 0.0  ;;  %v5085_v18 = vpop.f32.mrf.mxu3 }
 0x33e   : > { %v5195_v60 = vadd.f32 %v5194_v39, %v5085_v18 }
 0x33f   : > { %v5859_v30 = vadd.f32 %v5813_v25, %v5568_v14  ;;  %v5201_v12 = vpop.f32.mrf.mxu0 }
 0x340   : > { %v5455_v48 = vpop.f32.mrf.mxu1 }
 0x341   : > { %v5891_v35 = vmax.f32 %v5859_v30, 0.0  ;;  %v5501_v2 = vadd.f32 %v5455_v48, %v5192_v5 }
 0x343   : > { %5924 = vst.msk [vmem:[%s8588_s10 + $0xb0] sm:$0xff] %vm5901_vm9, %v5891_v35  ;;  %v5537_v52 = vadd.f32 %v8564_v29, %v5501_v2  ;;  %v5827_v38 = vpop.f32.mrf.mxu2 }
 0x344   : > { %v5828_v21 = vadd.f32 %v8569_v24, %v5827_v38 }
 0x345   : > { %v5569_v10 = vmax.f32 %v5537_v52, 0.0  ;;  %v5087_v16 = vpop.f32.mrf.mxu3 }
 0x346   : > { %v5197_v49 = vadd.f32 %v5196_v57, %v5087_v16 }
 0x347   : > { %v5860_v40 = vadd.f32 %v5815_v61, %v5569_v10  ;;  %v5204_v17 = vpop.f32.mrf.mxu0 }
 0x348   : > { %v5458_v56 = vpop.f32.mrf.mxu1 }
 0x349   : > { %v5892_v31 = vmax.f32 %v5860_v40, 0.0  ;;  %v5502_v54 = vadd.f32 %v5458_v56, %v5195_v60 }
 0x34b   : > { %5925 = vst.msk [vmem:[%s8588_s10 + $0xb8] sm:$0xff] %vm5901_vm9, %v5892_v31  ;;  %v5538_v36 = vadd.f32 %v8564_v29, %v5502_v54  ;;  %v5829_v5 = vpop.f32.mrf.mxu2 }
 0x34c   : > { %v5830_v16 = vadd.f32 %v8569_v24, %v5829_v5 }
 0x34d   : > { %v5570_v34 = vmax.f32 %v5538_v36, 0.0  ;;  %v5090_v47 = vpop.f32.mrf.mxu3 }
 0x34e   : > { %v5200_v8 = vadd.f32 %v5199_v1, %v5090_v47 }
 0x34f   : > { %v5861_v11 = vadd.f32 %v5818_v7, %v5570_v34  ;;  %v5206_v26 = vpop.f32.mrf.mxu0 }
 0x350   : > { %v5460_v0 = vpop.f32.mrf.mxu1 }
 0x351   : > { %v5893_v33 = vmax.f32 %v5861_v11, 0.0  ;;  %v5503_v15 = vadd.f32 %v5460_v0, %v5197_v49 }
 0x353   : > { %5926 = vst.msk [vmem:[%s8588_s10 + $0xc0] sm:$0xff] %vm5901_vm9, %v5893_v33  ;;  %v5539_v28 = vadd.f32 %v8564_v29, %v5503_v15  ;;  %v5832_v56 = vpop.f32.mrf.mxu2 }
 0x354   : > { %v5833_v36 = vadd.f32 %v8569_v24, %v5832_v56 }
 0x355   : > { %v5571_v3 = vmax.f32 %v5539_v28, 0.0  ;;  %v5092_v32 = vpop.f32.mrf.mxu3 }
 0x356   : > { %v5202_v43 = vadd.f32 %v5201_v12, %v5092_v32 }
 0x357   : > { %v5862_v59 = vadd.f32 %v5820_v53, %v5571_v3  ;;  %v5209_v10 = vpop.f32.mrf.mxu0  ;;  %v6610_v53 = vld [vmem:[%s8809_s4] ss:$0 sm:$0xff] }
 0x358   : > { %v5463_v20 = vpop.f32.mrf.mxu1 }
 0x359   : > { %v5894_v9 = vmax.f32 %v5862_v59, 0.0  ;;  %v5504_v50 = vadd.f32 %v5463_v20, %v5200_v8 }
 0x35b   : > { %5927 = vst.msk [vmem:[%s8588_s10 + $0xc8] sm:$0xff] %vm5901_vm9, %v5894_v9  ;;  %v5540_v62 = vadd.f32 %v8564_v29, %v5504_v50  ;;  %v5834_v28 = vpop.f32.mrf.mxu2 }
 0x35d   : > { %v5572_v6 = vmax.f32 %v5540_v62, 0.0  ;;  %v5095_v46 = vpop.f32.mrf.mxu3 }
 0x35e   : > { %v5205_v45 = vadd.f32 %v5204_v17, %v5095_v46 }
 0x35f   : > { %v5863_v37 = vadd.f32 %v5823_v41, %v5572_v6  ;;  %v5211_v49 = vpop.f32.mrf.mxu0 }
 0x360   : > { %v5465_v44 = vpop.f32.mrf.mxu1 }
 0x361   : > { %v5895_v55 = vmax.f32 %v5863_v37, 0.0  ;;  %v5505_v63 = vadd.f32 %v5465_v44, %v5202_v43 }
 0x363   : > { %5928 = vst.msk [vmem:[%s8588_s10 + $0xd0] sm:$0xff] %vm5901_vm9, %v5895_v55  ;;  %v5541_v27 = vadd.f32 %v8564_v29, %v5505_v63 }
 0x365   : > { %v5573_v51 = vmax.f32 %v5541_v27, 0.0  ;;  %v5097_v23 = vpop.f32.mrf.mxu3 }
 0x366   : > { %v5207_v30 = vadd.f32 %v5206_v26, %v5097_v23 }
 0x367   : > { %v5864_v39 = vadd.f32 %v5825_v19, %v5573_v51 }
 0x368   : > { %v5468_v42 = vpop.f32.mrf.mxu1 }
 0x369   : > { %v5896_v58 = vmax.f32 %v5864_v39, 0.0  ;;  %v5506_v25 = vadd.f32 %v5468_v42, %v5205_v45 }
 0x36b   : > { %5929 = vst.msk [vmem:[%s8588_s10 + $0xd8] sm:$0xff] %vm5901_vm9, %v5896_v58  ;;  %v5542_v14 = vadd.f32 %v8564_v29, %v5506_v25 }
 0x36d   : > { %v5574_v18 = vmax.f32 %v5542_v14, 0.0  ;;  %v5100_v52 = vpop.f32.mrf.mxu3 }
 0x36e   : > { %v5210_v60 = vadd.f32 %v5209_v10, %v5100_v52 }
 0x36f   : > { %v5865_v48 = vadd.f32 %v5828_v21, %v5574_v18 }
 0x370   : > { %v5470_v35 = vpop.f32.mrf.mxu1 }
 0x371   : > { %v5897_v2 = vmax.f32 %v5865_v48, 0.0  ;;  %v5507_v57 = vadd.f32 %v5470_v35, %v5207_v30 }
 0x373   : > { %5930 = vst.msk [vmem:[%s8588_s10 + $0xe0] sm:$0xff] %vm5901_vm9, %v5897_v2  ;;  %v5543_v61 = vadd.f32 %v8564_v29, %v5507_v57 }
 0x375   : > { %v5575_v13 = vmax.f32 %v5543_v61, 0.0  ;;  %v5102_v34 = vpop.f32.mrf.mxu3 }
 0x376   : > { %v5212_v11 = vadd.f32 %v5211_v49, %v5102_v34 }
 0x377   : > { %v5866_v40 = vadd.f32 %v5830_v16, %v5575_v13 }
 0x378   : > { %v5473_v31 = vpop.f32.mrf.mxu1 }
 0x379   : > { %v5898_v54 = vmax.f32 %v5866_v40, 0.0  ;;  %v5508_v7 = vadd.f32 %v5473_v31, %v5210_v60 }
 0x37b   : > { %5931 = vst.msk [vmem:[%s8588_s10 + $0xe8] sm:$0xff] %vm5901_vm9, %v5898_v54  ;;  %v5544_v1 = vadd.f32 %v8564_v29, %v5508_v7  ;;  %v6611_v29 = vld [vmem:[%s8811_s6] ss:$0 sm:$0xff] }
 0x37c   : > { %v5835_v24 = vadd.f32 %v6611_v29, %v5834_v28 }
 0x37d   : > { %v5576_v47 = vmax.f32 %v5544_v1, 0.0 }
 0x37f   : > { %v5867_v0 = vadd.f32 %v5833_v36, %v5576_v47 }
 0x380   : > { %v5475_v4 = vpop.f32.mrf.mxu1 }
 0x381   : > { %v5899_v33 = vmax.f32 %v5867_v0, 0.0  ;;  %v5509_v15 = vadd.f32 %v5475_v4, %v5212_v11 }
 0x383   : > { %5932 = vst.msk [vmem:[%s8588_s10 + $0xf0] sm:$0xff] %vm5901_vm9, %v5899_v33  ;;  %v5545_v3 = vadd.f32 %v6610_v53, %v5509_v15 }
 0x385   : > { %v5577_v12 = vmax.f32 %v5545_v3, 0.0 }
 0x387   : > { %v5868_v32 = vadd.f32 %v5835_v24, %v5577_v12 }
 0x389   : > { %v5900_v8 = vmax.f32 %v5868_v32, 0.0 }
 0x38b   : > { %5933 = vst.msk [vmem:[%s8588_s10 + $0xf8] sm:$0xff] %vm5901_vm9, %v5900_v8 }
 0x38c PF: > { %s17_s24 = sadd.s32 1, %s6618_s24  }
 0x38d   : > { %p14_p4 = scmp.ge.s32.totalorder %s17_s24, 4  }
 0x38f   :  { %16 = sbr.rel (!%p14_p4) target bundleno = 1 (0x1), region = 80 }

</bundles_post_ra>
